<compile_context>
chip_gen: v7x
topology: tpu7x:2x2x1
jax: 0.10.0
libtpu: 0.0.40
codegen_flags: <defaults>
</compile_context>

<pallas_src>
import jax
import jax.numpy as jnp
from jax import lax
from jax.experimental import pallas as pl
from jax.experimental.pallas import tpu as pltpu

NHIDDEN = 128
EPS = 1e-5
KS = 3


# ---------------------------------------------------------------------------
# Fused kernel: mlp_shared conv + ReLU (-> VMEM scratch), gamma|beta fused conv,
# instance-norm apply + SPADE modulation.  One batch element per grid step.
# ---------------------------------------------------------------------------
def spade_fused_kernel(segcol_ref, w_sh_ref, b_sh_ref,
                       x_ref, mean_ref, rstd_ref,
                       w_gb_ref, b_gb_ref,
                       out_ref, actv_ref):
    # segcol_ref: (1, H*W, 9L) bf16     w_sh_ref: (9L, 128) bf16   b_sh_ref: (1, 128) f32
    # x_ref:      (1, H*W, C)  f32      mean/rstd_ref: (1, 1, C) f32
    # w_gb_ref:   (3, 3*128, 2C) bf16   b_gb_ref: (1, 2C) f32
    # out_ref:    (1, H*W, C)  f32      actv_ref: (H+2, W+2, 128) bf16 VMEM scratch
    Hp2, Wp2, _ = actv_ref.shape
    H, W = Hp2 - 2, Wp2 - 2
    HW = out_ref.shape[1]
    C = out_ref.shape[2]

    # Zero the scratch: gives the zero halo for the SAME-padded gamma/beta conv.
    # (Re-done every grid step: scratch is uninitialized and the batch axis may
    # be core-sharded, so a pl.when(n == 0)-only init would be unsafe.)
    actv_ref[...] = jnp.zeros(actv_ref.shape, actv_ref.dtype)

    # ---- mlp_shared: one matmul (K = 9*label_nc) + bias + ReLU, kept in VMEM ----
    actv = jnp.dot(segcol_ref[0], w_sh_ref[...],
                   preferred_element_type=jnp.float32)            # (H*W, 128) f32
    actv = jnp.maximum(actv + b_sh_ref[...], 0.0)
    actv_ref[pl.ds(1, H), pl.ds(1, W), :] = (
        actv.astype(actv_ref.dtype).reshape(H, W, NHIDDEN))

    # ---- fused gamma|beta conv: 3 matmuls, K = 3*128 = 384, N = 2C ----
    acc = jnp.zeros((HW, 2 * C), jnp.float32)
    for kh in range(KS):                                          # static unroll
        tap = jnp.concatenate(
            [actv_ref[pl.ds(kh, H), pl.ds(kw, W), :] for kw in range(KS)],
            axis=-1).reshape(HW, KS * NHIDDEN)                    # (H*W, 384) bf16
        acc = acc + jnp.dot(tap, w_gb_ref[kh],
                            preferred_element_type=jnp.float32)
    acc = acc + b_gb_ref[...]
    gamma = acc[:, :C]
    beta = acc[:, C:]

    # ---- instance-norm apply (stats hoisted to the wrapper) + modulation ----
    normalized = (x_ref[0] - mean_ref[0]) * rstd_ref[0]           # (H*W, C)
    out_ref[0] = (normalized * (1.0 + gamma) + beta).astype(out_ref.dtype)


# ---------------------------------------------------------------------------
# Glue
# ---------------------------------------------------------------------------
def nearest_resize_nchw(seg, H, W):
    """PyTorch F.interpolate(mode='nearest') semantics: src = floor(dst*in/out)."""
    _, _, Hin, Win = seg.shape
    ri = (jnp.arange(H) * Hin) // H
    ci = (jnp.arange(W) * Win) // W
    return seg[:, :, ri[:, None], ci[None, :]]


@jax.jit
def spade_forward(x_nchw, seg_nchw, params):
    N, C, H, W = x_nchw.shape
    label_nc = seg_nchw.shape[1]

    # Hoisted instance-norm statistics (biased variance, matches InstanceNorm2d).
    xf = x_nchw.astype(jnp.float32)
    mean = jnp.mean(xf, axis=(2, 3))                                  # (N, C)
    var = jnp.mean(jnp.square(xf - mean[:, :, None, None]), axis=(2, 3))
    rstd = lax.rsqrt(var + EPS)
    mean = mean[:, None, :]                                           # (N, 1, C)
    rstd = rstd[:, None, :]

    # Nearest upsample + im2col of the segmap (lane-denser, K folded to 9*L).
    seg_up = nearest_resize_nchw(seg_nchw.astype(jnp.float32), H, W)  # (N, L, H, W)
    seg_nhwc = jnp.transpose(seg_up, (0, 2, 3, 1))
    seg_pad = jnp.pad(seg_nhwc, ((0, 0), (1, 1), (1, 1), (0, 0)))
    segcol = jnp.concatenate(
        [seg_pad[:, kh:kh + H, kw:kw + W, :]
         for kh in range(KS) for kw in range(KS)],
        axis=-1).reshape(N, H * W, KS * KS * label_nc).astype(jnp.bfloat16)

    x2d = jnp.transpose(xf, (0, 2, 3, 1)).reshape(N, H * W, C)

    # Repack weights: bf16 MXU inputs; gamma|beta fused along Cout.
    # TODO(synk): spectral_norm is a training-time reparam; effective conv weights
    #             are used directly here.
    w_sh = params["w_shared"].reshape(KS * KS * label_nc, NHIDDEN).astype(jnp.bfloat16)
    b_sh = params["b_shared"].astype(jnp.float32)                     # (1, 128)
    w_gb = jnp.concatenate([params["w_gamma"], params["w_beta"]], axis=-1)
    w_gb = w_gb.reshape(KS, KS * NHIDDEN, 2 * C).astype(jnp.bfloat16)  # (3, 384, 2C)
    b_gb = jnp.concatenate([params["b_gamma"], params["b_beta"]], axis=-1)
    b_gb = b_gb.astype(jnp.float32)                                   # (1, 2C)

    out2d = pl.pallas_call(
        spade_fused_kernel,
        out_shape=jax.ShapeDtypeStruct((N, H * W, C), jnp.float32),
        grid=(N,),
        in_specs=[
            pl.BlockSpec((1, H * W, KS * KS * label_nc), lambda n: (n, 0, 0)),
            pl.BlockSpec((KS * KS * label_nc, NHIDDEN), lambda n: (0, 0)),
            pl.BlockSpec((1, NHIDDEN), lambda n: (0, 0)),
            pl.BlockSpec((1, H * W, C), lambda n: (n, 0, 0)),
            pl.BlockSpec((1, 1, C), lambda n: (n, 0, 0)),
            pl.BlockSpec((1, 1, C), lambda n: (n, 0, 0)),
            pl.BlockSpec((KS, KS * NHIDDEN, 2 * C), lambda n: (0, 0, 0)),
            pl.BlockSpec((1, 2 * C), lambda n: (0, 0)),
        ],
        out_specs=pl.BlockSpec((1, H * W, C), lambda n: (n, 0, 0)),
        scratch_shapes=[pltpu.VMEM((H + 2, W + 2, NHIDDEN), jnp.bfloat16)],
        compiler_params=pltpu.CompilerParams(
            dimension_semantics=("parallel",)),
    )(segcol, w_sh, b_sh, x2d, mean, rstd, w_gb, b_gb)

    out_nhwc = out2d.reshape(N, H, W, C)
    return jnp.transpose(out_nhwc, (0, 3, 1, 2))                      # back to NCHW


# ---------------------------------------------------------------------------
# Pure-JAX f32 reference (for correctness check)
# ---------------------------------------------------------------------------
def spade_reference(x, seg, p):
    N, C, H, W = x.shape
    mean = jnp.mean(x, axis=(2, 3), keepdims=True)
    var = jnp.mean((x - mean) ** 2, axis=(2, 3), keepdims=True)
    normalized = (x - mean) * lax.rsqrt(var + EPS)

    seg_up = nearest_resize_nchw(seg, H, W)
    seg_nhwc = jnp.transpose(seg_up, (0, 2, 3, 1))

    def conv(inp, w, b):
        y = lax.conv_general_dilated(
            inp, w, window_strides=(1, 1), padding="SAME",
            dimension_numbers=("NHWC", "HWIO", "NHWC"),
            precision=lax.Precision.HIGHEST)
        return y + b[0][None, None, None, :]

    actv = jnp.maximum(conv(seg_nhwc, p["w_shared"], p["b_shared"]), 0.0)
    gamma = conv(actv, p["w_gamma"], p["b_gamma"])
    beta = conv(actv, p["w_beta"], p["b_beta"])
    out = jnp.transpose(normalized, (0, 2, 3, 1)) * (1.0 + gamma) + beta
    return jnp.transpose(out, (0, 3, 1, 2))


if __name__ == "__main__":
    # Small shapes: batch=2, norm_nc=4, label_nc=3, x spatial 16x16, segmap 8x8.
    N, C, H, W = 2, 4, 16, 16
    label_nc = 3

    key = jax.random.PRNGKey(0)
    k = jax.random.split(key, 8)

    x = jax.random.normal(k[0], (N, C, H, W), jnp.float32)
    segmap = jax.random.normal(k[1], (N, label_nc, 8, 8), jnp.float32)

    # Deterministic synthetic parameters (conv weights in HWIO layout).
    params = {
        "w_shared": 0.2 * jax.random.normal(k[2], (KS, KS, label_nc, NHIDDEN), jnp.float32),
        "b_shared": 0.1 * jax.random.normal(k[3], (1, NHIDDEN), jnp.float32),
        "w_gamma": 0.05 * jax.random.normal(k[4], (KS, KS, NHIDDEN, C), jnp.float32),
        "b_gamma": 0.1 * jax.random.normal(k[5], (1, C), jnp.float32),
        "w_beta": 0.05 * jax.random.normal(k[6], (KS, KS, NHIDDEN, C), jnp.float32),
        "b_beta": 0.1 * jax.random.normal(k[7], (1, C), jnp.float32),
    }

    out = jax.block_until_ready(spade_forward(x, segmap, params))
    ref = jax.block_until_ready(spade_reference(x, segmap, params))

    assert out.shape == (N, C, H, W)
    # bf16 MXU inputs (f32 accumulation) vs. the f32 HIGHEST reference -> looser
    # tolerance than a pure-f32 comparison.
    err = float(jnp.max(jnp.abs(out - ref)))
    assert jnp.allclose(out, ref, rtol=5e-2, atol=5e-2), f"max abs err {err}"

    print("KERNEL_OK")
</pallas_src>

<mosaic_0001>
module attributes {stable_mosaic.version = 11 : i64} {
  func.func @spade_fused_kernel(%arg0: i32, %arg1: memref<1x256x27xbf16, #tpu.memory_space<vmem>>, %arg2: memref<27x128xbf16, #tpu.memory_space<vmem>>, %arg3: memref<1x128xf32, #tpu.memory_space<vmem>>, %arg4: memref<1x256x4xf32, #tpu.memory_space<vmem>>, %arg5: memref<1x1x4xf32, #tpu.memory_space<vmem>>, %arg6: memref<1x1x4xf32, #tpu.memory_space<vmem>>, %arg7: memref<3x384x8xbf16, #tpu.memory_space<vmem>>, %arg8: memref<1x8xf32, #tpu.memory_space<vmem>>, %arg9: memref<1x256x4xf32, #tpu.memory_space<vmem>>, %arg10: memref<18x18x128xbf16, #tpu.memory_space<vmem>>) attributes {dimension_semantics = [#tpu.dimension_semantics<parallel>], iteration_bounds = array<i64: 2>, scalar_prefetch = 0 : i64, scratch_operands = 1 : i64, tpu.core_type = #tpu.core_type<tc>, window_params = [{transform_indices = @transform_0, window_bounds = array<i64: 1, 256, 27>}, {pipeline_mode = #tpu.pipeline_mode<synchronous>, transform_indices = @transform_1, window_bounds = array<i64: 27, 128>}, {pipeline_mode = #tpu.pipeline_mode<synchronous>, transform_indices = @transform_2, window_bounds = array<i64: 1, 128>}, {transform_indices = @transform_3, window_bounds = array<i64: 1, 256, 4>}, {transform_indices = @transform_4, window_bounds = array<i64: 1, 1, 4>}, {transform_indices = @transform_5, window_bounds = array<i64: 1, 1, 4>}, {pipeline_mode = #tpu.pipeline_mode<synchronous>, transform_indices = @transform_6, window_bounds = array<i64: 3, 384, 8>}, {pipeline_mode = #tpu.pipeline_mode<synchronous>, transform_indices = @transform_7, window_bounds = array<i64: 1, 8>}, {transform_indices = @transform_8, window_bounds = array<i64: 1, 256, 4>}]} {
    %cst = arith.constant 0.000000e+00 : bf16
    %0 = vector.broadcast %cst : bf16 to vector<18x18x128xbf16>
    %c0 = arith.constant 0 : index
    %c0_0 = arith.constant 0 : index
    %c0_1 = arith.constant 0 : index
    %1 = vector.load %arg10[%c0, %c0_0, %c0_1] : memref<18x18x128xbf16, #tpu.memory_space<vmem>>, vector<18x18x128xbf16>
    tpu.vector_store %arg10[%c0, %c0_0, %c0_1], %0 {strides = array<i32>} : memref<18x18x128xbf16, #tpu.memory_space<vmem>>, vector<18x18x128xbf16>,
    %c0_2 = arith.constant 0 : index
    %c0_3 = arith.constant 0 : index
    %c0_4 = arith.constant 0 : index
    %2 = vector.load %arg1[%c0_2, %c0_3, %c0_4] : memref<1x256x27xbf16, #tpu.memory_space<vmem>>, vector<1x256x27xbf16>
    %3 = vector.shape_cast %2 : vector<1x256x27xbf16> to vector<256x27xbf16>
    %c0_5 = arith.constant 0 : index
    %c0_6 = arith.constant 0 : index
    %4 = vector.load %arg2[%c0_5, %c0_6] : memref<27x128xbf16, #tpu.memory_space<vmem>>, vector<27x128xbf16>
    %cst_7 = arith.constant dense<0.000000e+00> : vector<256x128xf32>
    %5 = tpu.matmul %3, %4, %cst_7 {dimension_numbers = #tpu.dot_dimension_numbers<[1], [0], [0], [1], [0, 0, 1, 1], [], []>} : vector<256x27xbf16>, vector<27x128xbf16>, vector<256x128xf32> -> vector<256x128xf32>
    %c0_8 = arith.constant 0 : index
    %c0_9 = arith.constant 0 : index
    %6 = vector.load %arg3[%c0_8, %c0_9] : memref<1x128xf32, #tpu.memory_space<vmem>>, vector<1x128xf32>
    %7 = vector.broadcast %6 : vector<1x128xf32> to vector<256x128xf32>
    %8 = arith.addf %5, %7 : vector<256x128xf32>
    %cst_10 = arith.constant 0.000000e+00 : f32
    %9 = vector.broadcast %cst_10 : f32 to vector<256x128xf32>
    %10 = arith.maximumf %8, %9 : vector<256x128xf32>
    %11 = arith.truncf %10 : vector<256x128xf32> to vector<256x128xbf16>
    %12 = vector.shape_cast %11 : vector<256x128xbf16> to vector<16x16x128xbf16>
    %c1 = arith.constant 1 : index
    %c1_11 = arith.constant 1 : index
    %c0_12 = arith.constant 0 : index
    %13 = vector.load %arg10[%c1, %c1_11, %c0_12] : memref<18x18x128xbf16, #tpu.memory_space<vmem>>, vector<16x16x128xbf16>
    tpu.vector_store %arg10[%c1, %c1_11, %c0_12], %12 {strides = array<i32>} : memref<18x18x128xbf16, #tpu.memory_space<vmem>>, vector<16x16x128xbf16>,
    %cst_13 = arith.constant 0.000000e+00 : f32
    %14 = vector.broadcast %cst_13 : f32 to vector<256x8xf32>
    %c0_14 = arith.constant 0 : index
    %c0_15 = arith.constant 0 : index
    %c0_16 = arith.constant 0 : index
    %15 = vector.load %arg10[%c0_14, %c0_15, %c0_16] : memref<18x18x128xbf16, #tpu.memory_space<vmem>>, vector<16x16x128xbf16>
    %c0_17 = arith.constant 0 : index
    %c1_18 = arith.constant 1 : index
    %c0_19 = arith.constant 0 : index
    %16 = vector.load %arg10[%c0_17, %c1_18, %c0_19] : memref<18x18x128xbf16, #tpu.memory_space<vmem>>, vector<16x16x128xbf16>
    %c0_20 = arith.constant 0 : index
    %c2 = arith.constant 2 : index
    %c0_21 = arith.constant 0 : index
    %17 = vector.load %arg10[%c0_20, %c2, %c0_21] : memref<18x18x128xbf16, #tpu.memory_space<vmem>>, vector<16x16x128xbf16>
    %18 = tpu.concatenate %15, %16, %17 in 2 : vector<16x16x128xbf16>, vector<16x16x128xbf16>, vector<16x16x128xbf16> -> vector<16x16x384xbf16>
    %19 = vector.shape_cast %18 : vector<16x16x384xbf16> to vector<256x384xbf16>
    %c0_22 = arith.constant 0 : index
    %c0_23 = arith.constant 0 : index
    %c0_24 = arith.constant 0 : index
    %20 = vector.load %arg7[%c0_22, %c0_23, %c0_24] : memref<3x384x8xbf16, #tpu.memory_space<vmem>>, vector<1x384x8xbf16>
    %21 = vector.shape_cast %20 : vector<1x384x8xbf16> to vector<384x8xbf16>
    %cst_25 = arith.constant dense<0.000000e+00> : vector<256x8xf32>
    %22 = tpu.matmul %19, %21, %cst_25 {dimension_numbers = #tpu.dot_dimension_numbers<[1], [0], [0], [1], [0, 0, 1, 1], [], []>} : vector<256x384xbf16>, vector<384x8xbf16>, vector<256x8xf32> -> vector<256x8xf32>
    %23 = arith.addf %14, %22 : vector<256x8xf32>
    %c1_26 = arith.constant 1 : index
    %c0_27 = arith.constant 0 : index
    %c0_28 = arith.constant 0 : index
    %24 = vector.load %arg10[%c1_26, %c0_27, %c0_28] : memref<18x18x128xbf16, #tpu.memory_space<vmem>>, vector<16x16x128xbf16>
    %c1_29 = arith.constant 1 : index
    %c1_30 = arith.constant 1 : index
    %c0_31 = arith.constant 0 : index
    %25 = vector.load %arg10[%c1_29, %c1_30, %c0_31] : memref<18x18x128xbf16, #tpu.memory_space<vmem>>, vector<16x16x128xbf16>
    %c1_32 = arith.constant 1 : index
    %c2_33 = arith.constant 2 : index
    %c0_34 = arith.constant 0 : index
    %26 = vector.load %arg10[%c1_32, %c2_33, %c0_34] : memref<18x18x128xbf16, #tpu.memory_space<vmem>>, vector<16x16x128xbf16>
    %27 = tpu.concatenate %24, %25, %26 in 2 : vector<16x16x128xbf16>, vector<16x16x128xbf16>, vector<16x16x128xbf16> -> vector<16x16x384xbf16>
    %28 = vector.shape_cast %27 : vector<16x16x384xbf16> to vector<256x384xbf16>
    %c1_35 = arith.constant 1 : index
    %c0_36 = arith.constant 0 : index
    %c0_37 = arith.constant 0 : index
    %29 = vector.load %arg7[%c1_35, %c0_36, %c0_37] : memref<3x384x8xbf16, #tpu.memory_space<vmem>>, vector<1x384x8xbf16>
    %30 = vector.shape_cast %29 : vector<1x384x8xbf16> to vector<384x8xbf16>
    %cst_38 = arith.constant dense<0.000000e+00> : vector<256x8xf32>
    %31 = tpu.matmul %28, %30, %cst_38 {dimension_numbers = #tpu.dot_dimension_numbers<[1], [0], [0], [1], [0, 0, 1, 1], [], []>} : vector<256x384xbf16>, vector<384x8xbf16>, vector<256x8xf32> -> vector<256x8xf32>
    %32 = arith.addf %23, %31 : vector<256x8xf32>
    %c2_39 = arith.constant 2 : index
    %c0_40 = arith.constant 0 : index
    %c0_41 = arith.constant 0 : index
    %33 = vector.load %arg10[%c2_39, %c0_40, %c0_41] : memref<18x18x128xbf16, #tpu.memory_space<vmem>>, vector<16x16x128xbf16>
    %c2_42 = arith.constant 2 : index
    %c1_43 = arith.constant 1 : index
    %c0_44 = arith.constant 0 : index
    %34 = vector.load %arg10[%c2_42, %c1_43, %c0_44] : memref<18x18x128xbf16, #tpu.memory_space<vmem>>, vector<16x16x128xbf16>
    %c2_45 = arith.constant 2 : index
    %c2_46 = arith.constant 2 : index
    %c0_47 = arith.constant 0 : index
    %35 = vector.load %arg10[%c2_45, %c2_46, %c0_47] : memref<18x18x128xbf16, #tpu.memory_space<vmem>>, vector<16x16x128xbf16>
    %36 = tpu.concatenate %33, %34, %35 in 2 : vector<16x16x128xbf16>, vector<16x16x128xbf16>, vector<16x16x128xbf16> -> vector<16x16x384xbf16>
    %37 = vector.shape_cast %36 : vector<16x16x384xbf16> to vector<256x384xbf16>
    %c2_48 = arith.constant 2 : index
    %c0_49 = arith.constant 0 : index
    %c0_50 = arith.constant 0 : index
    %38 = vector.load %arg7[%c2_48, %c0_49, %c0_50] : memref<3x384x8xbf16, #tpu.memory_space<vmem>>, vector<1x384x8xbf16>
    %39 = vector.shape_cast %38 : vector<1x384x8xbf16> to vector<384x8xbf16>
    %cst_51 = arith.constant dense<0.000000e+00> : vector<256x8xf32>
    %40 = tpu.matmul %37, %39, %cst_51 {dimension_numbers = #tpu.dot_dimension_numbers<[1], [0], [0], [1], [0, 0, 1, 1], [], []>} : vector<256x384xbf16>, vector<384x8xbf16>, vector<256x8xf32> -> vector<256x8xf32>
    %41 = arith.addf %32, %40 : vector<256x8xf32>
    %c0_52 = arith.constant 0 : index
    %c0_53 = arith.constant 0 : index
    %42 = vector.load %arg8[%c0_52, %c0_53] : memref<1x8xf32, #tpu.memory_space<vmem>>, vector<1x8xf32>
    %43 = vector.broadcast %42 : vector<1x8xf32> to vector<256x8xf32>
    %44 = arith.addf %41, %43 : vector<256x8xf32>
    %45 = vector.extract_strided_slice %44 {offsets = [0, 0], sizes = [256, 4], strides = [1, 1]} : vector<256x8xf32> to vector<256x4xf32>
    %46 = vector.extract_strided_slice %44 {offsets = [0, 4], sizes = [256, 4], strides = [1, 1]} : vector<256x8xf32> to vector<256x4xf32>
    %c0_54 = arith.constant 0 : index
    %c0_55 = arith.constant 0 : index
    %c0_56 = arith.constant 0 : index
    %47 = vector.load %arg4[%c0_54, %c0_55, %c0_56] : memref<1x256x4xf32, #tpu.memory_space<vmem>>, vector<1x256x4xf32>
    %48 = vector.shape_cast %47 : vector<1x256x4xf32> to vector<256x4xf32>
    %c0_57 = arith.constant 0 : index
    %c0_58 = arith.constant 0 : index
    %c0_59 = arith.constant 0 : index
    %49 = vector.load %arg5[%c0_57, %c0_58, %c0_59] : memref<1x1x4xf32, #tpu.memory_space<vmem>>, vector<1x1x4xf32>
    %50 = vector.shape_cast %49 : vector<1x1x4xf32> to vector<1x4xf32>
    %51 = vector.broadcast %50 : vector<1x4xf32> to vector<256x4xf32>
    %52 = arith.subf %48, %51 : vector<256x4xf32>
    %c0_60 = arith.constant 0 : index
    %c0_61 = arith.constant 0 : index
    %c0_62 = arith.constant 0 : index
    %53 = vector.load %arg6[%c0_60, %c0_61, %c0_62] : memref<1x1x4xf32, #tpu.memory_space<vmem>>, vector<1x1x4xf32>
    %54 = vector.shape_cast %53 : vector<1x1x4xf32> to vector<1x4xf32>
    %55 = vector.broadcast %54 : vector<1x4xf32> to vector<256x4xf32>
    %56 = arith.mulf %52, %55 : vector<256x4xf32>
    %cst_63 = arith.constant 1.000000e+00 : f32
    %57 = vector.broadcast %cst_63 : f32 to vector<256x4xf32>
    %58 = arith.addf %57, %45 : vector<256x4xf32>
    %59 = arith.mulf %56, %58 : vector<256x4xf32>
    %60 = arith.addf %59, %46 : vector<256x4xf32>
    %c0_64 = arith.constant 0 : index
    %c0_65 = arith.constant 0 : index
    %c0_66 = arith.constant 0 : index
    %61 = vector.load %arg9[%c0_64, %c0_65, %c0_66] : memref<1x256x4xf32, #tpu.memory_space<vmem>>, vector<1x256x4xf32>
    %62 = vector.shape_cast %61 : vector<1x256x4xf32> to vector<256x4xf32>
    %63 = vector.shape_cast %60 : vector<256x4xf32> to vector<1x256x4xf32>
    tpu.vector_store %arg9[%c0_64, %c0_65, %c0_66], %63 {strides = array<i32>} : memref<1x256x4xf32, #tpu.memory_space<vmem>>, vector<1x256x4xf32>,
    return
  }
  func.func @transform_0(%arg0: i32) -> (i32, i32, i32) {
    %c0_i32 = arith.constant 0 : i32
    %c0_i32_0 = arith.constant 0 : i32
    %c0_i32_1 = arith.constant 0 : i32
    return %arg0, %c0_i32, %c0_i32_0 : i32, i32, i32
  }
  func.func @transform_1(%arg0: i32) -> (i32, i32) {
    %c0_i32 = arith.constant 0 : i32
    %c0_i32_0 = arith.constant 0 : i32
    %c0_i32_1 = arith.constant 0 : i32
    return %c0_i32, %c0_i32_0 : i32, i32
  }
  func.func @transform_2(%arg0: i32) -> (i32, i32) {
    %c0_i32 = arith.constant 0 : i32
    %c0_i32_0 = arith.constant 0 : i32
    %c0_i32_1 = arith.constant 0 : i32
    return %c0_i32, %c0_i32_0 : i32, i32
  }
  func.func @transform_3(%arg0: i32) -> (i32, i32, i32) {
    %c0_i32 = arith.constant 0 : i32
    %c0_i32_0 = arith.constant 0 : i32
    %c0_i32_1 = arith.constant 0 : i32
    return %arg0, %c0_i32, %c0_i32_0 : i32, i32, i32
  }
  func.func @transform_4(%arg0: i32) -> (i32, i32, i32) {
    %c0_i32 = arith.constant 0 : i32
    %c0_i32_0 = arith.constant 0 : i32
    %c0_i32_1 = arith.constant 0 : i32
    return %arg0, %c0_i32, %c0_i32_0 : i32, i32, i32
  }
  func.func @transform_5(%arg0: i32) -> (i32, i32, i32) {
    %c0_i32 = arith.constant 0 : i32
    %c0_i32_0 = arith.constant 0 : i32
    %c0_i32_1 = arith.constant 0 : i32
    return %arg0, %c0_i32, %c0_i32_0 : i32, i32, i32
  }
  func.func @transform_6(%arg0: i32) -> (i32, i32, i32) {
    %c0_i32 = arith.constant 0 : i32
    %c0_i32_0 = arith.constant 0 : i32
    %c0_i32_1 = arith.constant 0 : i32
    %c0_i32_2 = arith.constant 0 : i32
    return %c0_i32, %c0_i32_0, %c0_i32_1 : i32, i32, i32
  }
  func.func @transform_7(%arg0: i32) -> (i32, i32) {
    %c0_i32 = arith.constant 0 : i32
    %c0_i32_0 = arith.constant 0 : i32
    %c0_i32_1 = arith.constant 0 : i32
    return %c0_i32, %c0_i32_0 : i32, i32
  }
  func.func @transform_8(%arg0: i32) -> (i32, i32, i32) {
    %c0_i32 = arith.constant 0 : i32
    %c0_i32_0 = arith.constant 0 : i32
    %c0_i32_1 = arith.constant 0 : i32
    return %arg0, %c0_i32, %c0_i32_0 : i32, i32, i32
  }
}

</mosaic_0001>

<bundles_post_ra>
// kernel: spade_forward.1
= control target key start
LH: loop header
LB: loop body
LE: loop exit
PB: predicated region body
PF: predicated region fallthrough
CT: control target
= control target key end

     0   :  { %s6497_s27 = smov 0   ;;  %s8297_s0 = inlined_call_operand.vmem [shape: bf16[2,256,27], index: 0, kind: input, shape index: {}]   ;;  %s8298_s1 = inlined_call_operand.vmem [shape: bf16[27,128], index: 1, kind: input, shape index: {}]   ;;  %s8299_s2 = inlined_call_operand.vmem [shape: f32[1,128], index: 2, kind: input, shape index: {}]   ;;  %s8300_s3 = inlined_call_operand.vmem [shape: f32[2,256,4], index: 3, kind: input, shape index: {}]   ;;  %s8301_s4 = inlined_call_operand.vmem [shape: f32[2,1,4], index: 4, kind: input, shape index: {}]   ;;  %s8302_s5 = inlined_call_operand.vmem [shape: f32[2,1,4], index: 5, kind: input, shape index: {}]   ;;  %s8303_s6 = inlined_call_operand.vmem [shape: bf16[3,384,8], index: 6, kind: input, shape index: {}]   ;;  %s8304_s7 = inlined_call_operand.vmem [shape: f32[1,8], index: 7, kind: input, shape index: {}]   ;;  %s8305_s8 = inlined_call_operand.vmem [shape: f32[2,256,4], index: 8, kind: output, shape index: {}]  }
   0x1 LB: > { %s4983_s28 = sadd.s32 4294967295, %s6447_s27   ;;  %p4987_p0 = scmp.ge.s32.totalorder %s6447_s27, 1  ;;  %s6447_s27 = sphi %s6497_s27, %s18_s27  }
   0x2   : > { %p288_p1 = scmp.lt.s32.totalorder %s6447_s27, 3 }
   0x4   : > { %p289_p2 = pnand %p4987_p0, %p288_p1 }
   0x5   : > { %v6206_v0 = vld [vmem:[%s8298_s1] sm:$0xff] (!%p289_p2)   ;;  %vm592_vm0 = vcmask (!%p289_p2), 1044480   ;;  %v6511_v1 = vld [vmem:[%s8298_s1 + $0x8] sm:$0x3f] (!%p289_p2)   ;;  %vm593_vm1 = vcmask (!%p289_p2), 1045504   ;;  %p333_p3 = scmp.lt.s32.totalorder (!%p289_p2), %s4983_s28, 1 }
   0x6   : > { %292 = sbr.rel (%p289_p2) target bundleno = 938 (0x3aa), region = 52  ;;  %5839 = vmatprep.subr.bf16.mxu0 (!%p289_p2), %v6206_v0  ;;  %v6449_v2 = vmov (!%p289_p2), 65535   ;;  %v6516_v4 = vld [vmem:[%s8303_s6 + $0x140] sm:$0xff] (!%p289_p2)   ;;  %v6450_v6 = vmov (!%p289_p2), 0   ;;  %vm543_vm2 = vcmask (!%p289_p2), 220160   ;;  %v6227_v25 = vld [vmem:[%s8303_s6 + $0x148] sm:$0xff] (!%p289_p2)  }
   0x7   : > { %5840 = vmatpush3.bf16.msra.mxu0 (!%p289_p2), %v6206_v0  ;;  %v594_v3 = vsel (!%p289_p2), %vm592_vm0, 4294967295, %v6449_v2  ;;  %361 = vst [vmem:[#allocation2 + $0x18] sm:$0xf] (!%p289_p2), %v6450_v6  ;;  %355 = vst [vmem:[#allocation2] sm:$0xf] (!%p289_p2), %v6450_v6  ;;  %v6225_v24 = vld [vmem:[%s8303_s6 + $0x100] sm:$0xff] (!%p289_p2)  }
   0x8   : > { %v595_v5 = vsel (!%p289_p2), %vm593_vm1, %v594_v3, 0  ;;  %356 = vst [vmem:[#allocation2 + $0x4] sm:$0xf] (!%p289_p2), %v6450_v6  ;;  %357 = vst [vmem:[#allocation2 + $0x8] sm:$0x1] (!%p289_p2), %v6450_v6  ;;  %v6226_v26 = vld [vmem:[%s8303_s6 + $0xc0] sm:$0xff] (!%p289_p2)   ;;  %5431 = vmatprep.subr.bf16.mxu1 (!%p289_p2), %v6225_v24 }
   0x9   : > { %358 = vst [vmem:[#allocation2 + $0xc] sm:$0xf] (!%p289_p2), %v6450_v6  ;;  %359 = vst [vmem:[#allocation2 + $0x10] sm:$0xf] (!%p289_p2), %v6450_v6  ;;  %v597_v7 = vand.u32 (!%p289_p2), %v6511_v1, %v595_v5  ;;  %5432 = vmatpush3.bf16.msra.mxu1 (!%p289_p2), %v6226_v26  ;;  %v6228_v27 = vld [vmem:[%s8303_s6 + $0x108] sm:$0xff] (!%p289_p2)   ;;  %v6230_v28 = vld [vmem:[%s8303_s6 + $0x150] sm:$0xff] (!%p289_p2)  }
   0xa   : > { %360 = vst [vmem:[#allocation2 + $0x14] sm:$0x1] (!%p289_p2), %v6450_v6  ;;  %362 = vst [vmem:[#allocation2 + $0x1c] sm:$0xf] (!%p289_p2), %v6450_v6  ;;  %v6229_v29 = vld [vmem:[%s8303_s6 + $0xc8] sm:$0xff] (!%p289_p2)   ;;  %5433 = vmatprep.subr.bf16.mxu1 (!%p289_p2), %v6228_v27  ;;  %v6231_v30 = vld [vmem:[%s8303_s6 + $0x110] sm:$0xff] (!%p289_p2)  }
   0xb   : > { %363 = vst [vmem:[#allocation2 + $0x20] sm:$0x1] (!%p289_p2), %v6450_v6  ;;  %364 = vst [vmem:[#allocation2 + $0x24] sm:$0xf] (!%p289_p2), %v6450_v6  ;;  %5841 = vmatprep.subr.bf16.mxu0 (!%p289_p2), %v597_v7  ;;  %v6232_v31 = vld [vmem:[%s8303_s6 + $0xd0] sm:$0xff] (!%p289_p2)   ;;  %v6233_v32 = vld [vmem:[%s8303_s6 + $0x158] sm:$0xff] (!%p289_p2)  }
   0xc   : > { %365 = vst [vmem:[#allocation2 + $0x28] sm:$0xf] (!%p289_p2), %v6450_v6  ;;  %366 = vst [vmem:[#allocation2 + $0x2c] sm:$0x1] (!%p289_p2), %v6450_v6  ;;  %5842 = vmatpush3.bf16.msra.mxu0 (!%p289_p2), %v597_v7  ;;  %v6234_v33 = vld [vmem:[%s8303_s6 + $0x118] sm:$0xff] (!%p289_p2)   ;;  %v6236_v34 = vld [vmem:[%s8303_s6 + $0x160] sm:$0xff] (!%p289_p2)  }
   0xd   : > { %s8313_s28 = smov (!%p333_p3, %s4983_s28), 1  ;;  %367 = vst [vmem:[#allocation2 + $0x30] sm:$0xf] %v6450_v6  ;;  %368 = vst [vmem:[#allocation2 + $0x34] sm:$0xf] %v6450_v6  ;;  %5875 = vmatprep.subr.bf16.mxu0 %v6516_v4  ;;  %5434 = vmatpush3.bf16.msra.mxu1 %v6229_v29  ;;  %v6235_v35 = vld [vmem:[%s8303_s6 + $0xd8] sm:$0xff]  }
   0xe   : > { %369 = vst [vmem:[#allocation2 + $0x38] sm:$0x1] %v6450_v6  ;;  %370 = vst [vmem:[#allocation2 + $0x3c] sm:$0xf] %v6450_v6  ;;  %s5378_s13 = sshll.u32 %s8313_s28, 7  ;;  %5435 = vmatprep.subr.bf16.mxu1 %v6231_v30  ;;  %v6237_v36 = vld [vmem:[%s8303_s6 + $0x120] sm:$0xff]   ;;  %s345_s12 = scalar_lea.vmem %s8301_s4, %s8313_s28 }
   0xf   : > { %371 = vst [vmem:[#allocation2 + $0x40] sm:$0xf] %v6450_v6  ;;  %372 = vst [vmem:[#allocation2 + $0x44] sm:$0x1] %v6450_v6  ;;  %s6525_s16 = scalar_lea.vmem %s8297_s0, %s5378_s13  ;;  %v6239_v37 = vld [vmem:[%s8303_s6 + $0x168] sm:$0xff]   ;;  %v6238_v38 = vld [vmem:[%s8303_s6 + $0xe0] sm:$0xff]   ;;  %s348_s15 = scalar_lea.vmem %s8302_s5, %s8313_s28 }
  0x10   : > { %373 = vst [vmem:[#allocation2 + $0x48] sm:$0xf] %v6450_v6  ;;  %374 = vst [vmem:[#allocation2 + $0x4c] sm:$0xf] %v6450_v6  ;;  %v6208_v8 = vld [vmem:[%s6525_s16] sm:$0xff]   ;;  %v6209_v9 = vld [vmem:[%s6525_s16 + $0x8] sm:$0xff]  }
  0x11   : > { %375 = vst [vmem:[#allocation2 + $0x50] sm:$0x1] %v6450_v6  ;;  %376 = vst [vmem:[#allocation2 + $0x54] sm:$0xf] %v6450_v6  ;;  %5843 = vmatprep.mubr.msk.bf16.mxu0 %vm543_vm2, %v6208_v8  ;;  %v6210_v10 = vld [vmem:[%s6525_s16 + $0x10] sm:$0xff]   ;;  %v6211_v11 = vld [vmem:[%s6525_s16 + $0x18] sm:$0xff]   ;;  %5436 = vmatpush3.bf16.msra.mxu1 %v6232_v31 }
  0x12   : > { %377 = vst [vmem:[#allocation2 + $0x58] sm:$0xf] %v6450_v6  ;;  %378 = vst [vmem:[#allocation2 + $0x5c] sm:$0x1] %v6450_v6  ;;  %5844 = vmatmul.mubr.msk.bf16.vlgmr.msra.gmra.mrb[0].mxu0 %vm543_vm2, %v6209_v9  ;;  %v6212_v12 = vld [vmem:[%s6525_s16 + $0x20] sm:$0xff]   ;;  %v6213_v13 = vld [vmem:[%s6525_s16 + $0x28] sm:$0xff]   ;;  %5437 = vmatprep.subr.bf16.mxu1 %v6234_v33 }
  0x13   : > { %379 = vst [vmem:[#allocation2 + $0x60] sm:$0xf] %v6450_v6  ;;  %380 = vst [vmem:[#allocation2 + $0x64] sm:$0xf] %v6450_v6  ;;  %5847 = vmatprep.mubr.msk.bf16.mxu0 %vm543_vm2, %v6210_v10  ;;  %5876 = vmatpush3.bf16.msra.mxu0 %v6516_v4  ;;  %v6214_v14 = vld [vmem:[%s6525_s16 + $0x30] sm:$0xff]   ;;  %v6215_v15 = vld [vmem:[%s6525_s16 + $0x38] sm:$0xff]  }
  0x14   : > { %381 = vst [vmem:[#allocation2 + $0x68] sm:$0x1] %v6450_v6  ;;  %382 = vst [vmem:[#allocation2 + $0x6c] sm:$0xf] %v6450_v6  ;;  %v6216_v16 = vld [vmem:[%s6525_s16 + $0x40] sm:$0xff]   ;;  %v6217_v17 = vld [vmem:[%s6525_s16 + $0x48] sm:$0xff]   ;;  %5877 = vmatprep.subr.bf16.mxu0 %v6227_v25 }
  0x15   : > { %383 = vst [vmem:[#allocation2 + $0x70] sm:$0xf] %v6450_v6  ;;  %384 = vst [vmem:[#allocation2 + $0x74] sm:$0x1] %v6450_v6  ;;  %v6218_v18 = vld [vmem:[%s6525_s16 + $0x50] sm:$0xff]   ;;  %v6219_v19 = vld [vmem:[%s6525_s16 + $0x58] sm:$0xff]   ;;  %5438 = vmatpush3.bf16.msra.mxu1 %v6235_v35 }
  0x16   : > { %385 = vst [vmem:[#allocation2 + $0x78] sm:$0xf] %v6450_v6  ;;  %386 = vst [vmem:[#allocation2 + $0x7c] sm:$0xf] %v6450_v6  ;;  %v6220_v20 = vld [vmem:[%s6525_s16 + $0x60] sm:$0xff]   ;;  %v6221_v21 = vld [vmem:[%s6525_s16 + $0x68] sm:$0xff]   ;;  %5439 = vmatprep.subr.bf16.mxu1 %v6237_v36 }
  0x17   : > { %387 = vst [vmem:[#allocation2 + $0x80] sm:$0x1] %v6450_v6  ;;  %388 = vst [vmem:[#allocation2 + $0x84] sm:$0xf] %v6450_v6  ;;  %v6222_v22 = vld [vmem:[%s6525_s16 + $0x70] sm:$0xff]   ;;  %v6223_v23 = vld [vmem:[%s6525_s16 + $0x78] sm:$0xff]   ;;  %5878 = vmatpush3.bf16.msra.mxu0 %v6227_v25 }
  0x18   : > { %389 = vst [vmem:[#allocation2 + $0x88] sm:$0xf] %v6450_v6  ;;  %390 = vst [vmem:[#allocation2 + $0x8c] sm:$0x1] %v6450_v6  ;;  %5879 = vmatprep.subr.bf16.mxu0 %v6230_v28  ;;  %v6240_v39 = vld [vmem:[%s8303_s6 + $0x128] sm:$0xff]   ;;  %v6242_v40 = vld [vmem:[%s8303_s6 + $0x170] sm:$0xff]  }
  0x19   : > { %391 = vst [vmem:[#allocation2 + $0x90] sm:$0xf] %v6450_v6  ;;  %392 = vst [vmem:[#allocation2 + $0x94] sm:$0xf] %v6450_v6  ;;  %5440 = vmatpush3.bf16.msra.mxu1 %v6238_v38  ;;  %v6241_v41 = vld [vmem:[%s8303_s6 + $0xe8] sm:$0xff]   ;;  %v6243_v42 = vld [vmem:[%s8303_s6 + $0x130] sm:$0xff]  }
  0x1a   : > { %393 = vst [vmem:[#allocation2 + $0x98] sm:$0x1] %v6450_v6  ;;  %394 = vst [vmem:[#allocation2 + $0x9c] sm:$0xf] %v6450_v6  ;;  %5848 = vmatmul.mubr.msk.bf16.gmra.mrb[4].mxu0 %vm543_vm2, %v6211_v11  ;;  %5441 = vmatprep.subr.bf16.mxu1 %v6240_v39  ;;  %v6245_v43 = vld [vmem:[%s8303_s6 + $0x178] sm:$0xff]   ;;  %v6244_v44 = vld [vmem:[%s8303_s6 + $0xf0] sm:$0xff]  }
  0x1b   : > { %395 = vst [vmem:[#allocation2 + $0xa0] sm:$0xf] %v6450_v6  ;;  %396 = vst [vmem:[#allocation2 + $0xa4] sm:$0x1] %v6450_v6  ;;  %5851 = vmatprep.mubr.msk.bf16.mxu0 %vm543_vm2, %v6212_v12  ;;  %5880 = vmatpush3.bf16.msra.mxu0 %v6230_v28  ;;  %v6246_v45 = vld [vmem:[%s8303_s6 + $0x138] sm:$0xff]   ;;  %v6253_v47 = vld [vmem:[%s8303_s6 + $0x40] sm:$0xff]  }
  0x1c   : > { %397 = vst [vmem:[#allocation2 + $0xa8] sm:$0xf] %v6450_v6  ;;  %398 = vst [vmem:[#allocation2 + $0xac] sm:$0xf] %v6450_v6  ;;  %5881 = vmatprep.subr.bf16.mxu0 %v6233_v32  ;;  %v6250_v46 = vld [vmem:[%s8303_s6 + $0xf8] sm:$0xff]   ;;  %vm1212_vm3 = vcmask 1043456  }
  0x1d   : > { %399 = vst [vmem:[#allocation2 + $0xb0] sm:$0x1] %v6450_v6  ;;  %400 = vst [vmem:[#allocation2 + $0xb4] sm:$0xf] %v6450_v6  ;;  %5442 = vmatpush3.bf16.msra.mxu1 %v6241_v41  ;;  %v6636_v48 = vld [vmem:[%s8299_s2] ss:$0 sm:$0xff] }
  0x1e   : > { %401 = vst [vmem:[#allocation2 + $0xb8] sm:$0xf] %v6450_v6  ;;  %402 = vst [vmem:[#allocation2 + $0xbc] sm:$0x1] %v6450_v6  ;;  %5443 = vmatprep.subr.bf16.mxu1 %v6243_v42  ;;  %vm1213_vm4 = vsmask.f32 7938 }
  0x1f   : > { %403 = vst [vmem:[#allocation2 + $0xc0] sm:$0xf] %v6450_v6  ;;  %404 = vst [vmem:[#allocation2 + $0xc4] sm:$0xf] %v6450_v6  ;;  %5882 = vmatpush3.bf16.msra.mxu0 %v6233_v32  ;;  %vm888_vm5 = vsmask.f32 256 }
  0x20   : > { %405 = vst [vmem:[#allocation2 + $0xc8] sm:$0x1] %v6450_v6  ;;  %406 = vst [vmem:[#allocation2 + $0xcc] sm:$0xf] %v6450_v6  ;;  %5883 = vmatprep.subr.bf16.mxu0 %v6236_v34  ;;  %vm889_vm6 = vsmask.f32 4368 }
  0x21   : > { %407 = vst [vmem:[#allocation2 + $0xd0] sm:$0xf] %v6450_v6  ;;  %408 = vst [vmem:[#allocation2 + $0xd4] sm:$0x1] %v6450_v6  ;;  %5444 = vmatpush3.bf16.msra.mxu1 %v6244_v44  ;;  %vm1219_vm7 = vcmask 1040384   ;;  %vm1794_vm11 = vcmask 1046528  }
  0x22   : > { %5852 = vmatmul.mubr.msk.bf16.gmra.mrb[8].mxu0 %vm543_vm2, %v6213_v13  ;;  %5445 = vmatprep.subr.bf16.mxu1 %v6246_v45  ;;  %vm6645_vm8 = vmand %vm1212_vm3, %vm1213_vm4  ;;  %v1224_v12 = vld [vmem:[#allocation2 + $0x18] sm:$0xf]  ;;  %v1228_v28 = vld [vmem:[#allocation2 + $0x20] sm:$0x1]  ;;  %vm1537_vm12 = vsmask.f32 7424 }
  0x23   : > { %5855 = vmatprep.mubr.msk.bf16.mxu0 %vm543_vm2, %v6214_v14  ;;  %5884 = vmatpush3.bf16.msra.mxu0 %v6236_v34  ;;  %vm6652_vm9 = vmor %vm888_vm5, %vm889_vm6  ;;  %v1221_v34 = vld [vmem:[#allocation2 + $0x14] sm:$0x1]  ;;  %s6451_s25 = smov 124   ;;  %s5379_s26 = sshll.u32 %s8313_s28, 8  ;;  %vm4865_vm13 = vcmask 31744  }
  0x24   : > { %5885 = vmatprep.subr.bf16.mxu0 %v6239_v37  ;;  %vm6658_vm10 = vmand %vm1219_vm7, %vm888_vm5  ;;  %s8083_s9 = scalar_lea.vmem %s8300_s3, %s5379_s26  ;;  %s8116_s17 = scalar_lea.vmem %s8305_s8, %s5379_s26 }
  0x25   : > { %5446 = vmatpush3.bf16.msra.mxu1 %v6250_v46 }
  0x26   : > { %6019 = vmatprep.subr.bf16.mxu1 %v6253_v47 }
  0x27   : > { %5886 = vmatpush3.bf16.msra.mxu0 %v6239_v37 }
  0x28   : > { %5887 = vmatprep.subr.bf16.mxu0 %v6242_v40 }
  0x2a   : > { %5856 = vmatmul.mubr.msk.bf16.gmra.mrb[12].mxu0 %vm543_vm2, %v6215_v15 }
  0x2b   : > { %5859 = vmatprep.mubr.msk.bf16.mxu0 %vm543_vm2, %v6216_v16  ;;  %5888 = vmatpush3.bf16.msra.mxu0 %v6242_v40 }
  0x2c   : > { %5889 = vmatprep.subr.bf16.mxu0 %v6245_v43 }
  0x2f   : > { %5890 = vmatpush3.bf16.msra.mxu0 %v6245_v43 }
  0x30   : > { %5567 = vmatprep.subr.bf16.mxu0 %v6253_v47 }
  0x32   : > { %5860 = vmatmul.mubr.msk.bf16.gmra.mrb[16].mxu0 %vm543_vm2, %v6217_v17 }
  0x33   : > { %5863 = vmatprep.mubr.msk.bf16.mxu0 %vm543_vm2, %v6218_v18 }
  0x3a   : > { %5864 = vmatmul.mubr.msk.bf16.gmra.mrb[20].mxu0 %vm543_vm2, %v6219_v19 }
  0x3b   : > { %5867 = vmatprep.mubr.msk.bf16.mxu0 %vm543_vm2, %v6220_v20  ;;  %v1215_v20 = vld [vmem:[#allocation2 + $0xc] sm:$0xf] }
  0x42   : > { %5868 = vmatmul.mubr.msk.bf16.gmra.mrb[24].mxu0 %vm543_vm2, %v6221_v21 }
  0x43   : > { %5871 = vmatprep.mubr.msk.bf16.mxu0 %vm543_vm2, %v6222_v22 }
  0x4a   : > { %5872 = vmatmul.mubr.msk.bf16.gmra.mrb[28].mxu0 %vm543_vm2, %v6223_v23 }
  0xe5   : > { %v5845_v49 = vpop.f32.mrb[0].mxu0 }
  0xe6   : > { %v642_v50 = vadd.f32 %v5845_v49, %v6636_v48  ;;  %v633_v51 = vpop.f32.mrb[1].mxu0 }
  0xe7   : > { %v634_v52 = vadd.f32 %v6636_v48, %v633_v51  ;;  %v5846_v53 = vpop.f32.mrb[2].mxu0 }
  0xe8   : > { %v762_v54 = vmax.f32 %v642_v50, 0.0  ;;  %v645_v55 = vadd.f32 %v5846_v53, %v6636_v48  ;;  %v636_v56 = vpop.f32.mrb[3].mxu0 }
  0xe9   : > { %v760_v57 = vmax.f32 %v634_v52, 0.0  ;;  %v637_v58 = vadd.f32 %v6636_v48, %v636_v56 }
  0xea   : > { %v5383_v59 = vpack.c.bf16 %v762_v54, %v762_v54  ;;  %v763_v60 = vmax.f32 %v645_v55, 0.0  ;;  %v1238_v55 = vld [vmem:[#allocation2 + $0x30] sm:$0xf] }
  0xeb   : > { %v5381_v61 = vpack.c.bf16 %v760_v57, %v760_v57  ;;  %v761_v62 = vmax.f32 %v637_v58, 0.0 }
  0xec   : > { %v909_v63 = vshrl.u32 %v5383_v59, 16  ;;  %v5384_v0 = vpack.c.bf16 %v763_v60, %v763_v60  ;;  %v912_v1 = vshll.u32 %v5383_v59, 16 }
  0xed   : > { %v892_v2 = vshrl.u32 %v5381_v61, 16  ;;  %v895_v3 = vshll.u32 %v5381_v61, 16  ;;  %v5382_v4 = vpack.c.bf16 %v761_v62, %v761_v62  ;;  %v5849_v5 = vpop.f32.mrb[4].mxu0  ;;  %v1231_v61 = vld [vmem:[#allocation2 + $0x24] sm:$0xf] }
  0xee   : > { %v911_v6 = vrot.slane %v909_v63, 7  ;;  %v917_v7 = vshrl.u32 %v5384_v0, 16  ;;  %v920_v8 = vshll.u32 %v5384_v0, 16  ;;  %v658_v9 = vadd.f32 %v5849_v5, %v6636_v48  ;;  %v649_v10 = vpop.f32.mrb[5].mxu0 }
  0xef   : > { %v894_v13 = vrot.slane %v892_v2, 7  ;;  %v900_v14 = vshrl.u32 %v5382_v4, 16  ;;  %v903_v15 = vshll.u32 %v5382_v4, 16  ;;  %v650_v16 = vadd.f32 %v6636_v48, %v649_v10  ;;  %v5850_v17 = vpop.f32.mrb[6].mxu0 }
  0xf0   : > { %v914_v18 = vor.u32 %v912_v1, %v911_v6  ;;  %v915_v19 = vrot.slane %v911_v6, 4  ;;  %v919_v22 = vrot.slane %v917_v7, 7  ;;  %v766_v23 = vmax.f32 %v658_v9, 0.0  ;;  %v652_v24 = vpop.f32.mrb[7].mxu0 }
  0xf1   : > { %v897_v25 = vor.u32 %v895_v3, %v894_v13  ;;  %v898_v26 = vrot.slane %v894_v13, 4  ;;  %v902_v29 = vrot.slane %v900_v14, 7  ;;  %v764_v30 = vmax.f32 %v650_v16, 0.0 }
  0xf2   : > { %v1225_v31 = vsel %vm6645_vm8, %v914_v18, %v1224_v12  ;;  %v922_v32 = vor.u32 %v920_v8, %v919_v22  ;;  %v924_v33 = vrot.slane %v919_v22, 4  ;;  %v5387_v35 = vpack.c.bf16 %v766_v23, %v766_v23  ;;  %v1242_v18 = vld [vmem:[#allocation2 + $0x38] sm:$0x1] }
  0xf3   : > { %1226 = vst [vmem:[#allocation2 + $0x18] sm:$0xf] %v1225_v31  ;;  %v1216_v36 = vsel %vm6645_vm8, %v897_v25, %v1215_v20  ;;  %v905_v37 = vor.u32 %v903_v15, %v902_v29  ;;  %v907_v38 = vrot.slane %v902_v29, 4  ;;  %v5385_v39 = vpack.c.bf16 %v764_v30, %v764_v30  ;;  %v1252_v29 = vld [vmem:[#allocation2 + $0x48] sm:$0xf] }
  0xf4   : > { %1217 = vst [vmem:[#allocation2 + $0xc] sm:$0xf] %v1216_v36  ;;  %v923_v40 = vsel %vm6652_vm9, %v915_v19, %v922_v32  ;;  %v1229_v41 = vsel %vm6658_vm10, %v924_v33, %v1228_v28  ;;  %v943_v42 = vshrl.u32 %v5387_v35, 16  ;;  %v946_v43 = vshll.u32 %v5387_v35, 16  ;;  %v1235_v19 = vld [vmem:[#allocation2 + $0x2c] sm:$0x1] }
  0xf5   : > { %1227 = vst [vmem:[#allocation2 + $0x1c] sm:$0xf] %v923_v40  ;;  %1230 = vst [vmem:[#allocation2 + $0x20] sm:$0x1] %v1229_v41  ;;  %v906_v44 = vsel %vm6652_vm9, %v898_v26, %v905_v37  ;;  %v1222_v45 = vsel %vm6658_vm10, %v907_v38, %v1221_v34  ;;  %v926_v46 = vshrl.u32 %v5385_v39, 16  ;;  %v929_v47 = vshll.u32 %v5385_v39, 16 }
  0xf6   : > { %v5853_v49 = vpop.f32.mrb[8].mxu0  ;;  %1218 = vst [vmem:[#allocation2 + $0x10] sm:$0xf] %v906_v44  ;;  %1223 = vst [vmem:[#allocation2 + $0x14] sm:$0x1] %v1222_v45  ;;  %v6674_v50 = vrot.slane %v943_v42, 7  ;;  %v661_v51 = vadd.f32 %v5850_v17, %v6636_v48  ;;  %v653_v52 = vadd.f32 %v6636_v48, %v652_v24 }
  0xf7   : > { %v674_v53 = vadd.f32 %v5853_v49, %v6636_v48  ;;  %v665_v54 = vpop.f32.mrb[9].mxu0  ;;  %v928_v56 = vrot.slane %v926_v46, 7  ;;  %v1245_v35 = vld [vmem:[#allocation2 + $0x3c] sm:$0xf] }
  0xf8   : > { %v666_v57 = vadd.f32 %v6636_v48, %v665_v54  ;;  %v5854_v58 = vpop.f32.mrb[10].mxu0  ;;  %v948_v59 = vor.u32 %v946_v43, %v6674_v50  ;;  %v949_v60 = vrot.slane %v6674_v50, 4  ;;  %v767_v62 = vmax.f32 %v661_v51, 0.0 }
  0xf9   : > { %v765_v63 = vmax.f32 %v653_v52, 0.0  ;;  %v668_v0 = vpop.f32.mrb[11].mxu0  ;;  %v931_v1 = vor.u32 %v929_v47, %v928_v56  ;;  %v932_v2 = vrot.slane %v928_v56, 4  ;;  %v770_v3 = vmax.f32 %v674_v53, 0.0 }
  0xfa   : > { %v768_v4 = vmax.f32 %v666_v57, 0.0  ;;  %v1239_v5 = vsel %vm6645_vm8, %v948_v59, %v1238_v55  ;;  %v5388_v6 = vpack.c.bf16 %v767_v62, %v767_v62  ;;  %v677_v8 = vadd.f32 %v5854_v58, %v6636_v48 }
  0xfb   : > { %v5386_v7 = vpack.c.bf16 %v765_v63, %v765_v63  ;;  %1240 = vst [vmem:[#allocation2 + $0x30] sm:$0xf] %v1239_v5  ;;  %v1232_v9 = vsel %vm6645_vm8, %v931_v1, %v1231_v61  ;;  %v5391_v10 = vpack.c.bf16 %v770_v3, %v770_v3  ;;  %v669_v13 = vadd.f32 %v6636_v48, %v668_v0  ;;  %v1907_v61 = vld [vmem:[#allocation2 + $0xc] sm:$0xf]  ;;  %v1256_v5 = vld [vmem:[#allocation2 + $0x50] sm:$0x1] }
  0xfc   : > { %v5389_v12 = vpack.c.bf16 %v768_v4, %v768_v4  ;;  %1233 = vst [vmem:[#allocation2 + $0x24] sm:$0xf] %v1232_v9  ;;  %v951_v14 = vshrl.u32 %v5388_v6, 16  ;;  %v954_v15 = vshll.u32 %v5388_v6, 16  ;;  %v771_v30 = vmax.f32 %v677_v8, 0.0 }
  0xfd   : > { %v934_v16 = vshrl.u32 %v5386_v7, 16  ;;  %v937_v17 = vshll.u32 %v5386_v7, 16  ;;  %v977_v20 = vshrl.u32 %v5391_v10, 16  ;;  %v980_v22 = vshll.u32 %v5391_v10, 16  ;;  %v5857_v25 = vpop.f32.mrb[12].mxu0 }
  0xfe   : > { %v960_v23 = vshrl.u32 %v5389_v12, 16  ;;  %v963_v24 = vshll.u32 %v5389_v12, 16  ;;  %v953_v26 = vrot.slane %v951_v14, 7  ;;  %v769_v31 = vmax.f32 %v669_v13, 0.0  ;;  %v681_v32 = vpop.f32.mrb[13].mxu0 }
  0xff   : > { %v936_v28 = vrot.slane %v934_v16, 7  ;;  %v6688_v33 = vrot.slane %v977_v20, 7  ;;  %v690_v36 = vadd.f32 %v5857_v25, %v6636_v48  ;;  %v682_v37 = vadd.f32 %v6636_v48, %v681_v32  ;;  %v5858_v38 = vpop.f32.mrb[14].mxu0  ;;  %v1908_v62 = vld [vmem:[#allocation2 + $0x10] sm:$0xf] }
 0x100   : > { %v6690_v34 = vrot.slane %v960_v23, 7  ;;  %v956_v39 = vor.u32 %v954_v15, %v953_v26  ;;  %v958_v40 = vrot.slane %v953_v26, 4  ;;  %v684_v43 = vpop.f32.mrb[15].mxu0  ;;  %v5392_v55 = vpack.c.bf16 %v771_v30, %v771_v30  ;;  %v1955_v63 = vld [vmem:[#allocation2 + $0xc] sm:$0xe] }
 0x101   : > { %v939_v41 = vor.u32 %v937_v17, %v936_v28  ;;  %v941_v42 = vrot.slane %v936_v28, 4  ;;  %v982_v44 = vor.u32 %v980_v22, %v6688_v33  ;;  %v983_v45 = vrot.slane %v6688_v33, 4  ;;  %v1249_v14 = vld [vmem:[#allocation2 + $0x44] sm:$0x1] }
 0x102   : > { %v965_v46 = vor.u32 %v963_v24, %v6690_v34  ;;  %v966_v47 = vrot.slane %v6690_v34, 4  ;;  %v957_v49 = vsel %vm6652_vm9, %v949_v60, %v956_v39  ;;  %v1243_v50 = vsel %vm6658_vm10, %v958_v40, %v1242_v18  ;;  %v6716_v23 = vld [vmem:[#allocation2 + $0x14] ss:$0 sps:$4 sm:$0x11]  }
 0x103   : > { %v940_v51 = vsel %vm6652_vm9, %v932_v2, %v939_v41  ;;  %v1236_v52 = vsel %vm6658_vm10, %v941_v42, %v1235_v19  ;;  %1241 = vst [vmem:[#allocation2 + $0x34] sm:$0xf] %v957_v49  ;;  %1244 = vst [vmem:[#allocation2 + $0x38] sm:$0x1] %v1243_v50  ;;  %v1253_v53 = vsel %vm6645_vm8, %v982_v44, %v1252_v29  ;;  %v774_v57 = vmax.f32 %v690_v36, 0.0 }
 0x104   : > { %1234 = vst [vmem:[#allocation2 + $0x28] sm:$0xf] %v940_v51  ;;  %1237 = vst [vmem:[#allocation2 + $0x2c] sm:$0x1] %v1236_v52  ;;  %v1246_v54 = vsel %vm6645_vm8, %v965_v46, %v1245_v35  ;;  %v5390_v56 = vpack.c.bf16 %v769_v31, %v769_v31  ;;  %v772_v58 = vmax.f32 %v682_v37, 0.0  ;;  %v693_v59 = vadd.f32 %v5858_v38, %v6636_v48 }
 0x105   : > { %1254 = vst [vmem:[#allocation2 + $0x48] sm:$0xf] %v1253_v53  ;;  %1247 = vst [vmem:[#allocation2 + $0x3c] sm:$0xf] %v1246_v54  ;;  %v685_v60 = vadd.f32 %v6636_v48, %v684_v43  ;;  %v985_v0 = vshrl.u32 %v5392_v55, 16  ;;  %v988_v1 = vshll.u32 %v5392_v55, 16  ;;  %v5395_v6 = vpack.c.bf16 %v774_v57, %v774_v57 }
 0x106   : > { %v968_v2 = vshrl.u32 %v5390_v56, 16  ;;  %v971_v3 = vshll.u32 %v5390_v56, 16  ;;  %v6712_v4 = vpop.f32.mrb[16].mxu0  ;;  %v5393_v7 = vpack.c.bf16 %v772_v58, %v772_v58  ;;  %v775_v8 = vmax.f32 %v693_v59, 0.0  ;;  %v1266_v31 = vld [vmem:[#allocation2 + $0x60] sm:$0xf] }
 0x107   : > { %v773_v9 = vmax.f32 %v685_v60, 0.0  ;;  %v697_v10 = vpop.f32.mrb[17].mxu0  ;;  %v987_v12 = vrot.slane %v985_v0, 7  ;;  %v6714_v15 = vcombine.low %v1907_v61, %v1908_v62  ;;  %v5141_v16 = vcombine.low %v1955_v63, %v1908_v62  ;;  %v1259_v39 = vld [vmem:[#allocation2 + $0x54] sm:$0xf] }
 0x108   : > { %v970_v13 = vrot.slane %v968_v2, 7  ;;  %v5862_v17 = vpop.f32.mrb[18].mxu0  ;;  %v1011_v18 = vshrl.u32 %v5395_v6, 16  ;;  %v1014_v19 = vshll.u32 %v5395_v6, 16  ;;  %v994_v20 = vshrl.u32 %v5393_v7, 16 }
 0x109   : > { %v997_v22 = vshll.u32 %v5393_v7, 16  ;;  %v6718_v24 = vpop.f32.mrb[19].mxu0  ;;  %v990_v25 = vor.u32 %v988_v1, %v987_v12  ;;  %v992_v26 = vrot.slane %v987_v12, 4  ;;  %v5396_v33 = vpack.c.bf16 %v775_v8, %v775_v8  ;;  %v6728_v40 = vld [vmem:[#allocation2 + $0x20] ss:$0 sps:$4 sm:$0x11]  }
 0x10a   : > { %v973_v28 = vor.u32 %v971_v3, %v970_v13  ;;  %v975_v29 = vrot.slane %v970_v13, 4  ;;  %v1013_v30 = vrot.slane %v1011_v18, 7  ;;  %v996_v32 = vrot.slane %v994_v20, 7  ;;  %v1956_v56 = vld [vmem:[#allocation2 + $0x18] sm:$0xe] }
 0x10b   : > { %v5394_v34 = vpack.c.bf16 %v773_v9, %v773_v9  ;;  %v991_v35 = vsel %vm6652_vm9, %v983_v45, %v990_v25  ;;  %v1257_v36 = vsel %vm6658_vm10, %v992_v26, %v1256_v5  ;;  %v6730_v45 = vld [vmem:[#allocation2 + $0x1c] sm:$0xf]  ;;  %v1019_v46 = vshrl.u32 %v5396_v33, 16  ;;  %v1270_v63 = vld [vmem:[#allocation2 + $0x68] sm:$0x1] }
 0x10c   : > { %v974_v37 = vsel %vm6652_vm9, %v966_v47, %v973_v28  ;;  %v1250_v38 = vsel %vm6658_vm10, %v975_v29, %v1249_v14  ;;  %1255 = vst [vmem:[#allocation2 + $0x4c] sm:$0xf] %v991_v35  ;;  %1258 = vst [vmem:[#allocation2 + $0x50] sm:$0x1] %v1257_v36  ;;  %v1016_v41 = vor.u32 %v1014_v19, %v1013_v30  ;;  %v1017_v42 = vrot.slane %v1013_v30, 4 }
 0x10d   : > { %1248 = vst [vmem:[#allocation2 + $0x40] sm:$0xf] %v974_v37  ;;  %1251 = vst [vmem:[#allocation2 + $0x44] sm:$0x1] %v1250_v38  ;;  %v999_v43 = vor.u32 %v997_v22, %v996_v32  ;;  %v1000_v44 = vrot.slane %v996_v32, 4  ;;  %v1022_v49 = vshll.u32 %v5396_v33, 16  ;;  %v5142_v60 = vcombine.low %v1956_v56, %v6730_v45 }
 0x10e   : > { %v1002_v50 = vshrl.u32 %v5394_v34, 16  ;;  %v1005_v47 = vshll.u32 %v5394_v34, 16  ;;  %v6732_v51 = vpop.f32.mrb[20].mxu0  ;;  %v1267_v52 = vsel %vm6645_vm8, %v1016_v41, %v1266_v31  ;;  %v2371_v54 = vrot.slane %v5141_v16, 1  ;;  %v1263_v0 = vld [vmem:[#allocation2 + $0x5c] sm:$0x1] }
 0x10f   : > { %v1260_v53 = vsel %vm6645_vm8, %v999_v43, %v1259_v39  ;;  %v2372_v55 = vrot.slane %v6716_v23, 1  ;;  %v6739_v57 = vpop.f32.mrb[21].mxu0  ;;  %1268 = vst [vmem:[#allocation2 + $0x60] sm:$0xf] %v1267_v52  ;;  %v1021_v58 = vrot.slane %v1019_v46, 7  ;;  %v2375_v61 = vrot.slane %v6728_v40, 1 }
 0x110   : > { %1261 = vst [vmem:[#allocation2 + $0x54] sm:$0xf] %v1260_v53  ;;  %v1004_v59 = vrot.slane %v1002_v50, 7  ;;  %v6743_v62 = vpop.f32.mrb[22].mxu0  ;;  %v706_v2 = vadd.f32 %v6712_v4, %v6636_v48  ;;  %v698_v3 = vadd.f32 %v6636_v48, %v697_v10  ;;  %v709_v5 = vadd.f32 %v5862_v17, %v6636_v48  ;;  %v6755_v4 = vld [vmem:[%s8303_s6] sm:$0xff]   ;;  %v6768_v22 = vld [vmem:[%s8303_s6 + $0x48] sm:$0xff]  }
 0x111   : > { %v2373_v1 = vsel %vm1794_vm11, %v2371_v54, %v2372_v55  ;;  %v6750_v6 = vpop.f32.mrb[23].mxu0  ;;  %v1024_v7 = vor.u32 %v1022_v49, %v1021_v58  ;;  %v1026_v8 = vrot.slane %v1021_v58, 4  ;;  %v2374_v13 = vrot.slane %v5142_v60, 1  ;;  %v1909_v33 = vld [vmem:[#allocation2 + $0x18] sm:$0xf] }
 0x112   : > { %v1007_v9 = vor.u32 %v1005_v47, %v1004_v59  ;;  %v1009_v12 = vrot.slane %v1004_v59, 4  ;;  %5891 = vmatprep.mubr.bf16.mxu0 %v2373_v1  ;;  %v778_v14 = vmax.f32 %v706_v2, 0.0  ;;  %v776_v16 = vmax.f32 %v698_v3, 0.0  ;;  %v1911_v34 = vld [vmem:[#allocation2 + $0x24] sm:$0xf]  ;;  %v6791_v47 = vld [vmem:[%s8303_s6 + $0x50] sm:$0xff]  }
 0x113   : > { %v779_v18 = vmax.f32 %v709_v5, 0.0  ;;  %v1025_v10 = vsel %vm6652_vm9, %v1017_v42, %v1024_v7  ;;  %v1271_v17 = vsel %vm6658_vm10, %v1026_v8, %v1270_v63  ;;  %v2376_v25 = vsel %vm1794_vm11, %v2374_v13, %v2375_v61  ;;  %v6775_v35 = vld [vmem:[#allocation2 + $0x28] sm:$0xf]  ;;  %v1273_v43 = vld [vmem:[#allocation2 + $0x6c] sm:$0xf]  ;;  %v6807_v1 = vld [vmem:[%s8303_s6 + $0x10] sm:$0xff]  }
 0x114   : > { %v1008_v19 = vsel %vm6652_vm9, %v1000_v44, %v1007_v9  ;;  %v1264_v20 = vsel %vm6658_vm10, %v1009_v12, %v1263_v0  ;;  %1269 = vst [vmem:[#allocation2 + $0x64] sm:$0xf] %v1025_v10  ;;  %1272 = vst [vmem:[#allocation2 + $0x68] sm:$0x1] %v1271_v17  ;;  %v5399_v26 = vpack.c.bf16 %v778_v14, %v778_v14  ;;  %5892 = vmatmul.mubr.bf16.vlgmr.msra.gmra.mrb[32].mxu0 %v2376_v25  ;;  %v6782_v42 = vld [vmem:[%s8303_s6 + $0x8] sm:$0xff]   ;;  %v6812_v2 = vld [vmem:[%s8303_s6 + $0x58] sm:$0xff]  }
 0x115   : > { %1262 = vst [vmem:[#allocation2 + $0x58] sm:$0xf] %v1008_v19  ;;  %1265 = vst [vmem:[#allocation2 + $0x5c] sm:$0x1] %v1264_v20  ;;  %v5397_v28 = vpack.c.bf16 %v776_v16, %v776_v16  ;;  %v5400_v29 = vpack.c.bf16 %v779_v18, %v779_v18  ;;  %v2118_v30 = vshll.u32 %v6714_v15, 16  ;;  %v2123_v31 = vshll.u32 %v6716_v23, 16  ;;  %5568 = vmatpush3.bf16.msra.mxu0 %v6755_v4 }
 0x116   : > { %v701_v32 = vadd.f32 %v6636_v48, %v6718_v24  ;;  %v1045_v36 = vshrl.u32 %v5399_v26, 16  ;;  %v1048_v37 = vshll.u32 %v5399_v26, 16  ;;  %v6777_v41 = vpop.f32.mrb[24].mxu0  ;;  %v1280_v23 = vld [vmem:[#allocation2 + $0x78] sm:$0xf]  ;;  %v2116_v46 = vshrl.u32 %v6714_v15, 16  ;;  %5569 = vmatprep.subr.bf16.mxu0 %v6768_v22 }
 0x117   : > { %v1028_v38 = vshrl.u32 %v5397_v28, 16  ;;  %v1031_v39 = vshll.u32 %v5397_v28, 16  ;;  %v1053_v24 = vshrl.u32 %v5400_v29, 16  ;;  %v1056_v44 = vshll.u32 %v5400_v29, 16  ;;  %v6786_v50 = vpop.f32.mrb[25].mxu0 }
 0x118   : > { %v2120_v49 = vrot.slane %v2118_v30, 1  ;;  %v1047_v52 = vrot.slane %v1045_v36, 7  ;;  %v1284_v54 = vld [vmem:[#allocation2 + $0x80] sm:$0x1]  ;;  %v777_v55 = vmax.f32 %v701_v32, 0.0  ;;  %v6797_v56 = vcombine.low %v1909_v33, %v6730_v45  ;;  %v6799_v58 = vpop.f32.mrb[26].mxu0 }
 0x119   : > { %v6794_v53 = vrot.slane %v1028_v38, 7  ;;  %v1055_v59 = vrot.slane %v1053_v24, 7  ;;  %v2125_v61 = vrot.slane %v2123_v31, 1  ;;  %v2135_v63 = vshll.u32 %v6728_v40, 16  ;;  %v6802_v0 = vpop.f32.mrb[27].mxu0  ;;  %5570 = vmatpush3.bf16.msra.mxu0 %v6782_v42  ;;  %v6846_v36 = vld [vmem:[%s8303_s6 + $0x18] sm:$0xff]  }
 0x11a   : > { %v2121_v60 = vor.u32 %v2120_v49, %v2116_v46  ;;  %v1050_v45 = vor.u32 %v1048_v37, %v1047_v52  ;;  %v1051_v3 = vrot.slane %v1047_v52, 4  ;;  %v1957_v7 = vld [vmem:[#allocation2 + $0x24] sm:$0xe]  ;;  %v6816_v8 = vcombine.low %v1911_v34, %v6775_v35  ;;  %v6818_v40 = vld [vmem:[#allocation2 + $0x2c] ss:$0 sps:$4 sm:$0x11]   ;;  %5571 = vmatprep.subr.bf16.mxu0 %v6791_v47 }
 0x11b   : > { %v1033_v5 = vor.u32 %v1031_v39, %v6794_v53  ;;  %v1058_v9 = vor.u32 %v1056_v44, %v1055_v59  ;;  %v1060_v12 = vrot.slane %v1055_v59, 4  ;;  %v5398_v14 = vpack.c.bf16 %v777_v55, %v777_v55  ;;  %v6822_v16 = vld [vmem:[#allocation2 + $0x38] ss:$0 sps:$4 sm:$0x11]   ;;  %v6831_v20 = vld [vmem:[#allocation2 + $0x34] sm:$0xf] }
 0x11c   : > { %v2126_v13 = vsel %vm1537_vm12, %v2121_v60, %v2125_v61  ;;  %v1281_v18 = vsel %vm6645_vm8, %v1050_v45, %v1280_v23  ;;  %v1034_v10 = vrot.slane %v6794_v53, 4  ;;  %v2130_v19 = vshll.u32 %v6797_v56, 16  ;;  %v1958_v25 = vld [vmem:[#allocation2 + $0x30] sm:$0xe]  ;;  %v6867_v55 = vld [vmem:[%s8303_s6 + $0x60] sm:$0xff]  }
 0x11d   : > { %v1274_v17 = vsel %vm6645_vm8, %v1033_v5, %v1273_v43  ;;  %2660 = vmatprep.mubr.bf16.mxu1 %v2126_v13  ;;  %1282 = vst [vmem:[#allocation2 + $0x78] sm:$0xf] %v1281_v18  ;;  %v1059_v26 = vsel %vm6652_vm9, %v1051_v3, %v1058_v9  ;;  %v1285_v28 = vsel %vm6658_vm10, %v1060_v12, %v1284_v54  ;;  %v1036_v29 = vshrl.u32 %v5398_v14, 16  ;;  %v6851_v39 = vpop.f32.mrb[28].mxu0  ;;  %v6888_v5 = vld [vmem:[%s8303_s6 + $0x68] sm:$0xff]  }
 0x11e   : > { %1275 = vst [vmem:[#allocation2 + $0x6c] sm:$0xf] %v1274_v17  ;;  %v1039_v30 = vshll.u32 %v5398_v14, 16  ;;  %2661 = vmatmul.mubr.bf16.vlgmr.msra.gmra.mrb[0].mxu1 %v6714_v15  ;;  %1283 = vst [vmem:[#allocation2 + $0x7c] sm:$0xf] %v1059_v26  ;;  %v2128_v31 = vshrl.u32 %v6797_v56, 16  ;;  %v5143_v33 = vcombine.low %v1957_v7, %v6775_v35  ;;  %5572 = vmatpush3.bf16.msra.mxu0 %v6807_v1 }
 0x11f   : > { %1286 = vst [vmem:[#allocation2 + $0x80] sm:$0x1] %v1285_v28  ;;  %6027 = vmatpush3.bf16.msra.mxu1 %v6755_v4  ;;  %v2132_v32 = vrot.slane %v2130_v19, 1  ;;  %v2378_v34 = vrot.slane %v6818_v40, 1  ;;  %v1038_v37 = vrot.slane %v1036_v29, 7  ;;  %v2137_v15 = vrot.slane %v2135_v63, 1  ;;  %5573 = vmatprep.subr.bf16.mxu0 %v6812_v2 }
 0x120   : > { %v5144_v38 = vcombine.low %v1958_v25, %v6831_v20  ;;  %v2381_v4 = vrot.slane %v6822_v16, 1  ;;  %6020 = vmatprep.subr.bf16.mxu1 %v6768_v22  ;;  %v1277_v35 = vld [vmem:[#allocation2 + $0x74] sm:$0x1]  ;;  %v2377_v43 = vrot.slane %v5143_v33, 1  ;;  %v722_v24 = vadd.f32 %v6732_v51, %v6636_v48  ;;  %v6858_v46 = vpop.f32.mrb[29].mxu0 }
 0x121   : > { %v2133_v23 = vor.u32 %v2132_v32, %v2128_v31  ;;  %v714_v44 = vadd.f32 %v6636_v48, %v6739_v57  ;;  %v1041_v49 = vor.u32 %v1039_v30, %v1038_v37  ;;  %v1043_v52 = vrot.slane %v1038_v37, 4  ;;  %v6862_v54 = vpop.f32.mrb[30].mxu0  ;;  %v1913_v7 = vld [vmem:[#allocation2 + $0x30] sm:$0xf]  ;;  %v6892_v14 = vld [vmem:[#allocation2 + $0x40] sm:$0xf] }
 0x122   : > { %v2380_v53 = vrot.slane %v5144_v38, 1  ;;  %v725_v22 = vadd.f32 %v6743_v62, %v6636_v48  ;;  %v2379_v59 = vsel %vm1794_vm11, %v2377_v43, %v2378_v34  ;;  %v782_v57 = vmax.f32 %v722_v24, 0.0  ;;  %v6872_v61 = vpop.f32.mrb[31].mxu0  ;;  %5574 = vmatpush3.bf16.msra.mxu0 %v6846_v36  ;;  %v6878_v62 = vld [vmem:[%s8303_s6 + $0x20] sm:$0xff]   ;;  %v1959_v18 = vld [vmem:[#allocation2 + $0x3c] sm:$0xe] }
 0x123   : > { %v2138_v51 = vsel %vm1537_vm12, %v2133_v23, %v2137_v15  ;;  %v780_v60 = vmax.f32 %v714_v44, 0.0  ;;  %6028 = vmatpush3.bf16.msra.mxu1 %v6782_v42  ;;  %v1042_v63 = vsel %vm6652_vm9, %v1034_v10, %v1041_v49  ;;  %v1278_v45 = vsel %vm6658_vm10, %v1043_v52, %v1277_v35  ;;  %5895 = vmatprep.mubr.bf16.mxu0 %v2379_v59  ;;  %v6898_v10 = vld [vmem:[%s8303_s6 + $0x28] sm:$0xff]   ;;  %v1294_v31 = vld [vmem:[#allocation2 + $0x90] sm:$0xf] }
 0x124   : > { %2668 = vmatprep.mubr.bf16.mxu1 %v2138_v51  ;;  %v2382_v3 = vsel %vm1794_vm11, %v2380_v53, %v2381_v4  ;;  %v783_v42 = vmax.f32 %v725_v22, 0.0  ;;  %1276 = vst [vmem:[#allocation2 + $0x70] sm:$0xf] %v1042_v63  ;;  %1279 = vst [vmem:[#allocation2 + $0x74] sm:$0x1] %v1278_v45  ;;  %v5403_v9 = vpack.c.bf16 %v782_v57, %v782_v57  ;;  %6021 = vmatprep.subr.bf16.mxu1 %v6791_v47  ;;  %v6925_v49 = vld [vmem:[%s8303_s6 + $0x30] sm:$0xff]  }
 0x125   : > { %5896 = vmatmul.mubr.bf16.gmra.mrb[36].mxu0 %v2382_v3  ;;  %v5401_v12 = vpack.c.bf16 %v780_v60, %v780_v60  ;;  %v717_v13 = vadd.f32 %v6636_v48, %v6750_v6  ;;  %v2140_v19 = vshrl.u32 %v6816_v8, 16  ;;  %v2142_v25 = vshll.u32 %v6816_v8, 16  ;;  %v6904_v6 = vld [vmem:[#allocation2 + $0x44] ss:$0 sps:$4 sm:$0x11]   ;;  %5575 = vmatprep.subr.bf16.mxu0 %v6867_v55  ;;  %v6936_v3 = vld [vmem:[%s8303_s6 + $0x78] sm:$0xff]  }
 0x126   : > { %v5404_v17 = vpack.c.bf16 %v783_v42, %v783_v42  ;;  %2669 = vmatmul.mubr.bf16.gmra.mrb[4].mxu1 %v6797_v56  ;;  %v2147_v26 = vshll.u32 %v6818_v40, 16  ;;  %v1079_v28 = vshrl.u32 %v5403_v9, 16  ;;  %v1082_v47 = vshll.u32 %v5403_v9, 16  ;;  %5576 = vmatpush3.bf16.msra.mxu0 %v6878_v62  ;;  %v1287_v56 = vld [vmem:[#allocation2 + $0x84] sm:$0xf]  ;;  %v6914_v40 = vld [vmem:[%s8303_s6 + $0x70] sm:$0xff]  }
 0x127   : > { %v1062_v29 = vshrl.u32 %v5401_v12, 16  ;;  %v1065_v30 = vshll.u32 %v5401_v12, 16  ;;  %6029 = vmatpush3.bf16.msra.mxu1 %v6807_v1  ;;  %v781_v34 = vmax.f32 %v717_v13, 0.0  ;;  %v2144_v37 = vrot.slane %v2142_v25, 1  ;;  %5577 = vmatprep.subr.bf16.mxu0 %v6888_v5  ;;  %v1298_v1 = vld [vmem:[#allocation2 + $0x98] sm:$0x1] }
 0x128   : > { %v1087_v32 = vshrl.u32 %v5404_v17, 16  ;;  %v1090_v33 = vshll.u32 %v5404_v17, 16  ;;  %6022 = vmatprep.subr.bf16.mxu1 %v6812_v2  ;;  %v1081_v15 = vrot.slane %v1079_v28, 7  ;;  %v2149_v4 = vrot.slane %v2147_v26, 1  ;;  %v1960_v59 = vld [vmem:[#allocation2 + $0x48] sm:$0xe] }
 0x129   : > { %v1064_v38 = vrot.slane %v1062_v29, 7  ;;  %v5145_v35 = vcombine.low %v1959_v18, %v6892_v14  ;;  %v6918_v23 = vcombine.low %v1913_v7, %v6831_v20  ;;  %v5402_v24 = vpack.c.bf16 %v781_v34, %v781_v34  ;;  %v6920_v2 = vld [vmem:[#allocation2 + $0x50] ss:$0 sps:$4 sm:$0x11]   ;;  %v6930_v45 = vld [vmem:[#allocation2 + $0x4c] sm:$0xf] }
 0x12a   : > { %v1089_v43 = vrot.slane %v1087_v32, 7  ;;  %v2145_v44 = vor.u32 %v2144_v37, %v2140_v19  ;;  %v1084_v52 = vor.u32 %v1082_v47, %v1081_v15  ;;  %v1085_v53 = vrot.slane %v1081_v15, 4  ;;  %5578 = vmatpush3.bf16.msra.mxu0 %v6898_v10  ;;  %v6958_v47 = vld [vmem:[%s8303_s6 + $0x38] sm:$0xff]  }
 0x12b   : > { %v1067_v22 = vor.u32 %v1065_v30, %v1064_v38  ;;  %v2384_v51 = vrot.slane %v6904_v6, 1  ;;  %6030 = vmatpush3.bf16.msra.mxu1 %v6846_v36  ;;  %v1070_v60 = vshrl.u32 %v5402_v24, 16  ;;  %v1073_v63 = vshll.u32 %v5402_v24, 16  ;;  %5579 = vmatprep.subr.bf16.mxu0 %v6914_v40 }
 0x12c   : > { %v1092_v20 = vor.u32 %v1090_v33, %v1089_v43  ;;  %v1094_v57 = vrot.slane %v1089_v43, 4  ;;  %6023 = vmatprep.subr.bf16.mxu1 %v6867_v55  ;;  %v1295_v36 = vsel %vm6645_vm8, %v1084_v52, %v1294_v31  ;;  %v2150_v7 = vsel %vm1537_vm12, %v2145_v44, %v2149_v4  ;;  %v1291_v55 = vld [vmem:[#allocation2 + $0x8c] sm:$0x1]  ;;  %v1915_v31 = vld [vmem:[#allocation2 + $0x3c] sm:$0xf] }
 0x12d   : > { %v1288_v42 = vsel %vm6645_vm8, %v1067_v22, %v1287_v56  ;;  %v2383_v9 = vrot.slane %v5145_v35, 1  ;;  %1296 = vst [vmem:[#allocation2 + $0x90] sm:$0xf] %v1295_v36  ;;  %v1068_v12 = vrot.slane %v1064_v38, 4  ;;  %v1072_v17 = vrot.slane %v1070_v60, 7  ;;  %2676 = vmatprep.mubr.bf16.mxu1 %v2150_v7 }
 0x12e   : > { %1289 = vst [vmem:[#allocation2 + $0x84] sm:$0xf] %v1288_v42  ;;  %v1093_v13 = vsel %vm6652_vm9, %v1085_v53, %v1092_v20  ;;  %v1299_v18 = vsel %vm6658_vm10, %v1094_v57, %v1298_v1  ;;  %v5146_v25 = vcombine.low %v1960_v59, %v6930_v45  ;;  %v2387_v26 = vrot.slane %v6920_v2, 1  ;;  %2677 = vmatmul.mubr.bf16.gmra.mrb[8].mxu1 %v6816_v8  ;;  %v1961_v35 = vld [vmem:[#allocation2 + $0x54] sm:$0xe] }
 0x12f   : > { %1297 = vst [vmem:[#allocation2 + $0x94] sm:$0xf] %v1093_v13  ;;  %1300 = vst [vmem:[#allocation2 + $0x98] sm:$0x1] %v1299_v18  ;;  %v2385_v19 = vsel %vm1794_vm11, %v2383_v9, %v2384_v51  ;;  %v738_v28 = vadd.f32 %v6777_v41, %v6636_v48  ;;  %5580 = vmatpush3.bf16.msra.mxu0 %v6925_v49  ;;  %v1075_v29 = vor.u32 %v1073_v63, %v1072_v17  ;;  %v6968_v41 = vld [vmem:[%s8303_s6 + $0x80] sm:$0xff]  }
 0x130   : > { %v1077_v30 = vrot.slane %v1072_v17, 4  ;;  %5899 = vmatprep.mubr.bf16.mxu0 %v2385_v19  ;;  %v730_v56 = vadd.f32 %v6636_v48, %v6786_v50  ;;  %v741_v32 = vadd.f32 %v6799_v58, %v6636_v48  ;;  %5581 = vmatprep.subr.bf16.mxu0 %v6936_v3  ;;  %v2386_v8 = vrot.slane %v5146_v25, 1  ;;  %v6989_v59 = vld [vmem:[#allocation2 + $0x5c] ss:$0 sps:$4 sm:$0x11]  }
 0x131   : > { %v786_v33 = vmax.f32 %v738_v28, 0.0  ;;  %v733_v34 = vadd.f32 %v6636_v48, %v6802_v0  ;;  %v2152_v37 = vshrl.u32 %v6918_v23, 16  ;;  %6031 = vmatpush3.bf16.msra.mxu1 %v6878_v62  ;;  %v1076_v50 = vsel %vm6652_vm9, %v1068_v12, %v1075_v29  ;;  %v1308_v20 = vld [vmem:[#allocation2 + $0xa8] sm:$0xf]  ;;  %v1301_v36 = vld [vmem:[#allocation2 + $0x9c] sm:$0xf] }
 0x132   : > { %v1292_v58 = vsel %vm6658_vm10, %v1077_v30, %v1291_v55  ;;  %v784_v15 = vmax.f32 %v730_v56, 0.0  ;;  %v787_v38 = vmax.f32 %v741_v32, 0.0  ;;  %6024 = vmatprep.subr.bf16.mxu1 %v6888_v5  ;;  %1290 = vst [vmem:[#allocation2 + $0x88] sm:$0xf] %v1076_v50  ;;  %v2388_v1 = vsel %vm1794_vm11, %v2386_v8, %v2387_v26  ;;  %v6986_v5 = vld [vmem:[#allocation2 + $0x58] sm:$0xf] }
 0x133   : > { %1293 = vst [vmem:[#allocation2 + $0x8c] sm:$0x1] %v1292_v58  ;;  %v5407_v4 = vpack.c.bf16 %v786_v33, %v786_v33  ;;  %v785_v48 = vmax.f32 %v733_v34, 0.0  ;;  %v2154_v0 = vshll.u32 %v6918_v23, 16  ;;  %5582 = vmatpush3.bf16.msra.mxu0 %v6958_v47  ;;  %v6983_v62 = vcombine.low %v1915_v31, %v6892_v14  ;;  %v1312_v42 = vld [vmem:[#allocation2 + $0xb0] sm:$0x1] }
 0x134   : > { %5900 = vmatmul.mubr.bf16.gmra.mrb[40].mxu0 %v2388_v1  ;;  %v5405_v43 = vpack.c.bf16 %v784_v15, %v784_v15  ;;  %v5408_v24 = vpack.c.bf16 %v787_v38, %v787_v38  ;;  %v2159_v44 = vshll.u32 %v6822_v16, 16  ;;  %5923 = vmatprep.subr.bf16.mxu0 %v6968_v41  ;;  %v1305_v17 = vld [vmem:[#allocation2 + $0xa4] sm:$0x1]  ;;  %v5147_v19 = vcombine.low %v1961_v35, %v6986_v5  ;;  %v6994_v25 = vld [vmem:[#allocation2 + $0x68] ss:$0 sps:$4 sm:$0x11]  }
 0x135   : > { %v1113_v52 = vshrl.u32 %v5407_v4, 16  ;;  %v1116_v53 = vshll.u32 %v5407_v4, 16  ;;  %v5406_v22 = vpack.c.bf16 %v785_v48, %v785_v48  ;;  %v2156_v51 = vrot.slane %v2154_v0, 1  ;;  %6032 = vmatpush3.bf16.msra.mxu1 %v6898_v10  ;;  %v1962_v10 = vld [vmem:[#allocation2 + $0x60] sm:$0xe] }
 0x136   : > { %v1096_v14 = vshrl.u32 %v5405_v43, 16  ;;  %v1099_v57 = vshll.u32 %v5405_v43, 16  ;;  %v1121_v60 = vshrl.u32 %v5408_v24, 16  ;;  %v1124_v63 = vshll.u32 %v5408_v24, 16  ;;  %6025 = vmatprep.subr.bf16.mxu1 %v6914_v40  ;;  %v6998_v8 = vld [vmem:[#allocation2 + $0x64] sm:$0xf] }
 0x137   : > { %v1115_v16 = vrot.slane %v1113_v52, 7  ;;  %v1104_v7 = vshrl.u32 %v5406_v22, 16  ;;  %v1107_v9 = vshll.u32 %v5406_v22, 16  ;;  %v2157_v12 = vor.u32 %v2156_v51, %v2152_v37  ;;  %v6339_v58 = vld [vmem:[%s8303_s6 + $0x1c0] sm:$0xff]  }
 0x138   : > { %v1098_v13 = vrot.slane %v1096_v14, 7  ;;  %v1123_v18 = vrot.slane %v1121_v60, 7  ;;  %v2161_v55 = vrot.slane %v2159_v44, 1  ;;  %v2390_v40 = vrot.slane %v6989_v59, 1  ;;  %v6440_v24 = vld [vmem:[%s8299_s2] ss:$0 sm:$0xff] }
 0x139   : > { %v1118_v26 = vor.u32 %v1116_v53, %v1115_v16  ;;  %v1119_v28 = vrot.slane %v1115_v16, 4  ;;  %v1106_v29 = vrot.slane %v1104_v7, 7  ;;  %6033 = vmatpush3.bf16.msra.mxu1 %v6925_v49  ;;  %v1917_v49 = vld [vmem:[#allocation2 + $0x48] sm:$0xf]  ;;  %v2389_v1 = vrot.slane %v5147_v19, 1 }
 0x13a   : > { %v1101_v30 = vor.u32 %v1099_v57, %v1098_v13  ;;  %v1102_v31 = vrot.slane %v1098_v13, 4  ;;  %v1126_v56 = vor.u32 %v1124_v63, %v1123_v18  ;;  %v1128_v32 = vrot.slane %v1123_v18, 4  ;;  %6026 = vmatprep.subr.bf16.mxu1 %v6936_v3  ;;  %v1963_v53 = vld [vmem:[#allocation2 + $0x6c] sm:$0xe]  ;;  %v7036_v63 = vld [vmem:[#allocation2 + $0x70] sm:$0xf] }
 0x13b   : > { %v1309_v33 = vsel %vm6645_vm8, %v1118_v26, %v1308_v20  ;;  %v1109_v34 = vor.u32 %v1107_v9, %v1106_v29  ;;  %v1111_v37 = vrot.slane %v1106_v29, 4  ;;  %v2162_v50 = vsel %vm1537_vm12, %v2157_v12, %v2161_v55  ;;  %v7032_v14 = vld [vmem:[#allocation2 + $0x74] ss:$0 sps:$4 sm:$0x11]   ;;  %v1322_v29 = vld [vmem:[#allocation2 + $0xc0] sm:$0xf] }
 0x13c   : > { %1310 = vst [vmem:[#allocation2 + $0xa8] sm:$0xf] %v1309_v33  ;;  %v1302_v15 = vsel %vm6645_vm8, %v1101_v30, %v1301_v36  ;;  %v1127_v38 = vsel %vm6652_vm9, %v1119_v28, %v1126_v56  ;;  %v1313_v3 = vsel %vm6658_vm10, %v1128_v32, %v1312_v42  ;;  %2684 = vmatprep.mubr.bf16.mxu1 %v2162_v50  ;;  %v2393_v43 = vrot.slane %v6994_v25, 1  ;;  %v1919_v9 = vld [vmem:[#allocation2 + $0x54] sm:$0xf] }
 0x13d   : > { %1303 = vst [vmem:[#allocation2 + $0x9c] sm:$0xf] %v1302_v15  ;;  %1311 = vst [vmem:[#allocation2 + $0xac] sm:$0xf] %v1127_v38  ;;  %v1110_v4 = vsel %vm6652_vm9, %v1102_v31, %v1109_v34  ;;  %v1306_v48 = vsel %vm6658_vm10, %v1111_v37, %v1305_v17  ;;  %v5148_v0 = vcombine.low %v1962_v10, %v6998_v8  ;;  %2685 = vmatmul.mubr.bf16.gmra.mrb[12].mxu1 %v6918_v23  ;;  %v7042_v17 = vld [vmem:[#allocation2 + $0x7c] sm:$0xf] }
 0x13e   : > { %1314 = vst [vmem:[#allocation2 + $0xb0] sm:$0x1] %v1313_v3  ;;  %1304 = vst [vmem:[#allocation2 + $0xa0] sm:$0xf] %v1110_v4  ;;  %v2391_v35 = vsel %vm1794_vm11, %v2389_v1, %v2390_v40  ;;  %v754_v44 = vadd.f32 %v6440_v24, %v6851_v39  ;;  %v746_v52 = vadd.f32 %v6440_v24, %v6858_v46  ;;  %6034 = vmatpush3.bf16.msra.mxu1 %v6958_v47  ;;  %v1964_v28 = vld [vmem:[#allocation2 + $0x78] sm:$0xe] }
 0x13f   : > { %1307 = vst [vmem:[#allocation2 + $0xa4] sm:$0x1] %v1306_v48  ;;  %v7028_v22 = vcombine.low %v1917_v49, %v6930_v45  ;;  %5903 = vmatprep.mubr.bf16.mxu0 %v2391_v35  ;;  %v2392_v23 = vrot.slane %v5148_v0, 1  ;;  %v757_v51 = vadd.f32 %v6440_v24, %v6862_v54  ;;  %v749_v20 = vadd.f32 %v6440_v24, %v6872_v61  ;;  %v1315_v40 = vld [vmem:[#allocation2 + $0xb4] sm:$0xf] }
 0x140   : > { %5703 = vmatprep.subr.bf16.mxu1 %v6339_v58  ;;  %v790_v57 = vmax.f32 %v754_v44, 0.0  ;;  %v788_v60 = vmax.f32 %v746_v52, 0.0  ;;  %v2166_v39 = vshll.u32 %v6983_v62, 16  ;;  %v2171_v46 = vshll.u32 %v6904_v6, 16  ;;  %v1326_v37 = vld [vmem:[#allocation2 + $0xc8] sm:$0x1] }
 0x141   : > { %v2394_v45 = vsel %vm1794_vm11, %v2392_v23, %v2393_v43  ;;  %v791_v47 = vmax.f32 %v757_v51, 0.0  ;;  %v789_v16 = vmax.f32 %v749_v20, 0.0  ;;  %v2164_v36 = vshrl.u32 %v6983_v62, 16  ;;  %v1319_v50 = vld [vmem:[#allocation2 + $0xbc] sm:$0x1] }
 0x142   : > { %5904 = vmatmul.mubr.bf16.gmra.mrb[44].mxu0 %v2394_v45  ;;  %v5411_v54 = vpack.c.bf16 %v790_v57, %v790_v57  ;;  %v5409_v61 = vpack.c.bf16 %v788_v60, %v788_v60  ;;  %v2168_v42 = vrot.slane %v2166_v39, 1  ;;  %v2173_v7 = vrot.slane %v2171_v46, 1  ;;  %v7047_v1 = vld [vmem:[#allocation2 + $0x80] ss:$0 sps:$4 sm:$0x11]  }
 0x143   : > { %v5412_v12 = vpack.c.bf16 %v791_v47, %v791_v47  ;;  %v5410_v13 = vpack.c.bf16 %v789_v16, %v789_v16  ;;  %v5149_v18 = vcombine.low %v1963_v53, %v7036_v63  ;;  %v2396_v6 = vrot.slane %v7032_v14, 1  ;;  %v7050_v24 = vld [vmem:[#allocation2 + $0x8c] ss:$0 sps:$4 sm:$0x11]   ;;  %v1921_v44 = vld [vmem:[#allocation2 + $0x60] sm:$0xf] }
 0x144   : > { %v1147_v55 = vshrl.u32 %v5411_v54, 16  ;;  %v1150_v19 = vshll.u32 %v5411_v54, 16  ;;  %v1130_v10 = vshrl.u32 %v5409_v61, 16  ;;  %v1133_v26 = vshll.u32 %v5409_v61, 16  ;;  %v1965_v20 = vld [vmem:[#allocation2 + $0x84] sm:$0xe] }
 0x145   : > { %v1155_v30 = vshrl.u32 %v5412_v12, 16  ;;  %v1158_v31 = vshll.u32 %v5412_v12, 16  ;;  %v1138_v56 = vshrl.u32 %v5410_v13, 16  ;;  %v1141_v32 = vshll.u32 %v5410_v13, 16  ;;  %v7058_v46 = vld [vmem:[#allocation2 + $0x88] sm:$0xf] }
 0x146   : > { %v1149_v33 = vrot.slane %v1147_v55, 7  ;;  %v1132_v34 = vrot.slane %v1130_v10, 7  ;;  %v2169_v58 = vor.u32 %v2168_v42, %v2164_v36  ;;  %v2395_v49 = vrot.slane %v5149_v18, 1  ;;  %v7060_v45 = vld [vmem:[#allocation2 + $0x94] sm:$0xf] }
 0x147   : > { %v7045_v15 = vcombine.low %v1919_v9, %v6986_v5  ;;  %v1157_v38 = vrot.slane %v1155_v30, 7  ;;  %v1140_v3 = vrot.slane %v1138_v56, 7  ;;  %v5150_v4 = vcombine.low %v1964_v28, %v7042_v17  ;;  %v1966_v47 = vld [vmem:[#allocation2 + $0x90] sm:$0xe]  ;;  %v7081_v55 = vld [vmem:[#allocation2 + $0x4] sm:$0xf] }
 0x148   : > { %v1152_v48 = vor.u32 %v1150_v19, %v1149_v33  ;;  %v1153_v0 = vrot.slane %v1149_v33, 4  ;;  %v1135_v35 = vor.u32 %v1133_v26, %v1132_v34  ;;  %v1136_v43 = vrot.slane %v1132_v34, 4  ;;  %v7070_v61 = vld [vmem:[#allocation2 + $0x98] ss:$0 sps:$4 sm:$0x11]  }
 0x149   : > { %v1160_v52 = vor.u32 %v1158_v31, %v1157_v38  ;;  %v1162_v53 = vrot.slane %v1157_v38, 4  ;;  %v1143_v23 = vor.u32 %v1141_v32, %v1140_v3  ;;  %v1145_v51 = vrot.slane %v1140_v3, 4  ;;  %v7079_v18 = vld [vmem:[#allocation2 + $0xa4] ss:$0 sps:$4 sm:$0x11]  }
 0x14a   : > { %v1323_v5 = vsel %vm6645_vm8, %v1152_v48, %v1322_v29  ;;  %v1316_v57 = vsel %vm6645_vm8, %v1135_v35, %v1315_v40  ;;  %v2174_v60 = vsel %vm1537_vm12, %v2169_v58, %v2173_v7  ;;  %v2397_v39 = vsel %vm1794_vm11, %v2395_v49, %v2396_v6  ;;  %v1329_v6 = vld [vmem:[#allocation2] sm:$0xf]  ;;  %v1923_v10 = vld [vmem:[#allocation2 + $0x6c] sm:$0xf]  ;;  %v1968_v40 = vld [vmem:[#allocation2 + $0xa8] sm:$0xe] }
 0x14b   : > { %1324 = vst [vmem:[#allocation2 + $0xc0] sm:$0xf] %v1323_v5  ;;  %1317 = vst [vmem:[#allocation2 + $0xb4] sm:$0xf] %v1316_v57  ;;  %v1161_v16 = vsel %vm6652_vm9, %v1153_v0, %v1160_v52  ;;  %v1327_v36 = vsel %vm6658_vm10, %v1162_v53, %v1326_v37  ;;  %v1144_v11 = vsel %vm6652_vm9, %v1136_v43, %v1143_v23  ;;  %2692 = vmatprep.mubr.bf16.mxu1 %v2174_v60  ;;  %v7088_v29 = vld [vmem:[#allocation2 + $0xa0] sm:$0xf] }
 0x14c   : > { %v1320_v54 = vsel %vm6658_vm10, %v1145_v51, %v1319_v50  ;;  %1325 = vst [vmem:[#allocation2 + $0xc4] sm:$0xf] %v1161_v16  ;;  %1328 = vst [vmem:[#allocation2 + $0xc8] sm:$0x1] %v1327_v36  ;;  %5907 = vmatprep.mubr.bf16.mxu0 %v2397_v39  ;;  %v2398_v42 = vrot.slane %v5150_v4, 1  ;;  %v2399_v7 = vrot.slane %v7047_v1, 1  ;;  %2693 = vmatmul.mubr.bf16.gmra.mrb[16].mxu1 %v6983_v62 }
 0x14d   : > { %1318 = vst [vmem:[#allocation2 + $0xb8] sm:$0xf] %v1144_v11  ;;  %1321 = vst [vmem:[#allocation2 + $0xbc] sm:$0x1] %v1320_v54  ;;  %v2176_v9 = vshrl.u32 %v7028_v22, 16  ;;  %v2178_v21 = vshll.u32 %v7028_v22, 16  ;;  %v5151_v12 = vcombine.low %v1965_v20, %v7058_v46  ;;  %v7084_v19 = vcombine.low %v1921_v44, %v6998_v8 }
 0x14e   : > { %v2183_v27 = vshll.u32 %v6920_v2, 16  ;;  %v2402_v13 = vrot.slane %v7050_v24, 1  ;;  %v2400_v62 = vsel %vm1794_vm11, %v2398_v42, %v2399_v7  ;;  %v5152_v28 = vcombine.low %v1966_v47, %v7060_v45  ;;  %v1967_v2 = vld [vmem:[#allocation2 + $0x9c] sm:$0xe]  ;;  %v7094_v50 = vld [vmem:[#allocation2 + $0xac] sm:$0xf] }
 0x14f   : > { %v2180_v26 = vrot.slane %v2178_v21, 1  ;;  %5908 = vmatmul.mubr.bf16.gmra.mrb[48].mxu0 %v2400_v62  ;;  %v2401_v31 = vrot.slane %v5151_v12, 1  ;;  %v2405_v56 = vrot.slane %v7070_v61, 1  ;;  %v2188_v32 = vshrl.u32 %v7045_v15, 16  ;;  %v1925_v36 = vld [vmem:[#allocation2 + $0x78] sm:$0xf] }
 0x150   : > { %v2185_v30 = vrot.slane %v2183_v27, 1  ;;  %v2404_v8 = vrot.slane %v5152_v28, 1  ;;  %v2190_v34 = vshll.u32 %v7045_v15, 16  ;;  %v2195_v37 = vshll.u32 %v6989_v59, 16 }
 0x151   : > { %v2181_v33 = vor.u32 %v2180_v26, %v2176_v9  ;;  %v2403_v58 = vsel %vm1794_vm11, %v2401_v31, %v2402_v13  ;;  %v5153_v49 = vcombine.low %v1967_v2, %v7088_v29  ;;  %v2408_v38 = vrot.slane %v7079_v18, 1  ;;  %v7099_v3 = vld [vmem:[#allocation2 + $0xb0] ss:$0 sps:$4 sm:$0x11]  }
 0x152   : > { %5911 = vmatprep.mubr.bf16.mxu0 %v2403_v58  ;;  %v2192_v48 = vrot.slane %v2190_v34, 1  ;;  %v2197_v0 = vrot.slane %v2195_v37, 1  ;;  %v1969_v35 = vld [vmem:[#allocation2 + $0xb4] sm:$0xe]  ;;  %v7103_v43 = vcombine.low %v1329_v6, %v7081_v55  ;;  %v7106_v59 = vcombine.low %v1923_v10, %v7036_v63  ;;  %v1970_v13 = vld [vmem:[#allocation2 + $0xc0] sm:$0xe] }
 0x153   : > { %v2186_v4 = vsel %vm1537_vm12, %v2181_v33, %v2185_v30  ;;  %v2406_v44 = vsel %vm1794_vm11, %v2404_v8, %v2405_v56  ;;  %v2407_v52 = vrot.slane %v5153_v49, 1  ;;  %v5154_v53 = vcombine.low %v1968_v40, %v7094_v50  ;;  %v7122_v11 = vld [vmem:[#allocation2 + $0x8] ss:$0 sps:$4 sm:$0x11]   ;;  %v7125_v9 = vld [vmem:[#allocation2 + $0xc4] sm:$0xf] }
 0x154   : > { %2700 = vmatprep.mubr.bf16.mxu1 %v2186_v4  ;;  %v7110_v23 = vld [vmem:[#allocation2 + $0xb8] sm:$0xf]  ;;  %v2193_v51 = vor.u32 %v2192_v48, %v2188_v32  ;;  %v2200_v20 = vshrl.u32 %v7084_v19, 16  ;;  %v2202_v5 = vshll.u32 %v7084_v19, 16  ;;  %v2207_v57 = vshll.u32 %v6994_v25, 16 }
 0x155   : > { %2701 = vmatmul.mubr.bf16.gmra.mrb[20].mxu1 %v7028_v22  ;;  %v2409_v63 = vsel %vm1794_vm11, %v2407_v52, %v2408_v38  ;;  %v7117_v60 = vld [vmem:[#allocation2 + $0xbc] ss:$0 sps:$4 sm:$0x11]   ;;  %v5155_v39 = vcombine.low %v1969_v35, %v7110_v23  ;;  %v2411_v22 = vrot.slane %v7099_v3, 1  ;;  %v1541_v54 = vshll.u32 %v7103_v43, 16 }
 0x156   : > { %v2198_v47 = vsel %vm1537_vm12, %v2193_v51, %v2197_v0  ;;  %v2204_v16 = vrot.slane %v2202_v5, 1  ;;  %v2410_v25 = vrot.slane %v5154_v53, 1  ;;  %v2209_v7 = vrot.slane %v2207_v57, 1  ;;  %v7137_v40 = vld [vmem:[#allocation2 + $0xc8] ss:$0 sps:$4 sm:$0x11]  }
 0x157   : > { %5912 = vmatmul.mubr.bf16.gmra.mrb[52].mxu0 %v2406_v44  ;;  %2708 = vmatprep.mubr.bf16.mxu1 %v2198_v47  ;;  %v2214_v21 = vshll.u32 %v7106_v59, 16  ;;  %v2413_v27 = vrot.slane %v5155_v39, 1  ;;  %v2414_v12 = vrot.slane %v7117_v60, 1  ;;  %v2212_v6 = vshrl.u32 %v7106_v59, 16  ;;  %v7140_v31 = vld [vmem:[#allocation2 + $0x10] sm:$0xf] }
 0x158   : > { %5915 = vmatprep.mubr.bf16.mxu0 %v2409_v63  ;;  %v2205_v42 = vor.u32 %v2204_v16, %v2200_v20  ;;  %v2219_v62 = vshll.u32 %v7032_v14, 16  ;;  %v7132_v26 = vcombine.low %v1925_v36, %v7042_v17  ;;  %v2412_v28 = vsel %vm1794_vm11, %v2410_v25, %v2411_v22  ;;  %v1331_v34 = vld [vmem:[#allocation2 + $0xc] sm:$0xf]  ;;  %v1927_v37 = vld [vmem:[#allocation2 + $0x84] sm:$0xf] }
 0x159   : > { %v2216_v10 = vrot.slane %v2214_v21, 1  ;;  %v5156_v30 = vcombine.low %v1970_v13, %v7125_v9  ;;  %v2415_v56 = vsel %vm1794_vm11, %v2413_v27, %v2414_v12  ;;  %v1539_v14 = vshrl.u32 %v7103_v43, 16  ;;  %v7159_v5 = vld [vmem:[#allocation2 + $0x1c] sm:$0xf]  ;;  %v1929_v16 = vld [vmem:[#allocation2 + $0x90] sm:$0xf] }
 0x15a   : > { %v2210_v2 = vsel %vm1537_vm12, %v2205_v42, %v2209_v7  ;;  %v1543_v32 = vrot.slane %v1541_v54, 1  ;;  %v1546_v17 = vshll.u32 %v7122_v11, 16  ;;  %v2221_v8 = vrot.slane %v2219_v62, 1  ;;  %v7162_v63 = vld [vmem:[#allocation2 + $0x14] ss:$0 sps:$4 sm:$0x11]  }
 0x15b   : > { %v2217_v33 = vor.u32 %v2216_v10, %v2212_v6  ;;  %v2416_v58 = vrot.slane %v5156_v30, 1  ;;  %v2417_v49 = vrot.slane %v7137_v40, 1  ;;  %v2226_v38 = vshll.u32 %v7132_v26, 16  ;;  %v1335_v21 = vld [vmem:[#allocation2 + $0x24] sm:$0xf] }
 0x15c   : > { %v1544_v4 = vor.u32 %v1543_v32, %v1539_v14  ;;  %v1548_v48 = vrot.slane %v1546_v17, 1  ;;  %v7152_v35 = vcombine.low %v1927_v37, %v7058_v46  ;;  %v2224_v53 = vshrl.u32 %v7132_v26, 16  ;;  %v1333_v46 = vld [vmem:[#allocation2 + $0x18] sm:$0xf]  ;;  %v7174_v27 = vld [vmem:[#allocation2 + $0x28] sm:$0xf] }
 0x15d   : > { %2709 = vmatmul.mubr.bf16.gmra.mrb[24].mxu1 %v7045_v15  ;;  %v7146_v15 = vcombine.low %v1331_v34, %v7140_v31  ;;  %v2222_v0 = vsel %vm1537_vm12, %v2217_v33, %v2221_v8  ;;  %v2418_v52 = vsel %vm1794_vm11, %v2416_v58, %v2417_v49  ;;  %v2228_v51 = vrot.slane %v2226_v38, 1  ;;  %v7197_v8 = vld [vmem:[#allocation2 + $0x2c] ss:$0 sps:$4 sm:$0x11]   ;;  %v1337_v49 = vld [vmem:[#allocation2 + $0x30] sm:$0xf] }
 0x15e   : > { %2716 = vmatprep.mubr.bf16.mxu1 %v2210_v2  ;;  %v2231_v20 = vshll.u32 %v7047_v1, 16  ;;  %v1549_v57 = vsel %vm1537_vm12, %v1544_v4, %v1548_v48  ;;  %v7165_v47 = vcombine.low %v1333_v46, %v7159_v5  ;;  %v2238_v22 = vshll.u32 %v7152_v35, 16  ;;  %v7203_v38 = vld [vmem:[#allocation2 + $0x34] sm:$0xf] }
 0x15f   : > { %5916 = vmatmul.mubr.bf16.gmra.mrb[56].mxu0 %v2412_v28  ;;  %v1553_v44 = vshll.u32 %v7146_v15, 16  ;;  %v1551_v1 = vshrl.u32 %v7146_v15, 16  ;;  %v1558_v54 = vshll.u32 %v7162_v63, 16  ;;  %v7171_v25 = vcombine.low %v1929_v16, %v7060_v45  ;;  %v7180_v28 = vld [vmem:[#allocation2 + $0x20] ss:$0 sps:$4 sm:$0x11]  }
 0x160   : > { %5919 = vmatprep.mubr.bf16.mxu0 %v2415_v56  ;;  %v2233_v36 = vrot.slane %v2231_v20, 1  ;;  %v1565_v7 = vshll.u32 %v7165_v47, 16  ;;  %v2236_v13 = vshrl.u32 %v7152_v35, 16  ;;  %v2240_v6 = vrot.slane %v2238_v22, 1  ;;  %v6327_v45 = vld [vmem:[%s8303_s6 + $0x88] sm:$0xff]  }
 0x161   : > { %v1555_v39 = vrot.slane %v1553_v44, 1  ;;  %v2243_v10 = vshll.u32 %v7050_v24, 16  ;;  %v1560_v62 = vrot.slane %v1558_v54, 1  ;;  %v7186_v2 = vcombine.low %v1335_v21, %v7174_v27  ;;  %v1931_v56 = vld [vmem:[#allocation2 + $0x9c] sm:$0xf] }
 0x162   : > { %v1567_v30 = vrot.slane %v1565_v7, 1  ;;  %v2241_v14 = vor.u32 %v2240_v6, %v2236_v13  ;;  %v2250_v32 = vshll.u32 %v7171_v25, 16  ;;  %v1563_v17 = vshrl.u32 %v7165_v47, 16  ;;  %v7220_v16 = vld [vmem:[#allocation2 + $0x38] ss:$0 sps:$4 sm:$0x11]  }
 0x163   : > { %v1556_v42 = vor.u32 %v1555_v39, %v1551_v1  ;;  %v2245_v24 = vrot.slane %v2243_v10, 1  ;;  %v1570_v33 = vshll.u32 %v7180_v28, 16  ;;  %v1577_v34 = vshll.u32 %v7186_v2, 16  ;;  %v1933_v39 = vld [vmem:[#allocation2 + $0xa8] sm:$0xf] }
 0x164   : > { %v7201_v37 = vcombine.low %v1931_v56, %v7088_v29  ;;  %v1568_v58 = vor.u32 %v1567_v30, %v1563_v17  ;;  %v2248_v4 = vshrl.u32 %v7171_v25, 16  ;;  %v2252_v48 = vrot.slane %v2250_v32, 1  ;;  %v6333_v29 = vld [vmem:[%s8303_s6 + $0x98] sm:$0xff]   ;;  %v7228_v21 = vld [vmem:[#allocation2 + $0x40] sm:$0xf]  ;;  %v6340_v10 = vld [vmem:[%s8303_s6 + $0xa8] sm:$0xff]  }
 0x165   : > { %2717 = vmatmul.mubr.bf16.gmra.mrb[28].mxu1 %v7084_v19  ;;  %v2229_v19 = vor.u32 %v2228_v51, %v2224_v53  ;;  %v1572_v44 = vrot.slane %v1570_v33, 1  ;;  %v1579_v53 = vrot.slane %v1577_v34, 1  ;;  %v7215_v51 = vcombine.low %v1337_v49, %v7203_v38  ;;  %v1339_v1 = vld [vmem:[#allocation2 + $0x3c] sm:$0xf]  ;;  %v1379_v32 = vld [vmem:[#allocation2 + $0x18] sm:$0xe] }
 0x166   : > { %2724 = vmatprep.mubr.bf16.mxu1 %v2222_v0  ;;  %v2255_v0 = vshll.u32 %v7070_v61, 16  ;;  %v2262_v20 = vshll.u32 %v7201_v37, 16  ;;  %v2260_v54 = vshrl.u32 %v7201_v37, 16  ;;  %v2267_v7 = vshll.u32 %v7079_v18, 16  ;;  %v1935_v18 = vld [vmem:[#allocation2 + $0xb4] sm:$0xf] }
 0x167   : > { %5920 = vmatmul.mubr.bf16.gmra.mrb[60].mxu0 %v2418_v52  ;;  %v2234_v12 = vsel %vm1537_vm12, %v2229_v19, %v2233_v36  ;;  %v1575_v52 = vshrl.u32 %v7186_v2, 16  ;;  %v1573_v61 = vsel %vm1537_vm12, %v1568_v58, %v1572_v44  ;;  %v6336_v19 = vld [vmem:[%s8303_s6 + $0xa0] sm:$0xff]   ;;  %v1594_v6 = vshll.u32 %v7220_v16, 16 }
 0x168   : > { %3126 = vmatprep.mubr.bf16.mxu0 %v1549_v57  ;;  %v2253_v57 = vor.u32 %v2252_v48, %v2248_v4  ;;  %v2257_v46 = vrot.slane %v2255_v0, 1  ;;  %v2269_v56 = vrot.slane %v2267_v7, 1  ;;  %v1380_v17 = vld [vmem:[#allocation2 + $0x24] sm:$0xe]  ;;  %v5095_v34 = vcombine.low %v1379_v32, %v7159_v5  ;;  %v1381_v4 = vld [vmem:[#allocation2 + $0x30] sm:$0xe] }
 0x169   : > { %v1580_v36 = vor.u32 %v1579_v53, %v1575_v52  ;;  %v6323_v33 = vld [vmem:[#allocation2 + $0x44] ss:$0 sps:$4 sm:$0x11]   ;;  %v1802_v58 = vrot.slane %v7180_v28, 1  ;;  %v7251_v49 = vcombine.low %v1935_v18, %v7110_v23  ;;  %v5096_v44 = vcombine.low %v1380_v17, %v7174_v27  ;;  %v1382_v53 = vld [vmem:[#allocation2 + $0x3c] sm:$0xe] }
 0x16a   : > { %v2258_v13 = vsel %vm1537_vm12, %v2253_v57, %v2257_v46  ;;  %v1801_v0 = vrot.slane %v5095_v34, 1  ;;  %v1805_v5 = vrot.slane %v7197_v8, 1  ;;  %v5097_v57 = vcombine.low %v1381_v4, %v7203_v38  ;;  %v1937_v7 = vld [vmem:[#allocation2 + $0xc0] sm:$0xf] }
 0x16b   : > { %v1606_v46 = vshll.u32 %v6323_v33, 16  ;;  %v7301_v18 = vcombine.low %v1937_v7, %v7125_v9  ;;  %v2291_v17 = vshll.u32 %v7117_v60, 16 }
 0x16c   : > { %v7269_v27 = vsel %vm1794_vm11, %v1801_v0, %v1802_v58 }
 0x16d   : > { %2725 = vmatmul.mubr.bf16.gmra.mrb[32].mxu1 %v7106_v59  ;;  %v1561_v59 = vsel %vm1537_vm12, %v1556_v42, %v1560_v62  ;;  %v2264_v42 = vrot.slane %v2262_v20, 1  ;;  %v1378_v62 = vld [vmem:[#allocation2 + $0xc] sm:$0xe]  ;;  %v2298_v60 = vshll.u32 %v7301_v18, 16  ;;  %v2296_v0 = vshrl.u32 %v7301_v18, 16 }
 0x16e   : > { %2732 = vmatprep.mubr.bf16.mxu1 %v2234_v12  ;;  %v7231_v12 = vcombine.low %v1933_v39, %v7094_v50  ;;  %v1587_v50 = vshrl.u32 %v7215_v51, 16  ;;  %v7266_v20 = vld [vmem:[#allocation2 + $0x4c] sm:$0xf]  ;;  %v1808_v39 = vrot.slane %v7220_v16, 1  ;;  %v2286_v16 = vshll.u32 %v7251_v49, 16 }
 0x16f   : > { %3127 = vmatmul.mubr.bf16.vlgmr.msra.gmra.mrb[64].mxu0 %v7103_v43  ;;  %v6330_v43 = vld [vmem:[%s8303_s6 + $0x90] sm:$0xff]   ;;  %v2265_v30 = vor.u32 %v2264_v42, %v2260_v54 }
 0x170   : > { %3134 = vmatprep.mubr.bf16.mxu0 %v1561_v59  ;;  %5924 = vmatpush3.bf16.msra.mxu0 %v6968_v41  ;;  %v2246_v41 = vsel %vm1537_vm12, %v2241_v14, %v2245_v24  ;;  %v5094_v14 = vcombine.low %v1378_v62, %v7140_v31  ;;  %v1799_v24 = vrot.slane %v7162_v63, 1  ;;  %v6344_v31 = vld [vmem:[%s8303_s6 + $0xb0] sm:$0xff]   ;;  %v2288_v32 = vrot.slane %v2286_v16, 1  ;;  %v1347_v16 = vld [vmem:[#allocation2 + $0x6c] sm:$0xf] }
 0x171   : > { %5925 = vmatprep.subr.bf16.mxu0 %v6327_v45  ;;  %v2270_v28 = vsel %vm1537_vm12, %v2265_v30, %v2269_v56  ;;  %v1343_v30 = vld [vmem:[#allocation2 + $0x54] sm:$0xf]  ;;  %v7304_v56 = vld [vmem:[#allocation2 + $0x58] sm:$0xf] }
 0x172   : > { %v1798_v63 = vrot.slane %v5094_v14, 1  ;;  %v7316_v34 = vcombine.low %v1343_v30, %v7304_v56 }
 0x174   : > { %5926 = vmatpush3.bf16.msra.mxu0 %v6327_v45  ;;  %v7263_v52 = vsel %vm1794_vm11, %v1798_v63, %v1799_v24  ;;  %v2284_v24 = vshrl.u32 %v7251_v49, 16  ;;  %v7321_v63 = vld [vmem:[#allocation2 + $0x5c] ss:$0 sps:$4 sm:$0x11]  }
 0x175   : > { %2733 = vmatmul.mubr.bf16.gmra.mrb[36].mxu1 %v7132_v26  ;;  %5927 = vmatprep.subr.bf16.mxu0 %v6330_v43  ;;  %v1582_v26 = vshll.u32 %v7197_v8, 16  ;;  %v1804_v8 = vrot.slane %v5096_v44, 1 }
 0x176   : > { %2740 = vmatprep.mubr.bf16.mxu1 %v2246_v41  ;;  %v2272_v41 = vshrl.u32 %v7231_v12, 16  ;;  %v2289_v58 = vor.u32 %v2288_v32, %v2284_v24 }
 0x177   : > { %3135 = vmatmul.mubr.bf16.gmra.mrb[68].mxu0 %v7146_v15  ;;  %v1584_v22 = vrot.slane %v1582_v26, 1  ;;  %v1589_v15 = vshll.u32 %v7215_v51, 16 }
 0x178   : > { %3142 = vmatprep.mubr.bf16.mxu0 %v1573_v61  ;;  %5928 = vmatpush3.bf16.msra.mxu0 %v6330_v43  ;;  %v2274_v43 = vshll.u32 %v7231_v12, 16  ;;  %v1341_v61 = vld [vmem:[#allocation2 + $0x48] sm:$0xf] }
 0x179   : > { %5929 = vmatprep.subr.bf16.mxu0 %v6333_v29  ;;  %v1585_v45 = vsel %vm1537_vm12, %v1580_v36, %v1584_v22  ;;  %v1591_v59 = vrot.slane %v1589_v15, 1  ;;  %v1807_v36 = vrot.slane %v5097_v57, 1  ;;  %v5098_v22 = vcombine.low %v1382_v53, %v7228_v21 }
 0x17a   : > { %v2276_v26 = vrot.slane %v2274_v43, 1  ;;  %v1811_v15 = vrot.slane %v6323_v33, 1  ;;  %v7284_v42 = vcombine.low %v1341_v61, %v7266_v20 }
 0x17b   : > { %v1592_v48 = vor.u32 %v1591_v59, %v1587_v50  ;;  %v1608_v50 = vrot.slane %v1606_v46, 1  ;;  %v7340_v46 = vld [vmem:[#allocation2 + $0x80] ss:$0 sps:$4 sm:$0x11]  }
 0x17c   : > { %5930 = vmatpush3.bf16.msra.mxu0 %v6333_v29  ;;  %v2279_v29 = vshll.u32 %v7099_v3, 16  ;;  %v1613_v59 = vshll.u32 %v7284_v42, 16  ;;  %v1611_v43 = vshrl.u32 %v7284_v42, 16 }
 0x17d   : > { %2741 = vmatmul.mubr.bf16.gmra.mrb[40].mxu1 %v7152_v35  ;;  %5931 = vmatprep.subr.bf16.mxu0 %v6336_v19  ;;  %v7242_v35 = vcombine.low %v1339_v1, %v7228_v21  ;;  %v1810_v21 = vrot.slane %v5098_v22, 1  ;;  %v7345_v22 = vld [vmem:[#allocation2 + $0x68] ss:$0 sps:$4 sm:$0x11]  }
 0x17e   : > { %2748 = vmatprep.mubr.bf16.mxu1 %v2258_v13  ;;  %v2281_v54 = vrot.slane %v2279_v29, 1  ;;  %v2277_v13 = vor.u32 %v2276_v26, %v2272_v41  ;;  %v1349_v41 = vld [vmem:[#allocation2 + $0x78] sm:$0xf]  ;;  %v7328_v29 = vld [vmem:[#allocation2 + $0x64] sm:$0xf]  ;;  %v1630_v26 = vshll.u32 %v7321_v63, 16 }
 0x17f   : > { %3143 = vmatmul.mubr.bf16.gmra.mrb[72].mxu0 %v7165_v47  ;;  %v1596_v47 = vrot.slane %v1594_v6, 1  ;;  %v1601_v23 = vshll.u32 %v7242_v35, 16  ;;  %v1599_v3 = vshrl.u32 %v7242_v35, 16  ;;  %v7288_v6 = vsel %vm1794_vm11, %v1807_v36, %v1808_v39  ;;  %v1351_v39 = vld [vmem:[#allocation2 + $0x84] sm:$0xf] }
 0x180   : > { %3150 = vmatprep.mubr.bf16.mxu0 %v1585_v45  ;;  %5932 = vmatpush3.bf16.msra.mxu0 %v6336_v19  ;;  %v7278_v19 = vsel %vm1794_vm11, %v1804_v8, %v1805_v5  ;;  %v7298_v62 = vsel %vm1794_vm11, %v1810_v21, %v1811_v15  ;;  %v2282_v14 = vsel %vm1537_vm12, %v2277_v13, %v2281_v54  ;;  %v2300_v5 = vrot.slane %v2298_v60, 1  ;;  %v7343_v36 = vld [vmem:[#allocation2 + $0x88] sm:$0xf]  ;;  %v7352_v21 = vld [vmem:[#allocation2 + $0x70] sm:$0xf] }
 0x181   : > { %5933 = vmatprep.subr.bf16.mxu0 %v6340_v10  ;;  %v1597_v38 = vsel %vm1537_vm12, %v1592_v48, %v1596_v47  ;;  %v1603_v1 = vrot.slane %v1601_v23, 1  ;;  %v2293_v47 = vrot.slane %v2291_v17, 1  ;;  %v1625_v48 = vshll.u32 %v7316_v34, 16  ;;  %v1345_v23 = vld [vmem:[#allocation2 + $0x60] sm:$0xf] }
 0x182   : > { %v7338_v57 = vcombine.low %v1345_v23, %v7328_v29  ;;  %v1632_v15 = vrot.slane %v1630_v26, 1  ;;  %v1666_v13 = vshll.u32 %v7340_v46, 16  ;;  %v7364_v17 = vld [vmem:[#allocation2 + $0x8c] ss:$0 sps:$4 sm:$0x11]  }
 0x183   : > { %v1604_v45 = vor.u32 %v1603_v1, %v1599_v3  ;;  %v2294_v44 = vsel %vm1537_vm12, %v2289_v58, %v2293_v47  ;;  %v1627_v8 = vrot.slane %v1625_v48, 1  ;;  %v7369_v58 = vld [vmem:[#allocation2 + $0x74] ss:$0 sps:$4 sm:$0x11]  }
 0x184   : > { %5934 = vmatpush3.bf16.msra.mxu0 %v6340_v10  ;;  %v7295_v10 = vld [vmem:[#allocation2 + $0x50] ss:$0 sps:$4 sm:$0x11]   ;;  %v1668_v32 = vrot.slane %v1666_v13, 1 }
 0x185   : > { %2749 = vmatmul.mubr.bf16.gmra.mrb[44].mxu1 %v7171_v25  ;;  %5935 = vmatprep.subr.bf16.mxu0 %v6344_v31  ;;  %v6347_v25 = vld [vmem:[%s8303_s6 + $0xb8] sm:$0xff]   ;;  %v1618_v9 = vshll.u32 %v7295_v10, 16  ;;  %v1609_v33 = vsel %vm1537_vm12, %v1604_v45, %v1608_v50  ;;  %v7355_v45 = vcombine.low %v1351_v39, %v7343_v36  ;;  %v1642_v50 = vshll.u32 %v7345_v22, 16 }
 0x186   : > { %2756 = vmatprep.mubr.bf16.mxu1 %v2270_v28  ;;  %v2303_v28 = vshll.u32 %v7137_v40, 16  ;;  %v2301_v40 = vor.u32 %v2300_v5, %v2296_v0  ;;  %v7383_v23 = vld [vmem:[#allocation2 + $0x98] ss:$0 sps:$4 sm:$0x11]  }
 0x187   : > { %3151 = vmatmul.mubr.bf16.gmra.mrb[76].mxu0 %v7186_v2  ;;  %v7293_v2 = vld [vmem:[%s8303_s6 + $0x200] sm:$0xff]   ;;  %v1671_v60 = vshrl.u32 %v7355_v45, 16 }
 0x188   : > { %3158 = vmatprep.mubr.bf16.mxu0 %v1597_v38  ;;  %5936 = vmatpush3.bf16.msra.mxu0 %v6344_v31  ;;  %v7319_v31 = vld [vmem:[#allocation2 + $0x7c] sm:$0xf]  ;;  %v2305_v3 = vrot.slane %v2303_v28, 1  ;;  %v1637_v38 = vshll.u32 %v7338_v57, 16  ;;  %v1654_v28 = vshll.u32 %v7369_v58, 16 }
 0x189   : > { %5937 = vmatprep.subr.bf16.mxu0 %v6347_v25  ;;  %v7331_v53 = vcombine.low %v1349_v41, %v7319_v31 }
 0x18a   : > { %v2306_v54 = vsel %vm1537_vm12, %v2301_v40, %v2305_v3  ;;  %v1639_v30 = vrot.slane %v1637_v38, 1  ;;  %v6345_v40 = vld [vmem:[%s8303_s6 + $0x1c8] sm:$0xff]   ;;  %v1377_v3 = vld [vmem:[#allocation2] sm:$0xe]  ;;  %v1656_v39 = vrot.slane %v1654_v28, 1 }
 0x18b   : > { %v1659_v1 = vshrl.u32 %v7331_v53, 16  ;;  %v5093_v13 = vcombine.low %v1377_v3, %v7081_v55  ;;  %v6362_v28 = vld [vmem:[%s8303_s6 + $0x1a0] sm:$0xff]  }
 0x18c   : > { %5938 = vmatpush3.bf16.msra.mxu0 %v6347_v25  ;;  %v1661_v25 = vshll.u32 %v7331_v53, 16 }
 0x18d   : > { %2757 = vmatmul.mubr.bf16.gmra.mrb[48].mxu1 %v7201_v37  ;;  %5971 = vmatprep.subr.bf16.mxu0 %v7293_v2  ;;  %v1615_v37 = vrot.slane %v1613_v59, 1 }
 0x18e   : > { %2764 = vmatprep.mubr.bf16.mxu1 %v2282_v14  ;;  %v1663_v7 = vrot.slane %v1661_v25, 1  ;;  %v7362_v14 = vcombine.low %v1347_v16, %v7352_v21 }
 0x18f   : > { %3159 = vmatmul.mubr.bf16.gmra.mrb[80].mxu0 %v7215_v51  ;;  %v1616_v4 = vor.u32 %v1615_v37, %v1611_v43  ;;  %v1620_v51 = vrot.slane %v1618_v9, 1  ;;  %v1673_v9 = vshll.u32 %v7355_v45, 16  ;;  %v7367_v43 = vld [vmem:[#allocation2 + $0x94] sm:$0xf] }
 0x190   : > { %3166 = vmatprep.mubr.bf16.mxu0 %v1609_v33  ;;  %v1664_v24 = vor.u32 %v1663_v7, %v1659_v1  ;;  %v1353_v33 = vld [vmem:[#allocation2 + $0x90] sm:$0xf]  ;;  %v1649_v47 = vshll.u32 %v7362_v14, 16  ;;  %v6346_v7 = vld [vmem:[%s8303_s6 + $0x188] sm:$0xff]  }
 0x191   : > { %v1621_v61 = vsel %vm1537_vm12, %v1616_v4, %v1620_v51  ;;  %v1675_v4 = vrot.slane %v1673_v9, 1  ;;  %v1678_v51 = vshll.u32 %v7364_v17, 16  ;;  %v7377_v48 = vcombine.low %v1353_v33, %v7367_v43  ;;  %v1357_v9 = vld [vmem:[#allocation2 + $0xa8] sm:$0xf]  ;;  %v7417_v33 = vld [vmem:[#allocation2 + $0xac] sm:$0xf] }
 0x192   : > { %v1669_v41 = vsel %vm1537_vm12, %v1664_v24, %v1668_v32  ;;  %v1651_v5 = vrot.slane %v1649_v47, 1  ;;  %v1795_v24 = vrot.slane %v5093_v13, 1  ;;  %v1796_v32 = vrot.slane %v7122_v11, 1  ;;  %v7473_v13 = vld [vmem:[#allocation2 + $0x1c] sm:$0xf] }
 0x193   : > { %v1680_v26 = vrot.slane %v1678_v51, 1  ;;  %v1683_v38 = vshrl.u32 %v7377_v48, 16  ;;  %v7437_v51 = vld [vmem:[#allocation2 + $0xb0] ss:$0 sps:$4 sm:$0x11]  }
 0x194   : > { %v1797_v11 = vsel %vm1794_vm11, %v1795_v24, %v1796_v32  ;;  %v6378_v24 = vld [vmem:[%s8303_s6 + $0x1b8] sm:$0xff]  }
 0x195   : > { %2765 = vmatmul.mubr.bf16.gmra.mrb[52].mxu1 %v7231_v12  ;;  %v1623_v12 = vshrl.u32 %v7316_v34, 16 }
 0x196   : > { %2772 = vmatprep.mubr.bf16.mxu1 %v2294_v44  ;;  %v1647_v44 = vshrl.u32 %v7362_v14, 16 }
 0x197   : > { %3167 = vmatmul.mubr.bf16.gmra.mrb[84].mxu0 %v7242_v35  ;;  %v1628_v35 = vor.u32 %v1627_v8, %v1623_v12  ;;  %v6341_v12 = vld [vmem:[%s8303_s6 + $0x180] sm:$0xff]   ;;  %v1355_v8 = vld [vmem:[#allocation2 + $0x9c] sm:$0xf] }
 0x198   : > { %3174 = vmatprep.mubr.bf16.mxu0 %v1621_v61  ;;  %v1685_v61 = vshll.u32 %v7377_v48, 16  ;;  %v1652_v25 = vor.u32 %v1651_v5, %v1647_v44 }
 0x199   : > { %v1633_v59 = vsel %vm1537_vm12, %v1628_v35, %v1632_v15  ;;  %v1690_v35 = vshll.u32 %v7383_v23, 16 }
 0x19a   : > { %v1687_v1 = vrot.slane %v1685_v61, 1  ;;  %v1657_v16 = vsel %vm1537_vm12, %v1652_v25, %v1656_v39  ;;  %v1714_v61 = vshll.u32 %v7437_v51, 16  ;;  %v6368_v25 = vld [vmem:[%s8303_s6 + $0x1a8] sm:$0xff]  }
 0x19b   : > { %v6382_v39 = vld [vmem:[%s8303_s6 + $0x208] sm:$0xff]  }
 0x19d   : > { %2773 = vmatmul.mubr.bf16.gmra.mrb[56].mxu1 %v7251_v49  ;;  %v1635_v49 = vshrl.u32 %v7338_v57, 16 }
 0x19e   : > { %2780 = vmatprep.mubr.bf16.mxu1 %v2306_v54 }
 0x19f   : > { %3175 = vmatmul.mubr.bf16.gmra.mrb[88].mxu0 %v7284_v42  ;;  %v1640_v37 = vor.u32 %v1639_v30, %v1635_v49  ;;  %v1644_v42 = vrot.slane %v1642_v50, 1  ;;  %v7410_v50 = vld [vmem:[#allocation2 + $0xa4] ss:$0 sps:$4 sm:$0x11]   ;;  %v1692_v49 = vrot.slane %v1690_v35, 1  ;;  %v6353_v30 = vld [vmem:[%s8303_s6 + $0x190] sm:$0xff]  }
 0x1a0   : > { %3182 = vmatprep.mubr.bf16.mxu0 %v1633_v59  ;;  %v1688_v59 = vor.u32 %v1687_v1, %v1683_v38  ;;  %v7465_v35 = vld [vmem:[#allocation2 + $0xbc] ss:$0 sps:$4 sm:$0x11]   ;;  %v1716_v38 = vrot.slane %v1714_v61, 1 }
 0x1a1   : > { %v1645_v0 = vsel %vm1537_vm12, %v1640_v37, %v1644_v42  ;;  %v1702_v37 = vshll.u32 %v7410_v50, 16  ;;  %v7520_v61 = vld [vmem:[#allocation2 + $0x2c] ss:$0 sps:$4 sm:$0x11]  }
 0x1a2   : > { %v1693_v42 = vsel %vm1537_vm12, %v1688_v59, %v1692_v49  ;;  %v1383_v59 = vld [vmem:[#allocation2 + $0x48] sm:$0xe] }
 0x1a3   : > { %v1704_v44 = vrot.slane %v1702_v37, 1  ;;  %v5099_v32 = vcombine.low %v1383_v59, %v7266_v20  ;;  %v1814_v20 = vrot.slane %v7295_v10, 1 }
 0x1a5   : > { %2781 = vmatmul.mubr.bf16.gmra.mrb[60].mxu1 %v7301_v18  ;;  %v1676_v18 = vor.u32 %v1675_v4, %v1671_v60  ;;  %v6358_v4 = vld [vmem:[%s8303_s6 + $0x198] sm:$0xff]  }
 0x1a6   : > { %3206 = vmatprep.mubr.bf16.mxu1 %v1669_v41  ;;  %v7427_v41 = vcombine.low %v1357_v9, %v7417_v33 }
 0x1a7   : > { %3183 = vmatmul.mubr.bf16.gmra.mrb[92].mxu0 %v7316_v34  ;;  %v7389_v34 = vld [vmem:[#allocation2 + $0xa0] sm:$0xf]  ;;  %v1681_v15 = vsel %vm1537_vm12, %v1676_v18, %v1680_v26  ;;  %v1359_v18 = vld [vmem:[#allocation2 + $0xb4] sm:$0xf]  ;;  %v7443_v26 = vld [vmem:[#allocation2 + $0xb8] sm:$0xf] }
 0x1a8   : > { %3190 = vmatprep.mubr.bf16.mxu0 %v1645_v0  ;;  %v7399_v54 = vcombine.low %v1355_v8, %v7389_v34  ;;  %v1709_v5 = vshll.u32 %v7427_v41, 16  ;;  %v1707_v8 = vshrl.u32 %v7427_v41, 16  ;;  %v7453_v3 = vcombine.low %v1359_v18, %v7443_v26 }
 0x1aa   : > { %v1697_v55 = vshll.u32 %v7399_v54, 16  ;;  %v1695_v47 = vshrl.u32 %v7399_v54, 16  ;;  %v1721_v1 = vshll.u32 %v7453_v3, 16  ;;  %v1719_v49 = vshrl.u32 %v7453_v3, 16 }
 0x1ac   : > { %v1699_v60 = vrot.slane %v1697_v55, 1 }
 0x1ad   : > { %3207 = vmatmul.mubr.bf16.vlgmr.msra.gmra.mrb[64].mxu1 %v7331_v53  ;;  %v6351_v53 = vld [vmem:[%s8303_s6 + $0x1d0] sm:$0xff]  }
 0x1ae   : > { %5704 = vmatpush3.bf16.msra.mxu1 %v6341_v12  ;;  %3214 = vmatprep.mubr.bf16.mxu1 %v1681_v15  ;;  %v1700_v0 = vor.u32 %v1699_v60, %v1695_v47  ;;  %v7498_v47 = vld [vmem:[#allocation2 + $0x28] sm:$0xf]  ;;  %v6392_v60 = vld [vmem:[%s8303_s6 + $0x220] sm:$0xff]  }
 0x1af   : > { %5705 = vmatprep.subr.bf16.mxu1 %v6345_v40  ;;  %3191 = vmatmul.mubr.bf16.gmra.mrb[96].mxu0 %v7338_v57  ;;  %v6357_v57 = vld [vmem:[%s8303_s6 + $0x1d8] sm:$0xff]   ;;  %v1711_v40 = vrot.slane %v1709_v5, 1  ;;  %v6394_v5 = vld [vmem:[%s8303_s6 + $0x228] sm:$0xff]  }
 0x1b0   : > { %3198 = vmatprep.mubr.bf16.mxu0 %v1657_v16  ;;  %v1705_v12 = vsel %vm1537_vm12, %v1700_v0, %v1704_v44 }
 0x1b1   : > { %v1712_v15 = vor.u32 %v1711_v40, %v1707_v8  ;;  %v3421_v40 = vld [vmem:[#allocation2 + $0x30] sm:$0xf] }
 0x1b2   : > { %5706 = vmatpush3.bf16.msra.mxu1 %v6346_v7  ;;  %v6373_v7 = vld [vmem:[%s8303_s6 + $0x1b0] sm:$0xff]  }
 0x1b3   : > { %5707 = vmatprep.subr.bf16.mxu1 %v6351_v53  ;;  %v1726_v53 = vshll.u32 %v7465_v35, 16  ;;  %v1717_v16 = vsel %vm1537_vm12, %v1712_v15, %v1716_v38  ;;  %v1820_v15 = vrot.slane %v7345_v22, 1  ;;  %v1386_v38 = vld [vmem:[#allocation2 + $0x6c] sm:$0xe] }
 0x1b5   : > { %3215 = vmatmul.mubr.bf16.gmra.mrb[68].mxu1 %v7355_v45  ;;  %v6361_v45 = vld [vmem:[%s8303_s6 + $0x1e0] sm:$0xff]  }
 0x1b6   : > { %3222 = vmatprep.mubr.bf16.mxu1 %v1693_v42  ;;  %5708 = vmatpush3.bf16.msra.mxu1 %v6353_v30  ;;  %v1723_v30 = vrot.slane %v1721_v1, 1  ;;  %v3419_v42 = vld [vmem:[#allocation2 + $0x24] sm:$0xf]  ;;  %v3645_v1 = vshll.u32 %v7520_v61, 16 }
 0x1b7   : > { %5709 = vmatprep.subr.bf16.mxu1 %v6357_v57  ;;  %3199 = vmatmul.mubr.bf16.gmra.mrb[100].mxu0 %v7362_v14  ;;  %v6367_v14 = vld [vmem:[%s8303_s6 + $0x1e8] sm:$0xff]   ;;  %v1728_v57 = vrot.slane %v1726_v53, 1  ;;  %v7509_v44 = vcombine.low %v3419_v42, %v7498_v47  ;;  %v1826_v42 = vrot.slane %v7340_v46, 1 }
 0x1b8   : > { %5939 = vmatprep.mubr.bf16.mxu0 %v1797_v11  ;;  %v1724_v9 = vor.u32 %v1723_v30, %v1719_v49  ;;  %v7503_v11 = vld [vmem:[#allocation2 + $0x20] ss:$0 sps:$4 sm:$0x11]   ;;  %v7544_v49 = vld [vmem:[#allocation2 + $0x38] ss:$0 sps:$4 sm:$0x11]  }
 0x1b9   : > { %v3640_v8 = vshll.u32 %v7509_v44, 16 }
 0x1ba   : > { %5710 = vmatpush3.bf16.msra.mxu1 %v6358_v4  ;;  %v1729_v4 = vsel %vm1537_vm12, %v1724_v9, %v1728_v57  ;;  %v7547_v9 = vld [vmem:[#allocation2 + $0x40] sm:$0xf] }
 0x1bb   : > { %5711 = vmatprep.subr.bf16.mxu1 %v6361_v45  ;;  %v1385_v45 = vld [vmem:[#allocation2 + $0x60] sm:$0xe]  ;;  %v3642_v53 = vrot.slane %v3640_v8, 1  ;;  %v1829_v8 = vrot.slane %v7364_v17, 1 }
 0x1bd   : > { %3223 = vmatmul.mubr.bf16.gmra.mrb[72].mxu1 %v7377_v48  ;;  %v6371_v48 = vld [vmem:[%s8303_s6 + $0x1f0] sm:$0xff]  }
 0x1be   : > { %3230 = vmatprep.mubr.bf16.mxu1 %v1705_v12  ;;  %5712 = vmatpush3.bf16.msra.mxu1 %v6362_v28 }
 0x1bf   : > { %5713 = vmatprep.subr.bf16.mxu1 %v6367_v14  ;;  %5940 = vmatmul.mubr.bf16.vlgmr.msra.gmra.mrb[32].mxu0 %v7263_v52  ;;  %v6375_v52 = vld [vmem:[%s8303_s6 + $0x1f8] sm:$0xff]   ;;  %v5101_v14 = vcombine.low %v1385_v45, %v7328_v29 }
 0x1c0   : > { %5943 = vmatprep.mubr.bf16.mxu0 %v7269_v27  ;;  %5972 = vmatpush3.bf16.msra.mxu0 %v7293_v2  ;;  %v6386_v27 = vld [vmem:[%s8303_s6 + $0x210] sm:$0xff]   ;;  %v3417_v2 = vld [vmem:[#allocation2 + $0x18] sm:$0xf] }
 0x1c1   : > { %5973 = vmatprep.subr.bf16.mxu0 %v6382_v39  ;;  %v7486_v55 = vcombine.low %v3417_v2, %v7473_v13  ;;  %v1819_v29 = vrot.slane %v5101_v14, 1  ;;  %v7565_v14 = vld [vmem:[#allocation2 + $0x4c] sm:$0xf] }
 0x1c2   : > { %5714 = vmatpush3.bf16.msra.mxu1 %v6368_v25  ;;  %v7523_v25 = vld [vmem:[#allocation2 + $0x34] sm:$0xf] }
 0x1c3   : > { %5715 = vmatprep.subr.bf16.mxu1 %v6371_v48  ;;  %v3628_v37 = vshll.u32 %v7486_v55, 16  ;;  %v3626_v10 = vshrl.u32 %v7486_v55, 16  ;;  %v7535_v2 = vcombine.low %v3421_v40, %v7523_v25 }
 0x1c4   : > { %5974 = vmatpush3.bf16.msra.mxu0 %v6382_v39  ;;  %v1817_v39 = vrot.slane %v7321_v63, 1  ;;  %v6400_v63 = vld [vmem:[%s8303_s6 + $0x238] sm:$0xff]  }
 0x1c5   : > { %3231 = vmatmul.mubr.bf16.gmra.mrb[76].mxu1 %v7399_v54  ;;  %v6388_v54 = vld [vmem:[%s8303_s6 + $0x218] sm:$0xff]   ;;  %5975 = vmatprep.subr.bf16.mxu0 %v6386_v27  ;;  %v3630_v0 = vrot.slane %v3628_v37, 1 }
 0x1c6   : > { %3238 = vmatprep.mubr.bf16.mxu1 %v1717_v16  ;;  %5716 = vmatpush3.bf16.msra.mxu1 %v6373_v7  ;;  %v1821_v16 = vsel %vm1794_vm11, %v1819_v29, %v1820_v15 }
 0x1c7   : > { %5717 = vmatprep.subr.bf16.mxu1 %v6375_v52  ;;  %5944 = vmatmul.mubr.bf16.gmra.mrb[36].mxu0 %v7278_v19  ;;  %v1813_v19 = vrot.slane %v5099_v32, 1  ;;  %v3631_v12 = vor.u32 %v3630_v0, %v3626_v10  ;;  %v1387_v52 = vld [vmem:[#allocation2 + $0x78] sm:$0xe]  ;;  %v3423_v32 = vld [vmem:[#allocation2 + $0x3c] sm:$0xf] }
 0x1c8   : > { %5947 = vmatprep.mubr.bf16.mxu0 %v7288_v6  ;;  %5976 = vmatpush3.bf16.msra.mxu0 %v6386_v27  ;;  %v1384_v6 = vld [vmem:[#allocation2 + $0x54] sm:$0xe]  ;;  %v3638_v27 = vshrl.u32 %v7509_v44, 16  ;;  %v5103_v59 = vcombine.low %v1387_v52, %v7319_v31  ;;  %v3657_v31 = vshll.u32 %v7544_v49, 16  ;;  %v7556_v45 = vcombine.low %v3423_v32, %v7547_v9 }
 0x1c9   : > { %5977 = vmatprep.subr.bf16.mxu0 %v6388_v54  ;;  %v5100_v28 = vcombine.low %v1384_v6, %v7304_v56  ;;  %v1815_v18 = vsel %vm1794_vm11, %v1813_v19, %v1814_v20  ;;  %v6398_v56 = vld [vmem:[%s8303_s6 + $0x230] sm:$0xff]   ;;  %v3650_v6 = vshrl.u32 %v7535_v2, 16 }
 0x1ca   : > { %5718 = vmatpush3.bf16.msra.mxu1 %v6378_v24  ;;  %v3643_v30 = vor.u32 %v3642_v53, %v3638_v27  ;;  %v3647_v24 = vrot.slane %v3645_v1, 1  ;;  %v1825_v37 = vrot.slane %v5103_v59, 1  ;;  %v1389_v20 = vld [vmem:[#allocation2 + $0x90] sm:$0xe]  ;;  %v3659_v10 = vrot.slane %v3657_v31, 1 }
 0x1cb   : > { %v3427_v53 = vld [vmem:[#allocation2 + $0x54] sm:$0xf] }
 0x1cc   : > { %5978 = vmatpush3.bf16.msra.mxu0 %v6388_v54  ;;  %v3652_v54 = vshll.u32 %v7535_v2, 16  ;;  %v3648_v19 = vsel %vm1537_vm12, %v3643_v30, %v3647_v24  ;;  %v1827_v0 = vsel %vm1794_vm11, %v1825_v37, %v1826_v42  ;;  %v1392_v59 = vld [vmem:[#allocation2 + $0xb4] sm:$0xe] }
 0x1cd   : > { %3239 = vmatmul.mubr.bf16.gmra.mrb[80].mxu1 %v7427_v41  ;;  %5979 = vmatprep.subr.bf16.mxu0 %v6392_v60  ;;  %v3633_v41 = vshll.u32 %v7503_v11, 16 }
 0x1ce   : > { %3246 = vmatprep.mubr.bf16.mxu1 %v1729_v4  ;;  %v3654_v4 = vrot.slane %v3652_v54, 1 }
 0x1cf   : > { %5948 = vmatmul.mubr.bf16.gmra.mrb[40].mxu0 %v7298_v62  ;;  %v1816_v62 = vrot.slane %v5100_v28, 1  ;;  %v3635_v48 = vrot.slane %v3633_v41, 1  ;;  %v3664_v41 = vshll.u32 %v7556_v45, 16 }
 0x1d0   : > { %5951 = vmatprep.mubr.bf16.mxu0 %v1815_v18  ;;  %5980 = vmatpush3.bf16.msra.mxu0 %v6392_v60  ;;  %v1388_v60 = vld [vmem:[#allocation2 + $0x84] sm:$0xe]  ;;  %v3655_v28 = vor.u32 %v3654_v4, %v3650_v6  ;;  %v3425_v18 = vld [vmem:[#allocation2 + $0x48] sm:$0xf] }
 0x1d1   : > { %5981 = vmatprep.subr.bf16.mxu0 %v6394_v5  ;;  %v3636_v7 = vsel %vm1537_vm12, %v3631_v12, %v3635_v48  ;;  %v1818_v22 = vsel %vm1794_vm11, %v1816_v62, %v1817_v39  ;;  %v5104_v46 = vcombine.low %v1388_v60, %v7343_v36  ;;  %v1832_v36 = vrot.slane %v7383_v23, 1  ;;  %v1391_v39 = vld [vmem:[#allocation2 + $0xa8] sm:$0xe]  ;;  %v7601_v6 = vld [vmem:[#allocation2 + $0x64] sm:$0xf] }
 0x1d2   : > { %v3662_v48 = vshrl.u32 %v7556_v45, 16  ;;  %v3666_v29 = vrot.slane %v3664_v41, 1  ;;  %v7574_v15 = vcombine.low %v3425_v18, %v7565_v14  ;;  %v5107_v1 = vcombine.low %v1391_v39, %v7417_v33  ;;  %v3467_v18 = vld [vmem:[#allocation2 + $0x30] sm:$0xe] }
 0x1d3   : > { %v1828_v12 = vrot.slane %v5104_v46, 1 }
 0x1d4   : > { %5982 = vmatpush3.bf16.msra.mxu0 %v6394_v5  ;;  %v7562_v5 = vld [vmem:[#allocation2 + $0x44] ss:$0 sps:$4 sm:$0x11]   ;;  %v3676_v27 = vshll.u32 %v7574_v15, 16  ;;  %v3674_v24 = vshrl.u32 %v7574_v15, 16 }
 0x1d5   : > { %3247 = vmatmul.mubr.bf16.gmra.mrb[84].mxu1 %v7453_v3  ;;  %5983 = vmatprep.subr.bf16.mxu0 %v6398_v56  ;;  %v5102_v3 = vcombine.low %v1386_v38, %v7352_v21  ;;  %v1823_v21 = vrot.slane %v7369_v58, 1  ;;  %v3669_v62 = vshll.u32 %v7562_v5, 16  ;;  %v1830_v17 = vsel %vm1794_vm11, %v1828_v12, %v1829_v8 }
 0x1d6   : > { %4170 = vmatprep.mubr.bf16.mxu1 %v3636_v7  ;;  %v3667_v7 = vor.u32 %v3666_v29, %v3662_v48  ;;  %v3678_v54 = vrot.slane %v3676_v27, 1  ;;  %v3888_v27 = vrot.slane %v7544_v49, 1 }
 0x1d7   : > { %5952 = vmatmul.mubr.bf16.gmra.mrb[44].mxu0 %v1818_v22  ;;  %v1822_v57 = vrot.slane %v5102_v3, 1  ;;  %v3671_v52 = vrot.slane %v3669_v62, 1  ;;  %v1835_v3 = vrot.slane %v7410_v50, 1  ;;  %v5108_v50 = vcombine.low %v1392_v59, %v7443_v26 }
 0x1d8   : > { %5955 = vmatprep.mubr.bf16.mxu0 %v1821_v16  ;;  %5984 = vmatpush3.bf16.msra.mxu0 %v6398_v56  ;;  %v1390_v56 = vld [vmem:[#allocation2 + $0x9c] sm:$0xe]  ;;  %v1837_v16 = vrot.slane %v5107_v1, 1  ;;  %v3679_v42 = vor.u32 %v3678_v54, %v3674_v24  ;;  %v1841_v26 = vrot.slane %v7465_v35, 1  ;;  %v5287_v62 = vcombine.low %v3467_v18, %v7523_v25 }
 0x1d9   : > { %5985 = vmatprep.subr.bf16.mxu0 %v6400_v63  ;;  %v1824_v58 = vsel %vm1794_vm11, %v1822_v57, %v1823_v21  ;;  %v5106_v38 = vcombine.low %v1390_v56, %v7389_v34  ;;  %v1838_v34 = vrot.slane %v7437_v51, 1  ;;  %v3672_v33 = vsel %vm1537_vm12, %v3667_v7, %v3671_v52  ;;  %v3465_v21 = vld [vmem:[#allocation2 + $0x18] sm:$0xe] }
 0x1da   : > { %v5285_v37 = vcombine.low %v3465_v21, %v7473_v13  ;;  %v1840_v4 = vrot.slane %v5108_v50, 1  ;;  %v3885_v7 = vrot.slane %v7520_v61, 1  ;;  %v3887_v52 = vrot.slane %v5287_v62, 1  ;;  %v7642_v50 = vld [vmem:[#allocation2 + $0x74] ss:$0 sps:$4 sm:$0x11]  }
 0x1db   : > { %v1834_v22 = vrot.slane %v5106_v38, 1  ;;  %v1839_v51 = vsel %vm1794_vm11, %v1837_v16, %v1838_v34  ;;  %v3431_v38 = vld [vmem:[#allocation2 + $0x6c] sm:$0xf]  ;;  %v3469_v34 = vld [vmem:[#allocation2 + $0x48] sm:$0xe] }
 0x1dc   : > { %5986 = vmatpush3.bf16.msra.mxu0 %v6400_v63  ;;  %v7583_v63 = vld [vmem:[#allocation2 + $0x58] sm:$0xf]  ;;  %v3881_v46 = vrot.slane %v5285_v37, 1 }
 0x1dd   : > { %4171 = vmatmul.mubr.bf16.vlgmr.msra.gmra.mrb[88].mxu1 %v7486_v55  ;;  %v5105_v55 = vcombine.low %v1389_v20, %v7367_v43  ;;  %v3660_v43 = vsel %vm1537_vm12, %v3655_v28, %v3659_v10  ;;  %v7592_v32 = vcombine.low %v3427_v53, %v7583_v63  ;;  %v1836_v57 = vsel %vm1794_vm11, %v1834_v22, %v1835_v3  ;;  %v3429_v20 = vld [vmem:[#allocation2 + $0x60] sm:$0xf]  ;;  %v3468_v53 = vld [vmem:[#allocation2 + $0x3c] sm:$0xe] }
 0x1de   : > { %4178 = vmatprep.mubr.bf16.mxu1 %v3648_v19  ;;  %v7612_v35 = vcombine.low %v3429_v20, %v7601_v6  ;;  %v5288_v54 = vcombine.low %v3468_v53, %v7547_v9  ;;  %v3470_v20 = vld [vmem:[#allocation2 + $0x54] sm:$0xe] }
 0x1df   : > { %5956 = vmatmul.mubr.bf16.gmra.mrb[48].mxu0 %v1824_v58  ;;  %v1831_v40 = vrot.slane %v5105_v55, 1  ;;  %v3688_v31 = vshll.u32 %v7592_v32, 16  ;;  %v3466_v55 = vld [vmem:[#allocation2 + $0x24] sm:$0xe]  ;;  %v3686_v12 = vshrl.u32 %v7592_v32, 16 }
 0x1e0   : > { %5959 = vmatprep.mubr.bf16.mxu0 %v1827_v0  ;;  %v3882_v0 = vrot.slane %v7503_v11, 1  ;;  %v5286_v56 = vcombine.low %v3466_v55, %v7498_v47  ;;  %v3700_v29 = vshll.u32 %v7612_v35, 16  ;;  %v3698_v59 = vshrl.u32 %v7612_v35, 16  ;;  %v3471_v55 = vld [vmem:[#allocation2 + $0x60] sm:$0xe] }
 0x1e1   : > { %v1833_v23 = vsel %vm1794_vm11, %v1831_v40, %v1832_v36  ;;  %v3690_v8 = vrot.slane %v3688_v31, 1  ;;  %v1842_v36 = vsel %vm1794_vm11, %v1840_v4, %v1841_v26  ;;  %v3890_v31 = vrot.slane %v5288_v54, 1 }
 0x1e2   : > { %v3884_v1 = vrot.slane %v5286_v56, 1 }
 0x1e3   : > { %v3691_v39 = vor.u32 %v3690_v8, %v3686_v12  ;;  %v5290_v12 = vcombine.low %v3470_v20, %v7583_v63 }
 0x1e4   : > { %v3886_v24 = vsel %vm1794_vm11, %v3884_v1, %v3885_v7  ;;  %v3472_v1 = vld [vmem:[#allocation2 + $0x6c] sm:$0xe] }
 0x1e5   : > { %4179 = vmatmul.mubr.bf16.gmra.mrb[92].mxu1 %v7509_v44  ;;  %v7580_v44 = vld [vmem:[#allocation2 + $0x50] ss:$0 sps:$4 sm:$0x11]  }
 0x1e6   : > { %4186 = vmatprep.mubr.bf16.mxu1 %v3660_v43  ;;  %v3681_v30 = vshll.u32 %v7580_v44, 16  ;;  %v7620_v43 = vld [vmem:[#allocation2 + $0x68] ss:$0 sps:$4 sm:$0x11]   ;;  %v3894_v26 = vrot.slane %v7580_v44, 1 }
 0x1e7   : > { %5960 = vmatmul.mubr.bf16.gmra.mrb[52].mxu0 %v1830_v17  ;;  %v3705_v25 = vshll.u32 %v7620_v43, 16  ;;  %v3900_v63 = vrot.slane %v7620_v43, 1 }
 0x1e8   : > { %5963 = vmatprep.mubr.bf16.mxu0 %v1833_v23  ;;  %v3683_v60 = vrot.slane %v3681_v30, 1  ;;  %v7623_v23 = vld [vmem:[#allocation2 + $0x70] sm:$0xf]  ;;  %v3702_v30 = vrot.slane %v3700_v29, 1  ;;  %v3896_v29 = vrot.slane %v5290_v12, 1 }
 0x1e9   : > { %v7634_v61 = vcombine.low %v3431_v38, %v7623_v23 }
 0x1ea   : > { %v3684_v41 = vsel %vm1537_vm12, %v3679_v42, %v3683_v60  ;;  %v3703_v21 = vor.u32 %v3702_v30, %v3698_v59  ;;  %v3433_v42 = vld [vmem:[#allocation2 + $0x78] sm:$0xf]  ;;  %v7645_v60 = vld [vmem:[#allocation2 + $0x7c] sm:$0xf] }
 0x1eb   : > { %v3712_v37 = vshll.u32 %v7634_v61, 16 }
 0x1ed   : > { %4187 = vmatmul.mubr.bf16.gmra.mrb[96].mxu1 %v7535_v2  ;;  %v7598_v2 = vld [vmem:[#allocation2 + $0x5c] ss:$0 sps:$4 sm:$0x11]  }
 0x1ee   : > { %4194 = vmatprep.mubr.bf16.mxu1 %v3672_v33  ;;  %v3693_v13 = vshll.u32 %v7598_v2, 16 }
 0x1ef   : > { %5964 = vmatmul.mubr.bf16.gmra.mrb[56].mxu0 %v1836_v57  ;;  %v5289_v57 = vcombine.low %v3469_v34, %v7565_v14  ;;  %v3710_v14 = vshrl.u32 %v7634_v61, 16 }
 0x1f0   : > { %5967 = vmatprep.mubr.bf16.mxu0 %v1839_v51  ;;  %v3695_v48 = vrot.slane %v3693_v13, 1  ;;  %v3707_v51 = vrot.slane %v3705_v25, 1  ;;  %v3714_v13 = vrot.slane %v3712_v37, 1 }
 0x1f1   : > { %v5447_v19 = vpop.f32.mrb[0].mxu1  ;;  %v3893_v4 = vrot.slane %v5289_v57, 1  ;;  %v3903_v57 = vrot.slane %v7642_v50, 1 }
 0x1f2   : > { %v5448_v58 = vpop.f32.mrb[1].mxu1  ;;  %v3696_v16 = vsel %vm1537_vm12, %v3691_v39, %v3695_v48  ;;  %v3715_v56 = vor.u32 %v3714_v13, %v3710_v14  ;;  %v3435_v39 = vld [vmem:[#allocation2 + $0x84] sm:$0xf]  ;;  %v3436_v48 = vld [vmem:[#allocation2 + $0x88] sm:$0xf] }
 0x1f3   : > { %v7606_v28 = vadd.f32 %v5448_v58, %v5447_v19  ;;  %v5450_v10 = vpop.f32.mrb[2].mxu1  ;;  %v3891_v19 = vrot.slane %v7562_v5, 1  ;;  %v3717_v58 = vshll.u32 %v7642_v50, 16  ;;  %v7656_v5 = vcombine.low %v3433_v42, %v7645_v60  ;;  %v3474_v42 = vld [vmem:[#allocation2 + $0x84] sm:$0xe] }
 0x1f4   : > { %v5451_v40 = vpop.f32.mrb[3].mxu1  ;;  %v7670_v53 = vcombine.low %v3435_v39, %v3436_v48  ;;  %v3477_v39 = vld [vmem:[#allocation2 + $0xa8] sm:$0xe] }
 0x1f5   : > { %4195 = vmatmul.mubr.bf16.gmra.mrb[100].mxu1 %v7556_v45  ;;  %v7614_v11 = vadd.f32 %v5451_v40, %v5450_v10  ;;  %v3883_v45 = vsel %vm1794_vm11, %v3881_v46, %v3882_v0  ;;  %v3708_v0 = vsel %vm1537_vm12, %v3703_v21, %v3707_v51  ;;  %v3892_v44 = vsel %vm1794_vm11, %v3890_v31, %v3891_v19 }
 0x1f6   : > { %4202 = vmatprep.mubr.bf16.mxu1 %v3684_v41  ;;  %v5291_v40 = vcombine.low %v3471_v55, %v7601_v6  ;;  %v3724_v62 = vshll.u32 %v7656_v5, 16  ;;  %v3734_v19 = vshrl.u32 %v7670_v53, 16 }
 0x1f7   : > { %5968 = vmatmul.mubr.bf16.gmra.mrb[60].mxu0 %v1842_v36  ;;  %v6417_v36 = vld [vmem:[#allocation2 + $0x80] ss:$0 sps:$4 sm:$0x11]  }
 0x1f8   : > { %5987 = vmatprep.mubr.bf16.mxu0 %v3883_v45  ;;  %v3719_v45 = vrot.slane %v3717_v58, 1  ;;  %v3899_v38 = vrot.slane %v5291_v40, 1  ;;  %v3729_v7 = vshll.u32 %v6417_v36, 16  ;;  %v3906_v37 = vrot.slane %v6417_v36, 1 }
 0x1f9   : > { %v5453_v17 = vpop.f32.mrb[4].mxu1  ;;  %v5294_v58 = vcombine.low %v3474_v42, %v3436_v48 }
 0x1fa   : > { %v5454_v47 = vpop.f32.mrb[5].mxu1  ;;  %v3720_v6 = vsel %vm1537_vm12, %v3715_v56, %v3719_v45  ;;  %v3901_v43 = vsel %vm1794_vm11, %v3899_v38, %v3900_v63  ;;  %v3731_v59 = vrot.slane %v3729_v7, 1  ;;  %v3476_v56 = vld [vmem:[#allocation2 + $0x9c] sm:$0xe]  ;;  %v3442_v7 = vld [vmem:[#allocation2 + $0xac] sm:$0xf] }
 0x1fb   : > { %v7628_v22 = vadd.f32 %v5454_v47, %v5453_v17  ;;  %v5456_v3 = vpop.f32.mrb[6].mxu1  ;;  %v3897_v17 = vrot.slane %v7598_v2, 1  ;;  %v3473_v47 = vld [vmem:[#allocation2 + $0x78] sm:$0xe]  ;;  %v5292_v2 = vcombine.low %v3472_v1, %v7623_v23  ;;  %v3908_v12 = vrot.slane %v5294_v58, 1 }
 0x1fc   : > { %v5457_v33 = vpop.f32.mrb[7].mxu1  ;;  %v6426_v63 = vld [vmem:[#allocation2 + $0xa4] ss:$0 sps:$4 sm:$0x11]  }
 0x1fd   : > { %4203 = vmatmul.mubr.bf16.gmra.mrb[104].mxu1 %v7574_v15  ;;  %v7636_v49 = vadd.f32 %v5457_v33, %v5456_v3  ;;  %v3889_v15 = vsel %vm1794_vm11, %v3887_v52, %v3888_v27  ;;  %v3722_v52 = vshrl.u32 %v7656_v5, 16  ;;  %v3726_v27 = vrot.slane %v3724_v62, 1  ;;  %v3438_v33 = vld [vmem:[#allocation2 + $0x94] sm:$0xf] }
 0x1fe   : > { %4210 = vmatprep.mubr.bf16.mxu1 %v3696_v16  ;;  %v3898_v25 = vsel %vm1794_vm11, %v3896_v29, %v3897_v17  ;;  %v5293_v3 = vcombine.low %v3473_v47, %v7645_v60  ;;  %v6420_v16 = vld [vmem:[#allocation2 + $0x8c] ss:$0 sps:$4 sm:$0x11]  }
 0x1ff   : > { %5988 = vmatmul.mubr.bf16.vlgmr.msra.gmra.mrb[32].mxu0 %v3886_v24  ;;  %v3727_v34 = vor.u32 %v3726_v27, %v3722_v52  ;;  %v3736_v24 = vshll.u32 %v7670_v53, 16  ;;  %v3741_v50 = vshll.u32 %v6420_v16, 16  ;;  %v7697_v52 = vld [vmem:[#allocation2 + $0xb0] ss:$0 sps:$4 sm:$0x11]  }
 0x200   : > { %5991 = vmatprep.mubr.bf16.mxu0 %v3889_v15  ;;  %v3902_v15 = vrot.slane %v5292_v2, 1  ;;  %v3905_v51 = vrot.slane %v5293_v3, 1 }
 0x201   : > { %v5459_v9 = vpop.f32.mrb[8].mxu1  ;;  %v3732_v20 = vsel %vm1537_vm12, %v3727_v34, %v3731_v59  ;;  %v3915_v59 = vrot.slane %v6426_v63, 1 }
 0x202   : > { %v5460_v46 = vpop.f32.mrb[9].mxu1  ;;  %v3904_v14 = vsel %vm1794_vm11, %v3902_v15, %v3903_v57  ;;  %v3478_v57 = vld [vmem:[#allocation2 + $0xb4] sm:$0xe] }
 0x203   : > { %v7653_v10 = vadd.f32 %v5460_v46, %v5459_v9  ;;  %v5462_v41 = vpop.f32.mrb[10].mxu1  ;;  %v3475_v9 = vld [vmem:[#allocation2 + $0x90] sm:$0xe]  ;;  %v3907_v46 = vsel %vm1794_vm11, %v3905_v51, %v3906_v37  ;;  %v3479_v51 = vld [vmem:[#allocation2 + $0xc0] sm:$0xe] }
 0x204   : > { %v5463_v18 = vpop.f32.mrb[11].mxu1  ;;  %v5295_v55 = vcombine.low %v3475_v9, %v3438_v33 }
 0x205   : > { %4211 = vmatmul.mubr.bf16.gmra.mrb[108].mxu1 %v7592_v32  ;;  %v7660_v8 = vadd.f32 %v5463_v18, %v5462_v41  ;;  %v3895_v32 = vsel %vm1794_vm11, %v3893_v4, %v3894_v26  ;;  %v3738_v26 = vrot.slane %v3736_v24, 1  ;;  %v3743_v41 = vrot.slane %v3741_v50, 1  ;;  %v3440_v18 = vld [vmem:[#allocation2 + $0xa0] sm:$0xf] }
 0x206   : > { %4218 = vmatprep.mubr.bf16.mxu1 %v3708_v0  ;;  %v6423_v0 = vld [vmem:[#allocation2 + $0x98] ss:$0 sps:$4 sm:$0x11]   ;;  %v3911_v40 = vrot.slane %v5295_v55, 1  ;;  %v5296_v1 = vcombine.low %v3476_v56, %v3440_v18  ;;  %v3448_v55 = vld [vmem:[#allocation2 + $0xd0] sm:$0xf] }
 0x207   : > { %5992 = vmatmul.mubr.bf16.gmra.mrb[36].mxu0 %v3892_v44  ;;  %v3739_v13 = vor.u32 %v3738_v26, %v3734_v19  ;;  %v3912_v36 = vrot.slane %v6423_v0, 1  ;;  %v3753_v17 = vshll.u32 %v6423_v0, 16  ;;  %v3443_v19 = vld [vmem:[#allocation2 + $0xb4] sm:$0xf] }
 0x208   : > { %5995 = vmatprep.mubr.bf16.mxu0 %v3895_v32  ;;  %v3909_v32 = vrot.slane %v6420_v16, 1  ;;  %v3914_v34 = vrot.slane %v5296_v1, 1  ;;  %v6432_v26 = vld [vmem:[#allocation2 + $0xbc] ss:$0 sps:$4 sm:$0x11]  }
 0x209   : > { %v3744_v62 = vsel %vm1537_vm12, %v3739_v13, %v3743_v41  ;;  %v3921_v56 = vrot.slane %v6432_v26, 1 }
 0x20a   : > { %v3910_v38 = vsel %vm1794_vm11, %v3908_v12, %v3909_v32  ;;  %v3916_v9 = vsel %vm1794_vm11, %v3914_v34, %v3915_v59 }
 0x20d   : > { %4219 = vmatmul.mubr.bf16.gmra.mrb[112].mxu1 %v7612_v35  ;;  %v3437_v35 = vld [vmem:[#allocation2 + $0x90] sm:$0xf] }
 0x20e   : > { %4226 = vmatprep.mubr.bf16.mxu1 %v3720_v6  ;;  %v7680_v60 = vcombine.low %v3437_v35, %v3438_v33  ;;  %v3913_v6 = vsel %vm1794_vm11, %v3911_v40, %v3912_v36 }
 0x20f   : > { %5996 = vmatmul.mubr.bf16.gmra.mrb[40].mxu0 %v3898_v25  ;;  %v3441_v25 = vld [vmem:[#allocation2 + $0xa8] sm:$0xf] }
 0x210   : > { %5999 = vmatprep.mubr.bf16.mxu0 %v3901_v43  ;;  %v5465_v30 = vpop.f32.mrb[12].mxu1  ;;  %v3748_v44 = vshll.u32 %v7680_v60, 16  ;;  %v3746_v48 = vshrl.u32 %v7680_v60, 16  ;;  %v3755_v43 = vrot.slane %v3753_v17, 1  ;;  %v7702_v33 = vcombine.low %v3441_v25, %v3442_v7 }
 0x211   : > { %v5466_v54 = vpop.f32.mrb[13].mxu1  ;;  %v7722_v17 = vld [vmem:[#allocation2 + $0xd4] ss:$0 sps:$4 sm:$0x11]  }
 0x212   : > { %v7678_v21 = vadd.f32 %v5466_v54, %v5465_v30  ;;  %v5468_v23 = vpop.f32.mrb[14].mxu1  ;;  %v3750_v29 = vrot.slane %v3748_v44, 1  ;;  %v3918_v54 = vrot.slane %v7697_v52, 1  ;;  %v3772_v44 = vshll.u32 %v7702_v33, 16 }
 0x213   : > { %v5469_v31 = vpop.f32.mrb[15].mxu1  ;;  %v3770_v1 = vshrl.u32 %v7702_v33, 16  ;;  %v3927_v25 = vrot.slane %v7722_v17, 1 }
 0x214   : > { %v7685_v4 = vadd.f32 %v5469_v31, %v5468_v23  ;;  %v3751_v2 = vor.u32 %v3750_v29, %v3746_v48  ;;  %v3765_v31 = vshll.u32 %v6426_v63, 16 }
 0x215   : > { %4227 = vmatmul.mubr.bf16.gmra.mrb[116].mxu1 %v7634_v61  ;;  %v3439_v61 = vld [vmem:[#allocation2 + $0x9c] sm:$0xf] }
 0x216   : > { %4234 = vmatprep.mubr.bf16.mxu1 %v3732_v20  ;;  %v7690_v45 = vcombine.low %v3439_v61, %v3440_v18  ;;  %v3756_v23 = vsel %vm1537_vm12, %v3751_v2, %v3755_v43  ;;  %v3444_v20 = vld [vmem:[#allocation2 + $0xb8] sm:$0xf]  ;;  %v3767_v61 = vrot.slane %v3765_v31, 1  ;;  %v3480_v18 = vld [vmem:[#allocation2 + $0xcc] sm:$0xe] }
 0x217   : > { %6000 = vmatmul.mubr.bf16.gmra.mrb[44].mxu0 %v3904_v14  ;;  %v5298_v50 = vcombine.low %v3478_v57, %v3444_v20  ;;  %v3446_v14 = vld [vmem:[#allocation2 + $0xc4] sm:$0xf]  ;;  %v7717_v40 = vcombine.low %v3443_v19, %v3444_v20  ;;  %v3445_v2 = vld [vmem:[#allocation2 + $0xc0] sm:$0xf]  ;;  %v3447_v31 = vld [vmem:[#allocation2 + $0xcc] sm:$0xf] }
 0x218   : > { %6003 = vmatprep.mubr.bf16.mxu0 %v3907_v46  ;;  %v3760_v3 = vshll.u32 %v7690_v45, 16  ;;  %v3758_v37 = vshrl.u32 %v7690_v45, 16  ;;  %v5299_v0 = vcombine.low %v3479_v51, %v3446_v14 }
 0x219   : > { %v3920_v36 = vrot.slane %v5298_v50, 1  ;;  %v3784_v34 = vshll.u32 %v7717_v40, 16  ;;  %v3782_v57 = vshrl.u32 %v7717_v40, 16 }
 0x21a   : > { %v3762_v42 = vrot.slane %v3760_v3, 1 }
 0x21c   : > { %v3763_v41 = vor.u32 %v3762_v42, %v3758_v37  ;;  %v3786_v37 = vrot.slane %v3784_v34, 1  ;;  %v3789_v42 = vshll.u32 %v6432_v26, 16 }
 0x21d   : > { %4235 = vmatmul.mubr.bf16.gmra.mrb[120].mxu1 %v7656_v5  ;;  %v5297_v5 = vcombine.low %v3477_v39, %v3442_v7  ;;  %v3923_v39 = vrot.slane %v5299_v0, 1  ;;  %v3774_v7 = vrot.slane %v3772_v44, 1  ;;  %v5268_v0 = vcombine.low %v3447_v31, %v3448_v55 }
 0x21e   : > { %4242 = vmatprep.mubr.bf16.mxu1 %v3744_v62  ;;  %v3768_v63 = vsel %vm1537_vm12, %v3763_v41, %v3767_v61  ;;  %v3791_v50 = vrot.slane %v3789_v42, 1 }
 0x21f   : > { %6004 = vmatmul.mubr.bf16.gmra.mrb[48].mxu0 %v3910_v38  ;;  %v5471_v47 = vpop.f32.mrb[16].mxu1  ;;  %v3917_v24 = vrot.slane %v5297_v5, 1  ;;  %v5300_v38 = vcombine.low %v3480_v18, %v3448_v55  ;;  %v3775_v3 = vor.u32 %v3774_v7, %v3770_v1  ;;  %v3808_v44 = vshll.u32 %v5268_v0, 16 }
 0x220   : > { %6007 = vmatprep.mubr.bf16.mxu0 %v3913_v6  ;;  %v5472_v27 = vpop.f32.mrb[17].mxu1  ;;  %v3777_v6 = vshll.u32 %v7697_v52, 16 }
 0x221   : > { %v7700_v16 = vadd.f32 %v5472_v27, %v5471_v47  ;;  %v5474_v35 = vpop.f32.mrb[18].mxu1  ;;  %v3919_v58 = vsel %vm1794_vm11, %v3917_v24, %v3918_v54  ;;  %v3922_v47 = vsel %vm1794_vm11, %v3920_v36, %v3921_v56  ;;  %v5267_v24 = vcombine.low %v3445_v2, %v3446_v14 }
 0x222   : > { %v5475_v30 = vpop.f32.mrb[19].mxu1  ;;  %v3810_v1 = vrot.slane %v3808_v44, 1 }
 0x223   : > { %v7705_v15 = vadd.f32 %v5475_v30, %v5474_v35  ;;  %v3779_v35 = vrot.slane %v3777_v6, 1  ;;  %v3796_v14 = vshll.u32 %v5267_v24, 16  ;;  %v3794_v26 = vshrl.u32 %v5267_v24, 16 }
 0x225   : > { %4243 = vmatmul.mubr.bf16.gmra.mrb[124].mxu1 %v7670_v53  ;;  %v7712_v53 = vld [vmem:[#allocation2 + $0xc8] ss:$0 sps:$4 sm:$0x11]   ;;  %v3780_v51 = vsel %vm1537_vm12, %v3775_v3, %v3779_v35  ;;  %v3798_v61 = vrot.slane %v3796_v14, 1 }
 0x226   : > { %4250 = vmatprep.mubr.bf16.mxu1 %v3756_v23  ;;  %v3924_v48 = vrot.slane %v7712_v53, 1  ;;  %v3801_v18 = vshll.u32 %v7712_v53, 16 }
 0x227   : > { %6008 = vmatmul.mubr.bf16.gmra.mrb[52].mxu0 %v3916_v9  ;;  %v3787_v9 = vor.u32 %v3786_v37, %v3782_v57  ;;  %v3799_v56 = vor.u32 %v3798_v61, %v3794_v26 }
 0x228   : > { %v5477_v46 = vpop.f32.mrb[20].mxu1  ;;  %6011 = vmatprep.mubr.bf16.mxu0 %v3919_v58  ;;  %v3925_v5 = vsel %vm1794_vm11, %v3923_v39, %v3924_v48 }
 0x229   : > { %v5478_v13 = vpop.f32.mrb[21].mxu1 }
 0x22a   : > { %v7715_v12 = vadd.f32 %v5478_v13, %v5477_v46  ;;  %v5480_v32 = vpop.f32.mrb[22].mxu1 }
 0x22b   : > { %v5481_v62 = vpop.f32.mrb[23].mxu1 }
 0x22c   : > { %v7720_v29 = vadd.f32 %v5481_v62, %v5480_v32  ;;  %v3803_v62 = vrot.slane %v3801_v18, 1 }
 0x22d   : > { %4251 = vmatmul.mubr.bf16.gmra.mrb[128].mxu1 %v7680_v60  ;;  %v3926_v60 = vrot.slane %v5300_v38, 1 }
 0x22e   : > { %4258 = vmatprep.mubr.bf16.mxu1 %v3768_v63  ;;  %v3806_v63 = vshrl.u32 %v5268_v0, 16 }
 0x22f   : > { %6012 = vmatmul.mubr.bf16.gmra.mrb[56].mxu0 %v3922_v47  ;;  %v3928_v23 = vsel %vm1794_vm11, %v3926_v60, %v3927_v25 }
 0x230   : > { %v5483_v27 = vpop.f32.mrb[24].mxu1  ;;  %6015 = vmatprep.mubr.bf16.mxu0 %v3925_v5  ;;  %v3804_v5 = vsel %vm1537_vm12, %v3799_v56, %v3803_v62 }
 0x231   : > { %v5484_v43 = vpop.f32.mrb[25].mxu1 }
 0x232   : > { %v7732_v59 = vadd.f32 %v5484_v43, %v5483_v27  ;;  %v5486_v52 = vpop.f32.mrb[26].mxu1  ;;  %v3811_v43 = vor.u32 %v3810_v1, %v3806_v63 }
 0x233   : > { %v5487_v30 = vpop.f32.mrb[27].mxu1 }
 0x234   : > { %v7734_v54 = vadd.f32 %v5487_v30, %v5486_v52 }
 0x235   : > { %4259 = vmatmul.mubr.bf16.gmra.mrb[132].mxu1 %v7690_v45  ;;  %v3792_v45 = vsel %vm1537_vm12, %v3787_v9, %v3791_v50 }
 0x236   : > { %4266 = vmatprep.mubr.bf16.mxu1 %v3780_v51 }
 0x237   : > { %6016 = vmatmul.mubr.bf16.gmra.mrb[60].mxu0 %v3928_v23 }
 0x238   : > { %v5489_v19 = vpop.f32.mrb[28].mxu1 }
 0x239   : > { %v5490_v20 = vpop.f32.mrb[29].mxu1 }
 0x23a   : > { %v7740_v58 = vadd.f32 %v5490_v20, %v5489_v19  ;;  %v5492_v46 = vpop.f32.mrb[30].mxu1 }
 0x23b   : > { %v5493_v13 = vpop.f32.mrb[31].mxu1 }
 0x23c   : > { %v7742_v41 = vadd.f32 %v5493_v13, %v5492_v46 }
 0x23d   : > { %4267 = vmatmul.mubr.bf16.gmra.mrb[136].mxu1 %v7702_v33  ;;  %v3813_v33 = vshll.u32 %v7722_v17, 16 }
 0x23e   : > { %4274 = vmatprep.mubr.bf16.mxu1 %v3792_v45 }
 0x23f   : > { %v3815_v60 = vrot.slane %v3813_v33, 1 }
 0x240   : > { %v5495_v32 = vpop.f32.mrb[32].mxu1 }
 0x241   : > { %v5496_v36 = vpop.f32.mrb[33].mxu1  ;;  %v3816_v57 = vsel %vm1537_vm12, %v3811_v43, %v3815_v60 }
 0x242   : > { %v7747_v39 = vadd.f32 %v5496_v36, %v5495_v32  ;;  %v5498_v55 = vpop.f32.mrb[34].mxu1  ;;  %v5583_v48 = vpop.f32.mrb[64].mxu0 }
 0x243   : > { %v5499_v38 = vpop.f32.mrb[35].mxu1  ;;  %v5584_v7 = vpop.f32.mrb[65].mxu0 }
 0x244   : > { %v7750_v6 = vadd.f32 %v5499_v38, %v5498_v55  ;;  %v5585_v47 = vadd.f32 %v5584_v7, %v5583_v48  ;;  %v5586_v53 = vpop.f32.mrb[66].mxu0 }
 0x245   : > { %4275 = vmatmul.mubr.bf16.gmra.mrb[140].mxu1 %v7717_v40  ;;  %v5587_v27 = vpop.f32.mrb[67].mxu0 }
 0x246   : > { %4282 = vmatprep.mubr.bf16.mxu1 %v3804_v5  ;;  %v7755_v25 = vadd.f32 %v5585_v47, %v7606_v28  ;;  %v5588_v2 = vadd.f32 %v5587_v27, %v5586_v53 }
 0x248   : > { %v5501_v3 = vpop.f32.mrb[36].mxu1  ;;  %v7758_v17 = vadd.f32 %v5588_v2, %v7614_v11 }
 0x249   : > { %v5502_v35 = vpop.f32.mrb[37].mxu1 }
 0x24a   : > { %v7760_v34 = vadd.f32 %v5502_v35, %v5501_v3  ;;  %v5504_v52 = vpop.f32.mrb[38].mxu1  ;;  %v5589_v30 = vpop.f32.mrb[68].mxu0 }
 0x24b   : > { %v5505_v40 = vpop.f32.mrb[39].mxu1  ;;  %v5590_v23 = vpop.f32.mrb[69].mxu0 }
 0x24c   : > { %v7763_v51 = vadd.f32 %v5505_v40, %v5504_v52  ;;  %v5591_v28 = vadd.f32 %v5590_v23, %v5589_v30  ;;  %v5592_v37 = vpop.f32.mrb[70].mxu0 }
 0x24d   : > { %4283 = vmatmul.mubr.bf16.gmra.mrb[144].mxu1 %v5267_v24  ;;  %v5593_v42 = vpop.f32.mrb[71].mxu0 }
 0x24e   : > { %4290 = vmatprep.mubr.bf16.mxu1 %v3816_v57  ;;  %v7766_v31 = vadd.f32 %v5591_v28, %v7628_v22  ;;  %v5594_v11 = vadd.f32 %v5593_v42, %v5592_v37 }
 0x250   : > { %v5507_v19 = vpop.f32.mrb[40].mxu1  ;;  %v7769_v20 = vadd.f32 %v5594_v11, %v7636_v49 }
 0x251   : > { %v5508_v9 = vpop.f32.mrb[41].mxu1 }
 0x252   : > { %v7771_v50 = vadd.f32 %v5508_v9, %v5507_v19  ;;  %v5510_v14 = vpop.f32.mrb[42].mxu1  ;;  %v5595_v46 = vpop.f32.mrb[72].mxu0 }
 0x253   : > { %v5511_v13 = vpop.f32.mrb[43].mxu1  ;;  %v5596_v45 = vpop.f32.mrb[73].mxu0 }
 0x254   : > { %v7773_v26 = vadd.f32 %v5511_v13, %v5510_v14  ;;  %v5597_v24 = vadd.f32 %v5596_v45, %v5595_v46  ;;  %v5598_v61 = vpop.f32.mrb[74].mxu0 }
 0x255   : > { %4291 = vmatmul.mubr.bf16.gmra.mrb[148].mxu1 %v5268_v0  ;;  %v5599_v18 = vpop.f32.mrb[75].mxu0 }
 0x256   : > { %v7776_v22 = vadd.f32 %v5597_v24, %v7653_v10  ;;  %v5600_v44 = vadd.f32 %v5599_v18, %v5598_v61 }
 0x258   : > { %v5513_v32 = vpop.f32.mrb[44].mxu1  ;;  %v7779_v49 = vadd.f32 %v5600_v44, %v7660_v8 }
 0x259   : > { %v5514_v36 = vpop.f32.mrb[45].mxu1 }
 0x25a   : > { %v7781_v56 = vadd.f32 %v5514_v36, %v5513_v32  ;;  %v5516_v62 = vpop.f32.mrb[46].mxu1  ;;  %v5601_v55 = vpop.f32.mrb[76].mxu0 }
 0x25b   : > { %v5517_v48 = vpop.f32.mrb[47].mxu1  ;;  %v5602_v38 = vpop.f32.mrb[77].mxu0 }
 0x25c   : > { %v7783_v63 = vadd.f32 %v5517_v48, %v5516_v62  ;;  %v5603_v1 = vadd.f32 %v5602_v38, %v5601_v55  ;;  %v5604_v0 = vpop.f32.mrb[78].mxu0 }
 0x25d   : > { %v5605_v33 = vpop.f32.mrb[79].mxu0 }
 0x25e   : > { %v7786_v10 = vadd.f32 %v5603_v1, %v7678_v21  ;;  %v5606_v7 = vadd.f32 %v5605_v33, %v5604_v0 }
 0x260   : > { %v5519_v47 = vpop.f32.mrb[48].mxu1  ;;  %v7789_v8 = vadd.f32 %v5606_v7, %v7685_v4 }
 0x261   : > { %v5520_v53 = vpop.f32.mrb[49].mxu1 }
 0x262   : > { %v7791_v5 = vadd.f32 %v5520_v53, %v5519_v47  ;;  %v5522_v27 = vpop.f32.mrb[50].mxu1  ;;  %v5607_v2 = vpop.f32.mrb[80].mxu0 }
 0x263   : > { %v5523_v43 = vpop.f32.mrb[51].mxu1  ;;  %v5608_v60 = vpop.f32.mrb[81].mxu0 }
 0x264   : > { %v7793_v3 = vadd.f32 %v5523_v43, %v5522_v27  ;;  %v5609_v35 = vadd.f32 %v5608_v60, %v5607_v2  ;;  %v5610_v52 = vpop.f32.mrb[82].mxu0 }
 0x265   : > { %v5611_v30 = vpop.f32.mrb[83].mxu0 }
 0x266   : > { %v7796_v21 = vadd.f32 %v5609_v35, %v7700_v16  ;;  %v5612_v40 = vadd.f32 %v5611_v30, %v5610_v52 }
 0x268   : > { %v5525_v57 = vpop.f32.mrb[52].mxu1  ;;  %v7799_v4 = vadd.f32 %v5612_v40, %v7705_v15 }
 0x269   : > { %v5526_v23 = vpop.f32.mrb[53].mxu1 }
 0x26a   : > { %v7801_v28 = vadd.f32 %v5526_v23, %v5525_v57  ;;  %v5528_v37 = vpop.f32.mrb[54].mxu1  ;;  %v5613_v42 = vpop.f32.mrb[84].mxu0 }
 0x26b   : > { %v5529_v11 = vpop.f32.mrb[55].mxu1  ;;  %v5614_v19 = vpop.f32.mrb[85].mxu0 }
 0x26c   : > { %v7803_v9 = vadd.f32 %v5529_v11, %v5528_v37  ;;  %v5615_v14 = vadd.f32 %v5614_v19, %v5613_v42  ;;  %v5616_v46 = vpop.f32.mrb[86].mxu0 }
 0x26d   : > { %v5617_v13 = vpop.f32.mrb[87].mxu0 }
 0x26e   : > { %v7806_v16 = vadd.f32 %v5615_v14, %v7715_v12  ;;  %v5618_v45 = vadd.f32 %v5617_v13, %v5616_v46 }
 0x270   : > { %v5531_v24 = vpop.f32.mrb[56].mxu1  ;;  %v7809_v15 = vadd.f32 %v5618_v45, %v7720_v29 }
 0x271   : > { %v5532_v61 = vpop.f32.mrb[57].mxu1 }
 0x272   : > { %v7811_v18 = vadd.f32 %v5532_v61, %v5531_v24  ;;  %v5534_v44 = vpop.f32.mrb[58].mxu1  ;;  %v5619_v32 = vpop.f32.mrb[88].mxu0 }
 0x273   : > { %v5535_v36 = vpop.f32.mrb[59].mxu1  ;;  %v5620_v62 = vpop.f32.mrb[89].mxu0 }
 0x274   : > { %v7813_v55 = vadd.f32 %v5535_v36, %v5534_v44  ;;  %v5621_v48 = vadd.f32 %v5620_v62, %v5619_v32  ;;  %v5622_v38 = vpop.f32.mrb[90].mxu0 }
 0x275   : > { %v5623_v1 = vpop.f32.mrb[91].mxu0 }
 0x276   : > { %v7816_v12 = vadd.f32 %v5621_v48, %v7732_v59  ;;  %v5624_v0 = vadd.f32 %v5623_v1, %v5622_v38 }
 0x278   : > { %v5537_v33 = vpop.f32.mrb[60].mxu1  ;;  %v7819_v29 = vadd.f32 %v5624_v0, %v7734_v54 }
 0x279   : > { %v5538_v7 = vpop.f32.mrb[61].mxu1 }
 0x27a   : > { %v7821_v47 = vadd.f32 %v5538_v7, %v5537_v33  ;;  %v5540_v53 = vpop.f32.mrb[62].mxu1  ;;  %v5625_v27 = vpop.f32.mrb[92].mxu0 }
 0x27b   : > { %v5541_v2 = vpop.f32.mrb[63].mxu1  ;;  %v5626_v43 = vpop.f32.mrb[93].mxu0 }
 0x27c   : > { %v7823_v60 = vadd.f32 %v5541_v2, %v5540_v53  ;;  %v5627_v35 = vadd.f32 %v5626_v43, %v5625_v27  ;;  %v5628_v52 = vpop.f32.mrb[94].mxu0 }
 0x27d   : > { %v5629_v30 = vpop.f32.mrb[95].mxu0 }
 0x27e   : > { %v7826_v59 = vadd.f32 %v5627_v35, %v7740_v58  ;;  %v5630_v40 = vadd.f32 %v5629_v30, %v5628_v52 }
 0x280   : > { %v5643_v57 = vpop.f32.mrb[64].mxu1  ;;  %v7829_v54 = vadd.f32 %v5630_v40, %v7742_v41 }
 0x281   : > { %v5644_v23 = vpop.f32.mrb[65].mxu1 }
 0x282   : > { %v5645_v37 = vadd.f32 %v5644_v23, %v5643_v57  ;;  %v5646_v42 = vpop.f32.mrb[66].mxu1  ;;  %v5631_v11 = vpop.f32.mrb[96].mxu0 }
 0x283   : > { %v5647_v19 = vpop.f32.mrb[67].mxu1  ;;  %v5632_v14 = vpop.f32.mrb[97].mxu0 }
 0x284   : > { %v7832_v46 = vadd.f32 %v5645_v37, %v7771_v50  ;;  %v5648_v13 = vadd.f32 %v5647_v19, %v5646_v42  ;;  %v5633_v45 = vadd.f32 %v5632_v14, %v5631_v11  ;;  %v5634_v24 = vpop.f32.mrb[98].mxu0 }
 0x285   : > { %v5635_v61 = vpop.f32.mrb[99].mxu0 }
 0x286   : > { %v7835_v58 = vadd.f32 %v5648_v13, %v7773_v26  ;;  %v7838_v44 = vadd.f32 %v5633_v45, %v7747_v39  ;;  %v5636_v41 = vadd.f32 %v5635_v61, %v5634_v24 }
 0x288   : > { %v5649_v32 = vpop.f32.mrb[68].mxu1  ;;  %v7841_v36 = vadd.f32 %v5636_v41, %v7750_v6 }
 0x289   : > { %v5650_v62 = vpop.f32.mrb[69].mxu1 }
 0x28a   : > { %v5651_v48 = vadd.f32 %v5650_v62, %v5649_v32  ;;  %v5652_v38 = vpop.f32.mrb[70].mxu1  ;;  %v5637_v50 = vpop.f32.mrb[100].mxu0 }
 0x28b   : > { %v5653_v1 = vpop.f32.mrb[71].mxu1  ;;  %v5638_v0 = vpop.f32.mrb[101].mxu0 }
 0x28c   : > { %v7844_v33 = vadd.f32 %v5651_v48, %v7781_v56  ;;  %v5654_v7 = vadd.f32 %v5653_v1, %v5652_v38  ;;  %v5639_v26 = vadd.f32 %v5638_v0, %v5637_v50  ;;  %v5640_v53 = vpop.f32.mrb[102].mxu0 }
 0x28d   : > { %v5641_v27 = vpop.f32.mrb[103].mxu0 }
 0x28e   : > { %v7847_v39 = vadd.f32 %v5654_v7, %v7783_v63  ;;  %v7850_v2 = vadd.f32 %v5639_v26, %v7760_v34  ;;  %v5642_v6 = vadd.f32 %v5641_v27, %v5640_v53 }
 0x290   : > { %v5655_v43 = vpop.f32.mrb[72].mxu1  ;;  %v7853_v35 = vadd.f32 %v5642_v6, %v7763_v51 }
 0x291   : > { %v5656_v52 = vpop.f32.mrb[73].mxu1 }
 0x292   : > { %v5657_v30 = vadd.f32 %v5656_v52, %v5655_v43  ;;  %v5658_v40 = vpop.f32.mrb[74].mxu1 }
 0x293   : > { %v5659_v56 = vpop.f32.mrb[75].mxu1 }
 0x294   : > { %v7856_v57 = vadd.f32 %v5657_v30, %v7791_v5  ;;  %v5660_v23 = vadd.f32 %v5659_v56, %v5658_v40 }
 0x296   : > { %v7859_v37 = vadd.f32 %v5660_v23, %v7793_v3 }
 0x298   : > { %v5661_v63 = vpop.f32.mrb[76].mxu1 }
 0x299   : > { %v5662_v42 = vpop.f32.mrb[77].mxu1 }
 0x29a   : > { %v5663_v34 = vadd.f32 %v5662_v42, %v5661_v63  ;;  %v5664_v11 = vpop.f32.mrb[78].mxu1 }
 0x29b   : > { %v5665_v19 = vpop.f32.mrb[79].mxu1 }
 0x29c   : > { %v7862_v14 = vadd.f32 %v5663_v34, %v7801_v28  ;;  %v5666_v51 = vadd.f32 %v5665_v19, %v5664_v11 }
 0x29e   : > { %v7865_v13 = vadd.f32 %v5666_v51, %v7803_v9 }
 0x2a0   : > { %v5667_v45 = vpop.f32.mrb[80].mxu1 }
 0x2a1   : > { %v5668_v24 = vpop.f32.mrb[81].mxu1 }
 0x2a2   : > { %v5669_v5 = vadd.f32 %v5668_v24, %v5667_v45  ;;  %v5670_v61 = vpop.f32.mrb[82].mxu1 }
 0x2a3   : > { %v5671_v41 = vpop.f32.mrb[83].mxu1 }
 0x2a4   : > { %v7868_v3 = vadd.f32 %v5669_v5, %v7811_v18  ;;  %v5672_v32 = vadd.f32 %v5671_v41, %v5670_v61 }
 0x2a6   : > { %v7871_v62 = vadd.f32 %v5672_v32, %v7813_v55 }
 0x2a8   : > { %v5673_v48 = vpop.f32.mrb[84].mxu1 }
 0x2a9   : > { %v5674_v38 = vpop.f32.mrb[85].mxu1 }
 0x2aa   : > { %v5675_v28 = vadd.f32 %v5674_v38, %v5673_v48  ;;  %v5676_v50 = vpop.f32.mrb[86].mxu1 }
 0x2ab   : > { %v5677_v1 = vpop.f32.mrb[87].mxu1 }
 0x2ac   : > { %v7874_v9 = vadd.f32 %v5675_v28, %v7821_v47  ;;  %v5678_v0 = vadd.f32 %v5677_v1, %v5676_v50 }
 0x2ae   : > { %v7877_v7 = vadd.f32 %v5678_v0, %v7823_v60 }
 0x2b0   : > { %v5719_v26 = vpop.f32.mrb[88].mxu1 }
 0x2b1   : > { %v5720_v53 = vpop.f32.mrb[89].mxu1 }
 0x2b2   : > { %v5721_v18 = vadd.f32 %v5720_v53, %v5719_v26  ;;  %v5722_v27 = vpop.f32.mrb[90].mxu1 }
 0x2b3   : > { %v5723_v6 = vpop.f32.mrb[91].mxu1 }
 0x2b4   : > { %v5724_v43 = vadd.f32 %v5723_v6, %v5722_v27  ;;  %v6039_v55 = vadd.f32 %v7755_v25, %v5721_v18 }
 0x2b6   : > { %v6045_v52 = vadd.f32 %v7758_v17, %v5724_v43 }
 0x2b8   : > { %v5725_v30 = vpop.f32.mrb[92].mxu1 }
 0x2b9   : > { %v5726_v40 = vpop.f32.mrb[93].mxu1 }
 0x2ba   : > { %v5727_v56 = vadd.f32 %v5726_v40, %v5725_v30  ;;  %v5728_v23 = vpop.f32.mrb[94].mxu1 }
 0x2bb   : > { %v5729_v47 = vpop.f32.mrb[95].mxu1 }
 0x2bc   : > { %v5730_v63 = vadd.f32 %v5729_v47, %v5728_v23  ;;  %v6036_v42 = vadd.f32 %v7766_v31, %v5727_v56 }
 0x2be   : > { %v6042_v60 = vadd.f32 %v7769_v20, %v5730_v63 }
 0x2c0   : > { %v5731_v34 = vpop.f32.mrb[96].mxu1 }
 0x2c1   : > { %v5732_v11 = vpop.f32.mrb[97].mxu1 }
 0x2c2   : > { %v5733_v19 = vadd.f32 %v5732_v11, %v5731_v34  ;;  %v5734_v51 = vpop.f32.mrb[98].mxu1 }
 0x2c3   : > { %v5735_v45 = vpop.f32.mrb[99].mxu1 }
 0x2c4   : > { %v5736_v24 = vadd.f32 %v5735_v45, %v5734_v51  ;;  %v6051_v25 = vadd.f32 %v7776_v22, %v5733_v19  ;;  %v7890_v22 = vld [vmem:[%s8304_s7] ss:$0 sm:$0xff] }
 0x2c6   : > { %v6057_v17 = vadd.f32 %v7779_v49, %v5736_v24 }
 0x2c8   : > { %v5737_v5 = vpop.f32.mrb[100].mxu1 }
 0x2c9   : > { %v5738_v61 = vpop.f32.mrb[101].mxu1 }
 0x2ca   : > { %v5739_v41 = vadd.f32 %v5738_v61, %v5737_v5  ;;  %v5740_v32 = vpop.f32.mrb[102].mxu1 }
 0x2cb   : > { %v5741_v48 = vpop.f32.mrb[103].mxu1 }
 0x2cc   : > { %v5742_v38 = vadd.f32 %v5741_v48, %v5740_v32  ;;  %v6048_v31 = vadd.f32 %v7786_v10, %v5739_v41 }
 0x2ce   : > { %v6054_v20 = vadd.f32 %v7789_v8, %v5742_v38 }
 0x2d0   : > { %v5743_v28 = vpop.f32.mrb[104].mxu1 }
 0x2d1   : > { %v5744_v50 = vpop.f32.mrb[105].mxu1 }
 0x2d2   : > { %v5745_v1 = vadd.f32 %v5744_v50, %v5743_v28  ;;  %v5746_v0 = vpop.f32.mrb[106].mxu1  ;;  %v5989_v26 = vpop.f32.mrb[32].mxu0 }
 0x2d3   : > { %v5747_v49 = vpop.f32.mrb[107].mxu1  ;;  %v6037_v53 = vadd.f32 %v6036_v42, %v5989_v26  ;;  %v4333_v18 = vpop.f32.mrb[33].mxu0 }
 0x2d4   : > { %v5748_v27 = vadd.f32 %v5747_v49, %v5746_v0  ;;  %v6063_v6 = vadd.f32 %v7796_v21, %v5745_v1  ;;  %v6040_v43 = vadd.f32 %v6039_v55, %v4333_v18  ;;  %v5990_v10 = vpop.f32.mrb[34].mxu0 }
 0x2d5   : > { %v6043_v30 = vadd.f32 %v6042_v60, %v5990_v10  ;;  %v4336_v8 = vpop.f32.mrb[35].mxu0  ;;  %v7894_v40 = vadd.f32 %v6037_v53, %v7890_v22 }
 0x2d6   : > { %v6069_v56 = vadd.f32 %v7799_v4, %v5748_v27  ;;  %v6046_v23 = vadd.f32 %v6045_v52, %v4336_v8  ;;  %v7898_v47 = vadd.f32 %v6040_v43, %v7890_v22 }
 0x2d7   : > { %4741 = vrot.lane.b32.xlu1 %v7894_v40, %s6451_s25  ;;  %v7905_v55 = vadd.f32 %v6043_v30, %v7890_v22 }
 0x2d8   : > { %v5749_v63 = vpop.f32.mrb[108].mxu1  ;;  %4737 = vrot.lane.b32.xlu0 %v7898_v47, %s6451_s25  ;;  %v7908_v4 = vadd.f32 %v6046_v23, %v7890_v22 }
 0x2d9   : > { %v5750_v21 = vpop.f32.mrb[109].mxu1 }
 0x2da   : > { %v5751_v42 = vadd.f32 %v5750_v21, %v5749_v63  ;;  %v5752_v60 = vpop.f32.mrb[110].mxu1  ;;  %v5993_v52 = vpop.f32.mrb[36].mxu0 }
 0x2db   : > { %v5753_v34 = vpop.f32.mrb[111].mxu1  ;;  %v6049_v11 = vadd.f32 %v6048_v31, %v5993_v52  ;;  %v4349_v19 = vpop.f32.mrb[37].mxu0  ;;  %4743 = vrot.lane.b32.xlu1 %v7905_v55, %s6451_s25 }
 0x2dc   : > { %v5754_v51 = vadd.f32 %v5753_v34, %v5752_v60  ;;  %v6060_v45 = vadd.f32 %v7806_v16, %v5751_v42  ;;  %v6052_v24 = vadd.f32 %v6051_v25, %v4349_v19  ;;  %4739 = vrot.lane.b32.xlu0 %v7908_v4, %s6451_s25  ;;  %v5994_v5 = vpop.f32.mrb[38].mxu0 }
 0x2dd   : > { %v7916_v61 = vadd.f32 %v6049_v11, %v7890_v22  ;;  %v6055_v41 = vadd.f32 %v6054_v20, %v5994_v5  ;;  %v4352_v32 = vpop.f32.mrb[39].mxu0 }
 0x2de   : > { %v6066_v48 = vadd.f32 %v7809_v15, %v5754_v51  ;;  %v6058_v38 = vadd.f32 %v6057_v17, %v4352_v32  ;;  %v7927_v1 = vadd.f32 %v6052_v24, %v7890_v22 }
 0x2df   : > { %v7920_v31 = vadd.f32 %v6055_v41, %v7890_v22 }
 0x2e0   : > { %v5755_v28 = vpop.f32.mrb[112].mxu1  ;;  %4749 = vrot.lane.b32.xlu0 %v7916_v61, %s6451_s25  ;;  %v7930_v15 = vadd.f32 %v6058_v38, %v7890_v22 }
 0x2e1   : > { %v5756_v16 = vpop.f32.mrb[113].mxu1  ;;  %4751 = vrot.lane.b32.xlu1 %v7920_v31, %s6451_s25 }
 0x2e2   : > { %v5757_v25 = vadd.f32 %v5756_v16, %v5755_v28  ;;  %v5758_v50 = vpop.f32.mrb[114].mxu1  ;;  %v5997_v20 = vpop.f32.mrb[40].mxu0 }
 0x2e3   : > { %v5759_v0 = vpop.f32.mrb[115].mxu1  ;;  %v6061_v17 = vadd.f32 %v6060_v45, %v5997_v20  ;;  %v4365_v26 = vpop.f32.mrb[41].mxu0 }
 0x2e4   : > { %v5760_v49 = vadd.f32 %v5759_v0, %v5758_v50  ;;  %v6075_v53 = vadd.f32 %v7816_v12, %v5757_v25  ;;  %v6064_v18 = vadd.f32 %v6063_v6, %v4365_v26  ;;  %v5998_v27 = vpop.f32.mrb[42].mxu0  ;;  %4745 = vrot.lane.b32.xlu0 %v7927_v1, %s6451_s25 }
 0x2e5   : > { %v6067_v43 = vadd.f32 %v6066_v48, %v5998_v27  ;;  %v4368_v10 = vpop.f32.mrb[43].mxu0  ;;  %4747 = vrot.lane.b32.xlu1 %v7930_v15, %s6451_s25  ;;  %v7947_v60 = vadd.f32 %v6061_v17, %v7890_v22 }
 0x2e6   : > { %v6081_v30 = vadd.f32 %v7819_v29, %v5760_v49  ;;  %v7939_v8 = vadd.f32 %v6064_v18, %v7890_v22  ;;  %v6070_v23 = vadd.f32 %v6069_v56, %v4368_v10 }
 0x2e7   : > { %v7953_v19 = vadd.f32 %v6067_v43, %v7890_v22 }
 0x2e8   : > { %v5761_v63 = vpop.f32.mrb[116].mxu1  ;;  %v7942_v21 = vadd.f32 %v6070_v23, %v7890_v22  ;;  %4753 = vrot.lane.b32.xlu0 %v7939_v8, %s6451_s25 }
 0x2e9   : > { %v5762_v12 = vpop.f32.mrb[117].mxu1 }
 0x2ea   : > { %v5763_v6 = vadd.f32 %v5762_v12, %v5761_v63  ;;  %v5764_v42 = vpop.f32.mrb[118].mxu1  ;;  %v6001_v52 = vpop.f32.mrb[44].mxu0  ;;  %4755 = vrot.lane.b32.xlu1 %v7942_v21, %s6451_s25 }
 0x2eb   : > { %v5765_v29 = vpop.f32.mrb[119].mxu1  ;;  %v4381_v34 = vpop.f32.mrb[45].mxu0 }
 0x2ec   : > { %v6072_v56 = vadd.f32 %v7826_v59, %v5763_v6  ;;  %v5766_v11 = vadd.f32 %v5765_v29, %v5764_v42  ;;  %v6076_v51 = vadd.f32 %v6075_v53, %v4381_v34  ;;  %v6002_v45 = vpop.f32.mrb[46].mxu0  ;;  %4757 = vrot.lane.b32.xlu0 %v7947_v60, %s6451_s25 }
 0x2ed   : > { %v4384_v24 = vpop.f32.mrb[47].mxu0 }
 0x2ee   : > { %v6073_v5 = vadd.f32 %v6072_v56, %v6001_v52  ;;  %v6078_v41 = vadd.f32 %v7829_v54, %v5766_v11  ;;  %v7959_v32 = vadd.f32 %v6076_v51, %v7890_v22  ;;  %v6082_v48 = vadd.f32 %v6081_v30, %v4384_v24  ;;  %4759 = vrot.lane.b32.xlu1 %v7953_v19, %s6451_s25 }
 0x2f0   : > { %v6079_v59 = vadd.f32 %v6078_v41, %v6002_v45  ;;  %v5767_v38 = vpop.f32.mrb[120].mxu1  ;;  %v7964_v28 = vadd.f32 %v6082_v48, %v7890_v22  ;;  %4761 = vrot.lane.b32.xlu0 %v7959_v32, %s6451_s25  ;;  %v7969_v25 = vadd.f32 %v6073_v5, %v7890_v22 }
 0x2f1   : > { %v5768_v16 = vpop.f32.mrb[121].mxu1 }
 0x2f2   : > { %v5769_v54 = vadd.f32 %v5768_v16, %v5767_v38  ;;  %v5770_v50 = vpop.f32.mrb[122].mxu1  ;;  %v6005_v20 = vpop.f32.mrb[48].mxu0  ;;  %4763 = vrot.lane.b32.xlu1 %v7964_v28, %s6451_s25  ;;  %v7974_v17 = vadd.f32 %v6079_v59, %v7890_v22 }
 0x2f3   : > { %v5771_v0 = vpop.f32.mrb[123].mxu1  ;;  %v4397_v26 = vpop.f32.mrb[49].mxu0 }
 0x2f4   : > { %v6087_v49 = vadd.f32 %v7838_v44, %v5769_v54  ;;  %v5772_v53 = vadd.f32 %v5771_v0, %v5770_v50  ;;  %v6006_v18 = vpop.f32.mrb[50].mxu0  ;;  %4765 = vrot.lane.b32.xlu0 %v7969_v25, %s6451_s25 }
 0x2f5   : > { %v4400_v27 = vpop.f32.mrb[51].mxu0 }
 0x2f6   : > { %v6088_v43 = vadd.f32 %v6087_v49, %v4397_v26  ;;  %v6093_v10 = vadd.f32 %v7841_v36, %v5772_v53  ;;  %4767 = vrot.lane.b32.xlu1 %v7974_v17, %s6451_s25 }
 0x2f8   : > { %v6094_v30 = vadd.f32 %v6093_v10, %v4400_v27  ;;  %v5773_v23 = vpop.f32.mrb[124].mxu1  ;;  %v7983_v63 = vadd.f32 %v6088_v43, %v7890_v22 }
 0x2f9   : > { %v5774_v12 = vpop.f32.mrb[125].mxu1 }
 0x2fa   : > { %v5775_v6 = vadd.f32 %v5774_v12, %v5773_v23  ;;  %v5776_v44 = vpop.f32.mrb[126].mxu1  ;;  %4769 = vrot.lane.b32.xlu0 %v7983_v63, %s6451_s25  ;;  %v7988_v42 = vadd.f32 %v6094_v30, %v7890_v22  ;;  %v6009_v52 = vpop.f32.mrb[52].mxu0 }
 0x2fb   : > { %v5777_v29 = vpop.f32.mrb[127].mxu1  ;;  %v4413_v36 = vpop.f32.mrb[53].mxu0 }
 0x2fc   : > { %v6084_v34 = vadd.f32 %v7850_v2, %v5775_v6  ;;  %v5778_v56 = vadd.f32 %v5777_v29, %v5776_v44  ;;  %4771 = vrot.lane.b32.xlu1 %v7988_v42, %s6451_s25  ;;  %v6010_v11 = vpop.f32.mrb[54].mxu0 }
 0x2fd   : > { %v4416_v51 = vpop.f32.mrb[55].mxu0 }
 0x2fe   : > { %v6085_v45 = vadd.f32 %v6084_v34, %v6005_v20  ;;  %v6090_v24 = vadd.f32 %v7853_v35, %v5778_v56 }
 0x300   : > { %v6091_v5 = vadd.f32 %v6090_v24, %v6006_v18  ;;  %v5779_v41 = vpop.f32.mrb[128].mxu1  ;;  %v7995_v48 = vadd.f32 %v6085_v45, %v7890_v22 }
 0x301   : > { %v5780_v59 = vpop.f32.mrb[129].mxu1 }
 0x302   : > { %v5781_v38 = vadd.f32 %v5780_v59, %v5779_v41  ;;  %v5782_v16 = vpop.f32.mrb[130].mxu1  ;;  %4773 = vrot.lane.b32.xlu0 %v7995_v48, %s6451_s25  ;;  %v8000_v2 = vadd.f32 %v6091_v5, %v7890_v22  ;;  %v6013_v54 = vpop.f32.mrb[56].mxu0 }
 0x303   : > { %v5783_v50 = vpop.f32.mrb[131].mxu1  ;;  %v4429_v0 = vpop.f32.mrb[57].mxu0 }
 0x304   : > { %v6099_v20 = vadd.f32 %v7832_v46, %v5781_v38  ;;  %v5784_v35 = vadd.f32 %v5783_v50, %v5782_v16  ;;  %4775 = vrot.lane.b32.xlu1 %v8000_v2, %s6451_s25  ;;  %v6014_v26 = vpop.f32.mrb[58].mxu0 }
 0x305   : > { %v4432_v49 = vpop.f32.mrb[59].mxu0 }
 0x306   : > { %v6100_v53 = vadd.f32 %v6099_v20, %v4413_v36  ;;  %v6105_v18 = vadd.f32 %v7835_v58, %v5784_v35 }
 0x308   : > { %v6106_v27 = vadd.f32 %v6105_v18, %v4416_v51  ;;  %v5785_v43 = vpop.f32.mrb[132].mxu1  ;;  %v8007_v10 = vadd.f32 %v6100_v53, %v7890_v22 }
 0x309   : > { %v5786_v30 = vpop.f32.mrb[133].mxu1 }
 0x30a   : > { %v5787_v23 = vadd.f32 %v5786_v30, %v5785_v43  ;;  %v5788_v12 = vpop.f32.mrb[134].mxu1  ;;  %4777 = vrot.lane.b32.xlu0 %v8007_v10, %s6451_s25  ;;  %v8012_v46 = vadd.f32 %v6106_v27, %v7890_v22  ;;  %v8014_v6 = vpop.f32.mrb[60].mxu0 }
 0x30b   : > { %v5789_v44 = vpop.f32.mrb[135].mxu1  ;;  %v4445_v29 = vpop.f32.mrb[61].mxu0 }
 0x30c   : > { %v6096_v58 = vadd.f32 %v7844_v33, %v5787_v23  ;;  %v5790_v36 = vadd.f32 %v5789_v44, %v5788_v12  ;;  %4779 = vrot.lane.b32.xlu1 %v8012_v46, %s6451_s25  ;;  %v6018_v34 = vpop.f32.mrb[62].mxu0 }
 0x30d   : > { %v4448_v56 = vpop.f32.mrb[63].mxu0 }
 0x30e   : > { %v6097_v51 = vadd.f32 %v6096_v58, %v6009_v52  ;;  %v6102_v45 = vadd.f32 %v7847_v39, %v5790_v36 }
 0x310   : > { %v6103_v24 = vadd.f32 %v6102_v45, %v6010_v11  ;;  %v5791_v5 = vpop.f32.mrb[136].mxu1  ;;  %v8021_v41 = vadd.f32 %v6097_v51, %v7890_v22 }
 0x311   : > { %v5792_v59 = vpop.f32.mrb[137].mxu1 }
 0x312   : > { %v5793_v38 = vadd.f32 %v5792_v59, %v5791_v5  ;;  %v5794_v16 = vpop.f32.mrb[138].mxu1  ;;  %4781 = vrot.lane.b32.xlu0 %v8021_v41, %s6451_s25  ;;  %v8026_v33 = vadd.f32 %v6103_v24, %v7890_v22 }
 0x313   : > { %v5795_v50 = vpop.f32.mrb[139].mxu1 }
 0x314   : > { %v6111_v20 = vadd.f32 %v7856_v57, %v5793_v38  ;;  %v5796_v52 = vadd.f32 %v5795_v50, %v5794_v16  ;;  %4783 = vrot.lane.b32.xlu1 %v8026_v33, %s6451_s25 }
 0x316   : > { %v6112_v39 = vadd.f32 %v6111_v20, %v4429_v0  ;;  %v6117_v11 = vadd.f32 %v7859_v37, %v5796_v52 }
 0x318   : > { %v6118_v35 = vadd.f32 %v6117_v11, %v4432_v49  ;;  %v5797_v53 = vpop.f32.mrb[140].mxu1  ;;  %v8033_v18 = vadd.f32 %v6112_v39, %v7890_v22 }
 0x319   : > { %v5798_v27 = vpop.f32.mrb[141].mxu1 }
 0x31a   : > { %v5799_v43 = vadd.f32 %v5798_v27, %v5797_v53  ;;  %v5800_v30 = vpop.f32.mrb[142].mxu1  ;;  %4785 = vrot.lane.b32.xlu0 %v8033_v18, %s6451_s25  ;;  %v8038_v57 = vadd.f32 %v6118_v35, %v7890_v22 }
 0x31b   : > { %v5801_v23 = vpop.f32.mrb[143].mxu1 }
 0x31c   : > { %v6108_v12 = vadd.f32 %v7862_v14, %v5799_v43  ;;  %v5802_v0 = vadd.f32 %v5801_v23, %v5800_v30  ;;  %4787 = vrot.lane.b32.xlu1 %v8038_v57, %s6451_s25  ;;  %v4534_v23 = vld [vmem:[%s8083_s9 + $0x18] sm:$0xff] }
 0x31e   : > { %v6109_v37 = vadd.f32 %v6108_v12, %v6013_v54  ;;  %v6114_v49 = vadd.f32 %v7865_v13, %v5802_v0  ;;  %v4532_v12 = vld [vmem:[%s8083_s9 + $0x8] sm:$0xff]  ;;  %v4643_v0 = vadd.f32 1.0, %v7894_v40  ;;  %v4644_v40 = vadd.f32 1.0, %v7905_v55  ;;  %v4535_v55 = vld [vmem:[%s8083_s9 + $0x20] sm:$0xff] }
 0x320   : > { %v6115_v44 = vadd.f32 %v6114_v49, %v6014_v26  ;;  %v5803_v58 = vpop.f32.mrb[144].mxu1  ;;  %v8045_v36 = vadd.f32 %v6109_v37, %v7890_v22 }
 0x321   : > { %v5804_v51 = vpop.f32.mrb[145].mxu1 }
 0x322   : > { %v5805_v45 = vadd.f32 %v5804_v51, %v5803_v58  ;;  %v5806_v24 = vpop.f32.mrb[146].mxu1  ;;  %4789 = vrot.lane.b32.xlu0 %v8045_v36, %s6451_s25  ;;  %v8050_v14 = vadd.f32 %v6115_v44, %v7890_v22  ;;  %v4641_v44 = vadd.f32 1.0, %v7898_v47 }
 0x323   : > { %v5807_v5 = vpop.f32.mrb[147].mxu1 }
 0x324   : > { %v6123_v59 = vadd.f32 %v7868_v3, %v5805_v45  ;;  %v5808_v54 = vadd.f32 %v5807_v5, %v5806_v24  ;;  %4791 = vrot.lane.b32.xlu1 %v8050_v14, %s6451_s25  ;;  %v4537_v45 = vld [vmem:[%s8083_s9 + $0x30] sm:$0xff]  ;;  %v4538_v24 = vld [vmem:[%s8083_s9 + $0x38] sm:$0xff] }
 0x326   : > { %v6124_v13 = vadd.f32 %v6123_v59, %v4445_v29  ;;  %v6129_v26 = vadd.f32 %v7871_v62, %v5808_v54 }
 0x328   : > { %v6130_v38 = vadd.f32 %v6129_v26, %v4448_v56  ;;  %v5809_v16 = vpop.f32.mrb[148].mxu1  ;;  %v8057_v50 = vadd.f32 %v6124_v13, %v7890_v22  ;;  %v4642_v26 = vadd.f32 1.0, %v7908_v4 }
 0x329   : > { %v5810_v20 = vpop.f32.mrb[149].mxu1 }
 0x32a   : > { %v5811_v52 = vadd.f32 %v5810_v20, %v5809_v16  ;;  %v5812_v39 = vpop.f32.mrb[150].mxu1  ;;  %4793 = vrot.lane.b32.xlu0 %v8057_v50, %s6451_s25  ;;  %v8062_v3 = vadd.f32 %v6130_v38, %v7890_v22 }
 0x32b   : > { %v5813_v11 = vpop.f32.mrb[151].mxu1 }
 0x32c   : > { %v6120_v62 = vadd.f32 %v7874_v9, %v5811_v52  ;;  %v5814_v29 = vadd.f32 %v5813_v11, %v5812_v39  ;;  %4795 = vrot.lane.b32.xlu1 %v8062_v3, %s6451_s25  ;;  %v4533_v9 = vld [vmem:[%s8083_s9 + $0x10] sm:$0xff]  ;;  %v4536_v11 = vld [vmem:[%s8083_s9 + $0x28] sm:$0xff] }
 0x32e   : > { %v6121_v56 = vadd.f32 %v6120_v62, %v8014_v6  ;;  %v6126_v35 = vadd.f32 %v7877_v7, %v5814_v29  ;;  %v8090_v7 = vld [vmem:[%s345_s12] ss:$0 sm:$0xff] }
 0x32f   : > { %v4572_v6 = vsub.f32 %v4533_v9, %v8090_v7  ;;  %v4573_v49 = vsub.f32 %v4534_v23, %v8090_v7  ;;  %v4571_v51 = vsub.f32 %v4532_v12, %v8090_v7  ;;  %v4576_v38 = vsub.f32 %v4537_v45, %v8090_v7  ;;  %v4539_v12 = vld [vmem:[%s8083_s9 + $0x40] sm:$0xff] }
 0x330   : > { %v6127_v53 = vadd.f32 %v6126_v35, %v6018_v34  ;;  %v8070_v27 = vadd.f32 %v6121_v56, %v7890_v22  ;;  %v8098_v34 = vld [vmem:[%s348_s15] ss:$0 sm:$0xff]  ;;  %v4577_v52 = vsub.f32 %v4538_v24, %v8090_v7  ;;  %v4647_v35 = vadd.f32 1.0, %v7916_v61 }
 0x331   : > { %v4611_v37 = vmul.f32 %v8098_v34, %v4572_v6  ;;  %v4612_v59 = vmul.f32 %v8098_v34, %v4573_v49  ;;  %v4610_v13 = vmul.f32 %v8098_v34, %v4571_v51  ;;  %v4615_v56 = vmul.f32 %v8098_v34, %v4576_v38 }
 0x332   : > { %4797 = vrot.lane.b32.xlu0 %v8070_v27, %s6451_s25  ;;  %v8075_v43 = vadd.f32 %v6127_v53, %v7890_v22  ;;  %v4531_v22 = vld [vmem:[%s8083_s9] sm:$0xff]  ;;  %v4574_v53 = vsub.f32 %v4535_v55, %v8090_v7  ;;  %v4616_v6 = vmul.f32 %v8098_v34, %v4577_v52  ;;  %v4575_v23 = vsub.f32 %v4536_v11, %v8090_v7 }
 0x333   : > { %v4570_v30 = vsub.f32 %v4531_v22, %v8090_v7  ;;  %v4675_v5 = vmul.f32 %v4643_v0, %v4611_v37  ;;  %v4676_v62 = vmul.f32 %v4644_v40, %v4612_v59  ;;  %v4674_v4 = vmul.f32 %v4642_v26, %v4610_v13  ;;  %v4540_v37 = vld [vmem:[%s8083_s9 + $0x48] sm:$0xff]  ;;  %v4542_v13 = vld [vmem:[%s8083_s9 + $0x58] sm:$0xff] }
 0x334   : > { %4799 = vrot.lane.b32.xlu1 %v8075_v43, %s6451_s25  ;;  %v4679_v61 = vmul.f32 %v4647_v35, %v4615_v56  ;;  %v4613_v49 = vmul.f32 %v8098_v34, %v4574_v53  ;;  %v4614_v45 = vmul.f32 %v8098_v34, %v4575_v23  ;;  %v4646_v24 = vadd.f32 1.0, %v7930_v15 }
 0x335   : > { %v4609_v58 = vmul.f32 %v8098_v34, %v4570_v30  ;;  %v4648_v30 = vadd.f32 1.0, %v7920_v31  ;;  %v4649_v38 = vadd.f32 1.0, %v7939_v8 }
 0x336   : > { %v4678_v52 = vmul.f32 %v4646_v24, %v4614_v45 }
 0x337   : > { %v4673_v54 = vmul.f32 %v4641_v44, %v4609_v58  ;;  %v4645_v44 = vadd.f32 1.0, %v7927_v1  ;;  %v4578_v58 = vsub.f32 %v4539_v12, %v8090_v7  ;;  %v4680_v51 = vmul.f32 %v4648_v30, %v4616_v6  ;;  %v4545_v6 = vld [vmem:[%s8083_s9 + $0x70] sm:$0xff] }
 0x339   : > { %v4677_v1 = vmul.f32 %v4645_v44, %v4613_v49  ;;  %v4617_v26 = vmul.f32 %v8098_v34, %v4578_v58  ;;  %v4546_v49 = vld [vmem:[%s8083_s9 + $0x78] sm:$0xff]  ;;  %v4653_v58 = vadd.f32 1.0, %v7959_v32 }
 0x33b   : > { %v4681_v35 = vmul.f32 %v4649_v38, %v4617_v26  ;;  %v4548_v26 = vld [vmem:[%s8083_s9 + $0x88] sm:$0xff] }
 0x349   : > { %v4742_v47 = vpop.permute.xlu1 %4741 }
 0x34a   : > { %v4835_v16 = vadd.f32 %v4742_v47, %v4675_v5  ;;  %v4738_v20 = vpop.permute.xlu0 %4737  ;;  %v4541_v5 = vld [vmem:[%s8083_s9 + $0x50] sm:$0xff]  ;;  %v4579_v47 = vsub.f32 %v4540_v37, %v8090_v7 }
 0x34b   : > { %v4833_v39 = vadd.f32 %v4738_v20, %v4673_v54  ;;  %v4543_v20 = vld [vmem:[%s8083_s9 + $0x60] sm:$0xff] }
 0x34c   : > { %4868 = vst.msk [vmem:[%s8116_s17 + $0x10] sm:$0xff] %vm4865_vm13, %v4835_v16  ;;  %v4580_v16 = vsub.f32 %v4541_v5, %v8090_v7  ;;  %v4618_v11 = vmul.f32 %v8098_v34, %v4579_v47  ;;  %v4582_v8 = vsub.f32 %v4543_v20, %v8090_v7  ;;  %v4654_v5 = vadd.f32 1.0, %v7964_v28 }
 0x34d   : > { %4866 = vst.msk [vmem:[%s8116_s17] sm:$0xff] %vm4865_vm13, %v4833_v39  ;;  %v4744_v29 = vpop.permute.xlu1 %4743 }
 0x34e   : > { %v4836_v9 = vadd.f32 %v4744_v29, %v4676_v62  ;;  %v4740_v22 = vpop.permute.xlu0 %4739  ;;  %v4650_v62 = vadd.f32 1.0, %v7942_v21  ;;  %v4581_v29 = vsub.f32 %v4542_v13, %v8090_v7  ;;  %v4619_v53 = vmul.f32 %v8098_v34, %v4580_v16 }
 0x34f   : > { %v4834_v0 = vadd.f32 %v4740_v22, %v4674_v4  ;;  %v4544_v4 = vld [vmem:[%s8083_s9 + $0x68] sm:$0xff] }
 0x350   : > { %4869 = vst.msk [vmem:[%s8116_s17 + $0x18] sm:$0xff] %vm4865_vm13, %v4836_v9  ;;  %v4651_v9 = vadd.f32 1.0, %v7947_v60  ;;  %v4583_v21 = vsub.f32 %v4544_v4, %v8090_v7  ;;  %v4682_v23 = vmul.f32 %v4650_v62, %v4618_v11  ;;  %v4620_v12 = vmul.f32 %v8098_v34, %v4581_v29 }
 0x351   : > { %4867 = vst.msk [vmem:[%s8116_s17 + $0x8] sm:$0xff] %vm4865_vm13, %v4834_v0  ;;  %v4652_v0 = vadd.f32 1.0, %v7953_v19  ;;  %v4657_v4 = vadd.f32 1.0, %v7983_v63 }
 0x352   : > { %v4750_v31 = vpop.permute.xlu0 %4749  ;;  %v4683_v44 = vmul.f32 %v4651_v9, %v4619_v53  ;;  %v4622_v45 = vmul.f32 %v8098_v34, %v4583_v21  ;;  %v4658_v9 = vadd.f32 1.0, %v7988_v42  ;;  %v4550_v21 = vld [vmem:[%s8083_s9 + $0x98] sm:$0xff] }
 0x353   : > { %v4839_v59 = vadd.f32 %v4750_v31, %v4679_v61  ;;  %v4752_v40 = vpop.permute.xlu1 %4751  ;;  %v4621_v61 = vmul.f32 %v8098_v34, %v4582_v8  ;;  %v4584_v31 = vsub.f32 %v4545_v6, %v8090_v7  ;;  %v4684_v24 = vmul.f32 %v4652_v0, %v4620_v12 }
 0x354   : > { %v4840_v54 = vadd.f32 %v4752_v40, %v4680_v51  ;;  %v4547_v40 = vld [vmem:[%s8083_s9 + $0x80] sm:$0xff]  ;;  %v4686_v20 = vmul.f32 %v4654_v5, %v4622_v45  ;;  %v4589_v0 = vsub.f32 %v4550_v21, %v8090_v7 }
 0x355   : > { %4872 = vst.msk [vmem:[%s8116_s17 + $0x30] sm:$0xff] %vm4865_vm13, %v4839_v59  ;;  %v4585_v59 = vsub.f32 %v4546_v49, %v8090_v7  ;;  %v4623_v13 = vmul.f32 %v8098_v34, %v4584_v31  ;;  %v4586_v16 = vsub.f32 %v4547_v40, %v8090_v7  ;;  %v4659_v49 = vadd.f32 1.0, %v7995_v48  ;;  %v4552_v31 = vld [vmem:[%s8083_s9 + $0xa8] sm:$0xff] }
 0x356   : > { %4873 = vst.msk [vmem:[%s8116_s17 + $0x38] sm:$0xff] %vm4865_vm13, %v4840_v54  ;;  %v4746_v15 = vpop.permute.xlu0 %4745  ;;  %v4685_v54 = vmul.f32 %v4653_v58, %v4621_v61  ;;  %v4660_v58 = vadd.f32 1.0, %v8000_v2  ;;  %v4553_v2 = vld [vmem:[%s8083_s9 + $0xb0] sm:$0xff] }
 0x357   : > { %v4837_v55 = vadd.f32 %v4746_v15, %v4677_v1  ;;  %v4748_v39 = vpop.permute.xlu1 %4747  ;;  %v4655_v1 = vadd.f32 1.0, %v7969_v25  ;;  %v4624_v15 = vmul.f32 %v8098_v34, %v4585_v59  ;;  %v4625_v29 = vmul.f32 %v8098_v34, %v4586_v16 }
 0x358   : > { %v4838_v56 = vadd.f32 %v4748_v39, %v4678_v52  ;;  %v4656_v52 = vadd.f32 1.0, %v7974_v17  ;;  %v4587_v39 = vsub.f32 %v4548_v26, %v8090_v7  ;;  %v4549_v17 = vld [vmem:[%s8083_s9 + $0x90] sm:$0xff]  ;;  %v4591_v59 = vsub.f32 %v4552_v31, %v8090_v7  ;;  %v4560_v31 = vld [vmem:[%s8083_s9 + $0xe8] sm:$0xff] }
 0x359   : > { %4870 = vst.msk [vmem:[%s8116_s17 + $0x20] sm:$0xff] %vm4865_vm13, %v4837_v55  ;;  %v4687_v11 = vmul.f32 %v4655_v1, %v4623_v13  ;;  %v4689_v6 = vmul.f32 %v4657_v4, %v4625_v29  ;;  %v4588_v63 = vsub.f32 %v4549_v17, %v8090_v7  ;;  %v4662_v13 = vadd.f32 1.0, %v8012_v46  ;;  %v4554_v1 = vld [vmem:[%s8083_s9 + $0xb8] sm:$0xff]  ;;  %v4555_v46 = vld [vmem:[%s8083_s9 + $0xc0] sm:$0xff] }
 0x35a   : > { %4871 = vst.msk [vmem:[%s8116_s17 + $0x28] sm:$0xff] %vm4865_vm13, %v4838_v56  ;;  %v4754_v22 = vpop.permute.xlu0 %4753  ;;  %v4688_v8 = vmul.f32 %v4656_v52, %v4624_v15  ;;  %v4626_v53 = vmul.f32 %v8098_v34, %v4587_v39  ;;  %v4593_v15 = vsub.f32 %v4554_v1, %v8090_v7  ;;  %v4663_v39 = vadd.f32 1.0, %v8021_v41 }
 0x35b   : > { %v4841_v30 = vadd.f32 %v4754_v22, %v4681_v35  ;;  %v4627_v61 = vmul.f32 %v8098_v34, %v4588_v63  ;;  %v4594_v4 = vsub.f32 %v4555_v46, %v8090_v7  ;;  %v4558_v63 = vld [vmem:[%s8083_s9 + $0xd8] sm:$0xff] }
 0x35c   : > { %v4756_v37 = vpop.permute.xlu1 %4755  ;;  %v4690_v12 = vmul.f32 %v4658_v9, %v4626_v53 }
 0x35d   : > { %4874 = vst.msk [vmem:[%s8116_s17 + $0x40] sm:$0xff] %vm4865_vm13, %v4841_v30  ;;  %v4842_v60 = vadd.f32 %v4756_v37, %v4682_v23  ;;  %v4633_v9 = vmul.f32 %v8098_v34, %v4594_v4 }
 0x35e   : > { %v4758_v51 = vpop.permute.xlu0 %4757 }
 0x35f   : > { %4875 = vst.msk [vmem:[%s8116_s17 + $0x48] sm:$0xff] %vm4865_vm13, %v4842_v60  ;;  %v4843_v19 = vadd.f32 %v4758_v51, %v4683_v44  ;;  %v4551_v60 = vld [vmem:[%s8083_s9 + $0xa0] sm:$0xff]  ;;  %v4628_v44 = vmul.f32 %v8098_v34, %v4589_v0  ;;  %v4691_v51 = vmul.f32 %v4659_v49, %v4627_v61 }
 0x360   : > { %v4760_v47 = vpop.permute.xlu1 %4759  ;;  %v4590_v45 = vsub.f32 %v4551_v60, %v8090_v7  ;;  %v4667_v60 = vadd.f32 1.0, %v8045_v36 }
 0x361   : > { %4876 = vst.msk [vmem:[%s8116_s17 + $0x50] sm:$0xff] %vm4865_vm13, %v4843_v19  ;;  %v4844_v32 = vadd.f32 %v4760_v47, %v4684_v24  ;;  %v4692_v5 = vmul.f32 %v4660_v58, %v4628_v44  ;;  %v4668_v58 = vadd.f32 1.0, %v8050_v14  ;;  %v4561_v14 = vld [vmem:[%s8083_s9 + $0xf0] sm:$0xff] }
 0x362   : > { %v4762_v38 = vpop.permute.xlu0 %4761  ;;  %v4629_v47 = vmul.f32 %v8098_v34, %v4590_v45  ;;  %v4600_v1 = vsub.f32 %v4561_v14, %v8090_v7 }
 0x363   : > { %4877 = vst.msk [vmem:[%s8116_s17 + $0x58] sm:$0xff] %vm4865_vm13, %v4844_v32  ;;  %v4845_v28 = vadd.f32 %v4762_v38, %v4685_v54  ;;  %v4661_v32 = vadd.f32 1.0, %v8007_v10  ;;  %v4630_v54 = vmul.f32 %v8098_v34, %v4591_v59  ;;  %v4592_v38 = vsub.f32 %v4553_v2, %v8090_v7 }
 0x364   : > { %v4764_v55 = vpop.permute.xlu1 %4763  ;;  %v4599_v59 = vsub.f32 %v4560_v31, %v8090_v7  ;;  %v4670_v2 = vadd.f32 1.0, %v8062_v3 }
 0x365   : > { %4878 = vst.msk [vmem:[%s8116_s17 + $0x60] sm:$0xff] %vm4865_vm13, %v4845_v28  ;;  %v4846_v25 = vadd.f32 %v4764_v55, %v4686_v20  ;;  %v4693_v26 = vmul.f32 %v4661_v32, %v4629_v47  ;;  %v4694_v20 = vmul.f32 %v4662_v13, %v4630_v54  ;;  %v4631_v55 = vmul.f32 %v8098_v34, %v4592_v38  ;;  %v4562_v54 = vld [vmem:[%s8083_s9 + $0xf8] sm:$0xff] }
 0x366   : > { %v4766_v62 = vpop.permute.xlu0 %4765  ;;  %v4669_v47 = vadd.f32 1.0, %v8057_v50  ;;  %v4638_v32 = vmul.f32 %v8098_v34, %v4599_v59 }
 0x367   : > { %4879 = vst.msk [vmem:[%s8116_s17 + $0x68] sm:$0xff] %vm4865_vm13, %v4846_v25  ;;  %v4847_v56 = vadd.f32 %v4766_v62, %v4687_v11  ;;  %v4632_v25 = vmul.f32 %v8098_v34, %v4593_v15  ;;  %v4664_v11 = vadd.f32 1.0, %v8026_v33  ;;  %v4556_v62 = vld [vmem:[%s8083_s9 + $0xc8] sm:$0xff]  ;;  %v4695_v29 = vmul.f32 %v4663_v39, %v4631_v55  ;;  %v4557_v33 = vld [vmem:[%s8083_s9 + $0xd0] sm:$0xff] }
 0x368   : > { %v4768_v35 = vpop.permute.xlu1 %4767  ;;  %v4639_v15 = vmul.f32 %v8098_v34, %v4600_v1 }
 0x369   : > { %4880 = vst.msk [vmem:[%s8116_s17 + $0x70] sm:$0xff] %vm4865_vm13, %v4847_v56  ;;  %v4848_v22 = vadd.f32 %v4768_v35, %v4688_v8  ;;  %v4696_v17 = vmul.f32 %v4664_v11, %v4632_v25  ;;  %v4595_v35 = vsub.f32 %v4556_v62, %v8090_v7 }
 0x36b   : > { %4881 = vst.msk [vmem:[%s8116_s17 + $0x78] sm:$0xff] %vm4865_vm13, %v4848_v22  ;;  %v4665_v22 = vadd.f32 1.0, %v8033_v18  ;;  %v4634_v21 = vmul.f32 %v8098_v34, %v4595_v35 }
 0x36c   : > { %v4770_v30 = vpop.permute.xlu0 %4769 }
 0x36d   : > { %v4849_v23 = vadd.f32 %v4770_v30, %v4689_v6  ;;  %v4666_v6 = vadd.f32 1.0, %v8038_v57  ;;  %v4697_v30 = vmul.f32 %v4665_v22, %v4633_v9  ;;  %v4559_v57 = vld [vmem:[%s8083_s9 + $0xe0] sm:$0xff] }
 0x36e   : > { %v4772_v37 = vpop.permute.xlu1 %4771  ;;  %v4598_v45 = vsub.f32 %v4559_v57, %v8090_v7 }
 0x36f   : > { %4882 = vst.msk [vmem:[%s8116_s17 + $0x80] sm:$0xff] %vm4865_vm13, %v4849_v23  ;;  %v4850_v42 = vadd.f32 %v4772_v37, %v4690_v12  ;;  %v4596_v23 = vsub.f32 %v4557_v33, %v8090_v7  ;;  %v4698_v37 = vmul.f32 %v4666_v6, %v4634_v21 }
 0x371   : > { %4883 = vst.msk [vmem:[%s8116_s17 + $0x88] sm:$0xff] %vm4865_vm13, %v4850_v42  ;;  %v4597_v42 = vsub.f32 %v4558_v63, %v8090_v7  ;;  %v4635_v49 = vmul.f32 %v8098_v34, %v4596_v23 }
 0x373   : > { %v4636_v44 = vmul.f32 %v8098_v34, %v4597_v42 }
 0x374   : > { %v4774_v19 = vpop.permute.xlu0 %4773 }
 0x375   : > { %v4851_v24 = vadd.f32 %v4774_v19, %v4691_v51  ;;  %v4699_v51 = vmul.f32 %v4667_v60, %v4635_v49 }
 0x376   : > { %v4776_v48 = vpop.permute.xlu1 %4775 }
 0x377   : > { %4884 = vst.msk [vmem:[%s8116_s17 + $0x90] sm:$0xff] %vm4865_vm13, %v4851_v24  ;;  %v4852_v40 = vadd.f32 %v4776_v48, %v4692_v5  ;;  %v4700_v5 = vmul.f32 %v4668_v58, %v4636_v44 }
 0x379   : > { %4885 = vst.msk [vmem:[%s8116_s17 + $0x98] sm:$0xff] %vm4865_vm13, %v4852_v40  ;;  %v4637_v40 = vmul.f32 %v8098_v34, %v4598_v45 }
 0x37b   : > { %v4701_v13 = vmul.f32 %v4669_v47, %v4637_v40 }
 0x37c   : > { %v4778_v16 = vpop.permute.xlu0 %4777 }
 0x37d   : > { %v4853_v28 = vadd.f32 %v4778_v16, %v4693_v26  ;;  %v4702_v16 = vmul.f32 %v4670_v2, %v4638_v32 }
 0x37e   : > { %v4780_v10 = vpop.permute.xlu1 %4779 }
 0x37f   : > { %4886 = vst.msk [vmem:[%s8116_s17 + $0xa0] sm:$0xff] %vm4865_vm13, %v4853_v28  ;;  %v4854_v52 = vadd.f32 %v4780_v10, %v4694_v20  ;;  %v4601_v28 = vsub.f32 %v4562_v54, %v8090_v7  ;;  %v4671_v10 = vadd.f32 1.0, %v8070_v27 }
 0x381   : > { %4887 = vst.msk [vmem:[%s8116_s17 + $0xa8] sm:$0xff] %vm4865_vm13, %v4854_v52  ;;  %v4640_v3 = vmul.f32 %v8098_v34, %v4601_v28  ;;  %v4672_v52 = vadd.f32 1.0, %v8075_v43  ;;  %v4703_v55 = vmul.f32 %v4671_v10, %v4639_v15 }
 0x383   : > { %v4704_v25 = vmul.f32 %v4672_v52, %v4640_v3 }
 0x384   : > { %v4782_v56 = vpop.permute.xlu0 %4781 }
 0x385   : > { %v4855_v8 = vadd.f32 %v4782_v56, %v4695_v29 }
 0x386   : > { %v4784_v41 = vpop.permute.xlu1 %4783 }
 0x387   : > { %4888 = vst.msk [vmem:[%s8116_s17 + $0xb0] sm:$0xff] %vm4865_vm13, %v4855_v8  ;;  %v4856_v53 = vadd.f32 %v4784_v41, %v4696_v17 }
 0x389   : > { %4889 = vst.msk [vmem:[%s8116_s17 + $0xb8] sm:$0xff] %vm4865_vm13, %v4856_v53 }
 0x38c   : > { %v4786_v12 = vpop.permute.xlu0 %4785 }
 0x38d   : > { %v4857_v0 = vadd.f32 %v4786_v12, %v4697_v30 }
 0x38e   : > { %v4788_v18 = vpop.permute.xlu1 %4787 }
 0x38f   : > { %4890 = vst.msk [vmem:[%s8116_s17 + $0xc0] sm:$0xff] %vm4865_vm13, %v4857_v0  ;;  %v4858_v61 = vadd.f32 %v4788_v18, %v4698_v37 }
 0x391   : > { %4891 = vst.msk [vmem:[%s8116_s17 + $0xc8] sm:$0xff] %vm4865_vm13, %v4858_v61 }
 0x394   : > { %v4790_v19 = vpop.permute.xlu0 %4789 }
 0x395   : > { %v4859_v24 = vadd.f32 %v4790_v19, %v4699_v51 }
 0x396   : > { %v4792_v36 = vpop.permute.xlu1 %4791 }
 0x397   : > { %4892 = vst.msk [vmem:[%s8116_s17 + $0xd0] sm:$0xff] %vm4865_vm13, %v4859_v24  ;;  %v4860_v48 = vadd.f32 %v4792_v36, %v4700_v5 }
 0x399   : > { %4893 = vst.msk [vmem:[%s8116_s17 + $0xd8] sm:$0xff] %vm4865_vm13, %v4860_v48 }
 0x39c   : > { %v4794_v26 = vpop.permute.xlu0 %4793 }
 0x39d   : > { %v4861_v38 = vadd.f32 %v4794_v26, %v4701_v13 }
 0x39e   : > { %v4796_v50 = vpop.permute.xlu1 %4795 }
 0x39f   : > { %4894 = vst.msk [vmem:[%s8116_s17 + $0xe0] sm:$0xff] %vm4865_vm13, %v4861_v38  ;;  %v4862_v20 = vadd.f32 %v4796_v50, %v4702_v16 }
 0x3a1   : > { %4895 = vst.msk [vmem:[%s8116_s17 + $0xe8] sm:$0xff] %vm4865_vm13, %v4862_v20 }
 0x3a4   : > { %v4798_v39 = vpop.permute.xlu0 %4797 }
 0x3a5   : > { %v4863_v46 = vadd.f32 %v4798_v39, %v4703_v55 }
 0x3a6   : > { %v4800_v7 = vpop.permute.xlu1 %4799 }
 0x3a7   : > { %4896 = vst.msk [vmem:[%s8116_s17 + $0xf0] sm:$0xff] %vm4865_vm13, %v4863_v46  ;;  %v4864_v11 = vadd.f32 %v4800_v7, %v4704_v25 }
 0x3a9   : > { %4897 = vst.msk [vmem:[%s8116_s17 + $0xf8] sm:$0xff] %vm4865_vm13, %v4864_v11 }
 0x3aa PF: > { %s18_s27 = sadd.s32 1, %s6447_s27  }
 0x3ab   : > { %p15_p4 = scmp.ge.s32.totalorder %s18_s27, 4  }
 0x3ad   :  { %17 = sbr.rel (!%p15_p4) target bundleno = 1 (0x1), region = 95 }

</bundles_post_ra>
